<compile_context>
chip_gen: v6e
topology: v6e:2x2x1
jax: 0.10.0
libtpu: 0.0.40
codegen_flags: <defaults>
</compile_context>

<pallas_src>
import numpy as np
import jax
import jax.numpy as jnp
from jax.experimental import pallas as pl
from jax.experimental.pallas import tpu as pltpu

C = 256            # channel width fixed by the module's Conv2d(256, 256, ...)
SIDE = 8           # side_len (=> log2(8)=3 down-sampling conv blocks: 8->4->2->1)
NEG_SLOPE = 0.01   # nn.LeakyReLU default negative_slope
BN_EPS = 1e-5


def _layer_offsets(side):
    """3x3 offsets (ki, kj) that touch at least one in-bounds input pixel."""
    n_out = side // 2
    offs = []
    for ki in range(3):
        for kj in range(3):
            valid = any(0 <= 2 * oi + ki - 1 < side and 0 <= 2 * oj + kj - 1 < side
                        for oi in range(n_out) for oj in range(n_out))
            if valid:
                offs.append((ki, kj))
    return offs


def _exist_pred_head_kernel(x_ref, w0, b0, w1, b1, w2, b2,
                            fc1w_ref, fc1b_ref, fc2w_ref, fc2b_ref, out_ref):
    HW = SIDE * SIDE
    G = x_ref.shape[1] // HW            # images per grid step
    h = x_ref[0]                        # (HW*G, C) f32, row = spatial*G + image
    side = SIDE
    for w_ref, b_ref in ((w0, b0), (w1, b1), (w2, b2)):
        n_out_side = side // 2
        # Build the im2col matrix (G*n_out, n_off*C) with aligned slices only.
        patches = []
        for (ki, kj) in _layer_offsets(side):
            blocks = []
            for oi in range(n_out_side):
                for oj in range(n_out_side):
                    ri = 2 * oi + ki - 1
                    rj = 2 * oj + kj - 1
                    if 0 <= ri < side and 0 <= rj < side:
                        r = ri * side + rj
                        blocks.append(h[r * G:(r + 1) * G, :])
                    else:
                        blocks.append(jnp.zeros((G, C), jnp.float32))
            patches.append(blocks[0] if len(blocks) == 1
                           else jnp.concatenate(blocks, axis=0))
        im2col = (patches[0] if len(patches) == 1
                  else jnp.concatenate(patches, axis=1))
        # One fused conv matmul per layer (bf16 operands, f32 accumulation);
        # BN scale is pre-folded into w_ref, bias holds conv_b/BN shift.
        acc = jnp.dot(im2col.astype(jnp.bfloat16), w_ref[...],
                      preferred_element_type=jnp.float32)
        acc = acc + b_ref[...]
        h = jnp.where(acc >= 0, acc, NEG_SLOPE * acc)   # LeakyReLU(0.01)
        side //= 2

    # h: (G, C), one row per image.  fc head; Dropout(0.1) is identity in eval.
    z = jnp.dot(h, fc1w_ref[...], preferred_element_type=jnp.float32) + fc1b_ref[...]
    z = jnp.maximum(z, 0.0)
    # fc2 (64 -> 1) as a VPU lane reduction instead of an N=1 MXU matmul.
    y = jnp.sum(z * fc2w_ref[...], axis=1, keepdims=True) + fc2b_ref[...]   # (G, 1)
    out_ref[0] = jnp.broadcast_to(y, out_ref.shape[1:])


def exist_pred_head_forward(x, kernel_params, group_size=None):
    b, t, hh, ww, c = x.shape
    assert hh == SIDE and ww == SIDE and c == C
    n = b * t
    # G sized to the MXU: 8 keeps padding small for tiny batches; 16 gives
    # M=256 at layer 1 for v6e/v7x while keeping the grid splittable (v7x 2-TC).
    G = group_size if group_size is not None else (8 if n <= 8 else 16)
    nb = -(-n // G)
    n_pad = nb * G
    HW = SIDE * SIDE

    x_flat = x.reshape(n, HW, c).astype(jnp.float32)
    if n_pad != n:
        x_flat = jnp.pad(x_flat, ((0, n_pad - n), (0, 0), (0, 0)))
    # Spatial-major layout inside each group: row = spatial*G + image.
    x_g = (x_flat.reshape(nb, G, HW, c)
                 .transpose(0, 2, 1, 3)
                 .reshape(nb, HW * G, c))

    (w0, b0, w1, b1, w2, b2, fc1_w, fc1_b, fc2_w, fc2_b) = kernel_params

    def full(a):   # whole-array block, same tile every grid step (no re-DMA)
        return pl.BlockSpec(a.shape, lambda i, nd=a.ndim: (0,) * nd)

    out = pl.pallas_call(
        _exist_pred_head_kernel,
        out_shape=jax.ShapeDtypeStruct((nb, G, 128), jnp.float32),
        grid_spec=pltpu.PrefetchScalarGridSpec(
            num_scalar_prefetch=0,
            grid=(nb,),
            in_specs=[
                pl.BlockSpec((1, HW * G, c), lambda i: (i, 0, 0)),
                full(w0), full(b0), full(w1), full(b1), full(w2), full(b2),
                full(fc1_w), full(fc1_b), full(fc2_w), full(fc2_b),
            ],
            out_specs=pl.BlockSpec((1, G, 128), lambda i: (i, 0, 0)),
        ),
        compiler_params=pltpu.CompilerParams(
            dimension_semantics=("parallel",),
            vmem_limit_bytes=48 * 1024 * 1024,
        ),
    )(x_g, w0, b0, w1, b1, w2, b2, fc1_w, fc1_b, fc2_w, fc2_b)

    preds = out[:, :, 0].reshape(nb * G)[:n]
    return preds.reshape(b, t)       # torch.squeeze + fc + reshape(b, t)


def init_raw_params(key):
    """Deterministic synthetic parameters matching the module's shapes."""
    ks = jax.random.split(key, 22)
    conv_w = [jax.random.normal(ks[l], (3, 3, C, C), jnp.float32) / np.sqrt(9 * C)
              for l in range(3)]                                        # HWIO
    conv_b = [jax.random.normal(ks[3 + l], (C,), jnp.float32) * 0.05 for l in range(3)]
    gamma = [jax.random.uniform(ks[6 + l], (C,), minval=0.5, maxval=1.5) for l in range(3)]
    beta = [jax.random.normal(ks[9 + l], (C,)) * 0.1 for l in range(3)]
    mean = [jax.random.normal(ks[12 + l], (C,)) * 0.1 for l in range(3)]
    var = [jax.random.uniform(ks[15 + l], (C,), minval=0.5, maxval=1.5) for l in range(3)]
    fc1_w = jax.random.normal(ks[18], (C, 64), jnp.float32) / np.sqrt(C)
    fc1_b = jax.random.normal(ks[19], (64,), jnp.float32) * 0.01
    fc2_w = jax.random.normal(ks[20], (64, 1), jnp.float32) / 8.0
    fc2_b = jax.random.normal(ks[21], (1,), jnp.float32) * 0.01
    return dict(conv_w=conv_w, conv_b=conv_b, bn_gamma=gamma, bn_beta=beta,
                bn_mean=mean, bn_var=var,
                fc1_w=fc1_w, fc1_b=fc1_b, fc2_w=fc2_w, fc2_b=fc2_b)


def prepare_kernel_params(raw):
    """Fold eval-mode BN into conv weights/biases and build im2col weights."""
    ops = []
    side = SIDE
    for l in range(3):
        scale = raw["bn_gamma"][l] / jnp.sqrt(raw["bn_var"][l] + BN_EPS)     # (C,)
        w_fold = raw["conv_w"][l] * scale[None, None, None, :]               # (3,3,C,C)
        bias = ((raw["conv_b"][l] - raw["bn_mean"][l]) * scale
                + raw["bn_beta"][l]).reshape(1, C).astype(jnp.float32)
        offs = _layer_offsets(side)
        w_im2col = jnp.concatenate([w_fold[ki, kj] for (ki, kj) in offs],
                                   axis=0).astype(jnp.bfloat16)              # (n_off*C, C)
        ops += [w_im2col, bias]
        side //= 2
    fc1_w = raw["fc1_w"].astype(jnp.float32)
    fc1_b = raw["fc1_b"].reshape(1, 64).astype(jnp.float32)
    fc2_w = raw["fc2_w"].T.astype(jnp.float32)          # (1, 64)
    fc2_b = raw["fc2_b"].reshape(1, 1).astype(jnp.float32)
    return tuple(ops) + (fc1_w, fc1_b, fc2_w, fc2_b)


def reference_forward(x, raw):
    """Pure-JAX f32 reference of the PyTorch forward (eval mode)."""
    b, t, hh, ww, c = x.shape
    out = x.reshape(b * t, hh, ww, c).astype(jnp.float32)     # NHWC
    for l in range(3):
        out = jax.lax.conv_general_dilated(
            out, raw["conv_w"][l], window_strides=(2, 2),
            padding=((1, 1), (1, 1)),
            dimension_numbers=("NHWC", "HWIO", "NHWC"))
        out = out + raw["conv_b"][l]
        scale = raw["bn_gamma"][l] / jnp.sqrt(raw["bn_var"][l] + BN_EPS)
        out = (out - raw["bn_mean"][l]) * scale + raw["bn_beta"][l]
        out = jnp.where(out >= 0, out, NEG_SLOPE * out)
    out = out.reshape(b * t, C)
    z = jnp.maximum(out @ raw["fc1_w"] + raw["fc1_b"], 0.0)
    y = z @ raw["fc2_w"] + raw["fc2_b"]
    return y.reshape(b, t)


if __name__ == "__main__":
    # TODO(synk): temporal=True branch (TransformerEncoder stack + positional
    # encoding + banded mask) is not exercised by the default module config and
    # is not implemented here.
    key = jax.random.PRNGKey(0)
    k_param, k_x = jax.random.split(key)
    raw = init_raw_params(k_param)
    kparams = prepare_kernel_params(raw)

    b, t = 2, 3
    x = jax.random.normal(k_x, (b, t, SIDE, SIDE, C), jnp.float32)

    y = exist_pred_head_forward(x, kparams)
    y = jax.block_until_ready(y)
    assert y.shape == (b, t)

    y_ref = jax.block_until_ready(reference_forward(x, raw))
    np.testing.assert_allclose(np.asarray(y), np.asarray(y_ref),
                               rtol=2e-2, atol=2e-2)
    print("KERNEL_OK")
</pallas_src>

<mosaic_0001>
module attributes {stable_mosaic.version = 11 : i64} {
  func.func @_exist_pred_head_kernel(%arg0: i32, %arg1: memref<1x512x256xf32, #tpu.memory_space<vmem>>, %arg2: memref<2304x256xbf16, #tpu.memory_space<vmem>>, %arg3: memref<1x256xf32, #tpu.memory_space<vmem>>, %arg4: memref<2304x256xbf16, #tpu.memory_space<vmem>>, %arg5: memref<1x256xf32, #tpu.memory_space<vmem>>, %arg6: memref<1024x256xbf16, #tpu.memory_space<vmem>>, %arg7: memref<1x256xf32, #tpu.memory_space<vmem>>, %arg8: memref<256x64xf32, #tpu.memory_space<vmem>>, %arg9: memref<1x64xf32, #tpu.memory_space<vmem>>, %arg10: memref<1x64xf32, #tpu.memory_space<vmem>>, %arg11: memref<1x1xf32, #tpu.memory_space<vmem>>, %arg12: memref<1x8x128xf32, #tpu.memory_space<vmem>>) attributes {dimension_semantics = [#tpu.dimension_semantics<parallel>], iteration_bounds = array<i64: 1>, scalar_prefetch = 0 : i64, scratch_operands = 0 : i64, tpu.core_type = #tpu.core_type<tc>, window_params = [{transform_indices = @transform_0, window_bounds = array<i64: 1, 512, 256>}, {pipeline_mode = #tpu.pipeline_mode<synchronous>, transform_indices = @transform_1, window_bounds = array<i64: 2304, 256>}, {pipeline_mode = #tpu.pipeline_mode<synchronous>, transform_indices = @transform_2, window_bounds = array<i64: 1, 256>}, {pipeline_mode = #tpu.pipeline_mode<synchronous>, transform_indices = @transform_3, window_bounds = array<i64: 2304, 256>}, {pipeline_mode = #tpu.pipeline_mode<synchronous>, transform_indices = @transform_4, window_bounds = array<i64: 1, 256>}, {pipeline_mode = #tpu.pipeline_mode<synchronous>, transform_indices = @transform_5, window_bounds = array<i64: 1024, 256>}, {pipeline_mode = #tpu.pipeline_mode<synchronous>, transform_indices = @transform_6, window_bounds = array<i64: 1, 256>}, {pipeline_mode = #tpu.pipeline_mode<synchronous>, transform_indices = @transform_7, window_bounds = array<i64: 256, 64>}, {pipeline_mode = #tpu.pipeline_mode<synchronous>, transform_indices = @transform_8, window_bounds = array<i64: 1, 64>}, {pipeline_mode = #tpu.pipeline_mode<synchronous>, transform_indices = @transform_9, window_bounds = array<i64: 1, 64>}, {pipeline_mode = #tpu.pipeline_mode<synchronous>, transform_indices = @transform_10, window_bounds = array<i64: 1, 1>}, {transform_indices = @transform_11, window_bounds = array<i64: 1, 8, 128>}]} {
    %c0 = arith.constant 0 : index
    %c0_0 = arith.constant 0 : index
    %c0_1 = arith.constant 0 : index
    %0 = vector.load %arg1[%c0, %c0_0, %c0_1] : memref<1x512x256xf32, #tpu.memory_space<vmem>>, vector<1x512x256xf32>
    %1 = vector.shape_cast %0 : vector<1x512x256xf32> to vector<512x256xf32>
    %cst = arith.constant 0.000000e+00 : f32
    %2 = vector.broadcast %cst : f32 to vector<8x256xf32>
    %cst_2 = arith.constant 0.000000e+00 : f32
    %3 = vector.broadcast %cst_2 : f32 to vector<8x256xf32>
    %cst_3 = arith.constant 0.000000e+00 : f32
    %4 = vector.broadcast %cst_3 : f32 to vector<8x256xf32>
    %cst_4 = arith.constant 0.000000e+00 : f32
    %5 = vector.broadcast %cst_4 : f32 to vector<8x256xf32>
    %cst_5 = arith.constant 0.000000e+00 : f32
    %6 = vector.broadcast %cst_5 : f32 to vector<8x256xf32>
    %7 = vector.extract_strided_slice %1 {offsets = [72, 0], sizes = [8, 256], strides = [1, 1]} : vector<512x256xf32> to vector<8x256xf32>
    %8 = vector.extract_strided_slice %1 {offsets = [88, 0], sizes = [8, 256], strides = [1, 1]} : vector<512x256xf32> to vector<8x256xf32>
    %9 = vector.extract_strided_slice %1 {offsets = [104, 0], sizes = [8, 256], strides = [1, 1]} : vector<512x256xf32> to vector<8x256xf32>
    %cst_6 = arith.constant 0.000000e+00 : f32
    %10 = vector.broadcast %cst_6 : f32 to vector<8x256xf32>
    %11 = vector.extract_strided_slice %1 {offsets = [200, 0], sizes = [8, 256], strides = [1, 1]} : vector<512x256xf32> to vector<8x256xf32>
    %12 = vector.extract_strided_slice %1 {offsets = [216, 0], sizes = [8, 256], strides = [1, 1]} : vector<512x256xf32> to vector<8x256xf32>
    %13 = vector.extract_strided_slice %1 {offsets = [232, 0], sizes = [8, 256], strides = [1, 1]} : vector<512x256xf32> to vector<8x256xf32>
    %cst_7 = arith.constant 0.000000e+00 : f32
    %14 = vector.broadcast %cst_7 : f32 to vector<8x256xf32>
    %15 = vector.extract_strided_slice %1 {offsets = [328, 0], sizes = [8, 256], strides = [1, 1]} : vector<512x256xf32> to vector<8x256xf32>
    %16 = vector.extract_strided_slice %1 {offsets = [344, 0], sizes = [8, 256], strides = [1, 1]} : vector<512x256xf32> to vector<8x256xf32>
    %17 = vector.extract_strided_slice %1 {offsets = [360, 0], sizes = [8, 256], strides = [1, 1]} : vector<512x256xf32> to vector<8x256xf32>
    %18 = tpu.concatenate %2, %3, %4, %5, %6, %7, %8, %9, %10, %11, %12, %13, %14, %15, %16, %17 in 0 : vector<8x256xf32>, vector<8x256xf32>, vector<8x256xf32>, vector<8x256xf32>, vector<8x256xf32>, vector<8x256xf32>, vector<8x256xf32>, vector<8x256xf32>, vector<8x256xf32>, vector<8x256xf32>, vector<8x256xf32>, vector<8x256xf32>, vector<8x256xf32>, vector<8x256xf32>, vector<8x256xf32>, vector<8x256xf32> -> vector<128x256xf32>
    %cst_8 = arith.constant 0.000000e+00 : f32
    %19 = vector.broadcast %cst_8 : f32 to vector<8x256xf32>
    %cst_9 = arith.constant 0.000000e+00 : f32
    %20 = vector.broadcast %cst_9 : f32 to vector<8x256xf32>
    %cst_10 = arith.constant 0.000000e+00 : f32
    %21 = vector.broadcast %cst_10 : f32 to vector<8x256xf32>
    %cst_11 = arith.constant 0.000000e+00 : f32
    %22 = vector.broadcast %cst_11 : f32 to vector<8x256xf32>
    %23 = vector.extract_strided_slice %1 {offsets = [64, 0], sizes = [8, 256], strides = [1, 1]} : vector<512x256xf32> to vector<8x256xf32>
    %24 = vector.extract_strided_slice %1 {offsets = [80, 0], sizes = [8, 256], strides = [1, 1]} : vector<512x256xf32> to vector<8x256xf32>
    %25 = vector.extract_strided_slice %1 {offsets = [96, 0], sizes = [8, 256], strides = [1, 1]} : vector<512x256xf32> to vector<8x256xf32>
    %26 = vector.extract_strided_slice %1 {offsets = [112, 0], sizes = [8, 256], strides = [1, 1]} : vector<512x256xf32> to vector<8x256xf32>
    %27 = vector.extract_strided_slice %1 {offsets = [192, 0], sizes = [8, 256], strides = [1, 1]} : vector<512x256xf32> to vector<8x256xf32>
    %28 = vector.extract_strided_slice %1 {offsets = [208, 0], sizes = [8, 256], strides = [1, 1]} : vector<512x256xf32> to vector<8x256xf32>
    %29 = vector.extract_strided_slice %1 {offsets = [224, 0], sizes = [8, 256], strides = [1, 1]} : vector<512x256xf32> to vector<8x256xf32>
    %30 = vector.extract_strided_slice %1 {offsets = [240, 0], sizes = [8, 256], strides = [1, 1]} : vector<512x256xf32> to vector<8x256xf32>
    %31 = vector.extract_strided_slice %1 {offsets = [320, 0], sizes = [8, 256], strides = [1, 1]} : vector<512x256xf32> to vector<8x256xf32>
    %32 = vector.extract_strided_slice %1 {offsets = [336, 0], sizes = [8, 256], strides = [1, 1]} : vector<512x256xf32> to vector<8x256xf32>
    %33 = vector.extract_strided_slice %1 {offsets = [352, 0], sizes = [8, 256], strides = [1, 1]} : vector<512x256xf32> to vector<8x256xf32>
    %34 = vector.extract_strided_slice %1 {offsets = [368, 0], sizes = [8, 256], strides = [1, 1]} : vector<512x256xf32> to vector<8x256xf32>
    %35 = tpu.concatenate %19, %20, %21, %22, %23, %24, %25, %26, %27, %28, %29, %30, %31, %32, %33, %34 in 0 : vector<8x256xf32>, vector<8x256xf32>, vector<8x256xf32>, vector<8x256xf32>, vector<8x256xf32>, vector<8x256xf32>, vector<8x256xf32>, vector<8x256xf32>, vector<8x256xf32>, vector<8x256xf32>, vector<8x256xf32>, vector<8x256xf32>, vector<8x256xf32>, vector<8x256xf32>, vector<8x256xf32>, vector<8x256xf32> -> vector<128x256xf32>
    %cst_12 = arith.constant 0.000000e+00 : f32
    %36 = vector.broadcast %cst_12 : f32 to vector<8x256xf32>
    %cst_13 = arith.constant 0.000000e+00 : f32
    %37 = vector.broadcast %cst_13 : f32 to vector<8x256xf32>
    %cst_14 = arith.constant 0.000000e+00 : f32
    %38 = vector.broadcast %cst_14 : f32 to vector<8x256xf32>
    %cst_15 = arith.constant 0.000000e+00 : f32
    %39 = vector.broadcast %cst_15 : f32 to vector<8x256xf32>
    %40 = vector.extract_strided_slice %1 {offsets = [72, 0], sizes = [8, 256], strides = [1, 1]} : vector<512x256xf32> to vector<8x256xf32>
    %41 = vector.extract_strided_slice %1 {offsets = [88, 0], sizes = [8, 256], strides = [1, 1]} : vector<512x256xf32> to vector<8x256xf32>
    %42 = vector.extract_strided_slice %1 {offsets = [104, 0], sizes = [8, 256], strides = [1, 1]} : vector<512x256xf32> to vector<8x256xf32>
    %43 = vector.extract_strided_slice %1 {offsets = [120, 0], sizes = [8, 256], strides = [1, 1]} : vector<512x256xf32> to vector<8x256xf32>
    %44 = vector.extract_strided_slice %1 {offsets = [200, 0], sizes = [8, 256], strides = [1, 1]} : vector<512x256xf32> to vector<8x256xf32>
    %45 = vector.extract_strided_slice %1 {offsets = [216, 0], sizes = [8, 256], strides = [1, 1]} : vector<512x256xf32> to vector<8x256xf32>
    %46 = vector.extract_strided_slice %1 {offsets = [232, 0], sizes = [8, 256], strides = [1, 1]} : vector<512x256xf32> to vector<8x256xf32>
    %47 = vector.extract_strided_slice %1 {offsets = [248, 0], sizes = [8, 256], strides = [1, 1]} : vector<512x256xf32> to vector<8x256xf32>
    %48 = vector.extract_strided_slice %1 {offsets = [328, 0], sizes = [8, 256], strides = [1, 1]} : vector<512x256xf32> to vector<8x256xf32>
    %49 = vector.extract_strided_slice %1 {offsets = [344, 0], sizes = [8, 256], strides = [1, 1]} : vector<512x256xf32> to vector<8x256xf32>
    %50 = vector.extract_strided_slice %1 {offsets = [360, 0], sizes = [8, 256], strides = [1, 1]} : vector<512x256xf32> to vector<8x256xf32>
    %51 = vector.extract_strided_slice %1 {offsets = [376, 0], sizes = [8, 256], strides = [1, 1]} : vector<512x256xf32> to vector<8x256xf32>
    %52 = tpu.concatenate %36, %37, %38, %39, %40, %41, %42, %43, %44, %45, %46, %47, %48, %49, %50, %51 in 0 : vector<8x256xf32>, vector<8x256xf32>, vector<8x256xf32>, vector<8x256xf32>, vector<8x256xf32>, vector<8x256xf32>, vector<8x256xf32>, vector<8x256xf32>, vector<8x256xf32>, vector<8x256xf32>, vector<8x256xf32>, vector<8x256xf32>, vector<8x256xf32>, vector<8x256xf32>, vector<8x256xf32>, vector<8x256xf32> -> vector<128x256xf32>
    %cst_16 = arith.constant 0.000000e+00 : f32
    %53 = vector.broadcast %cst_16 : f32 to vector<8x256xf32>
    %54 = vector.extract_strided_slice %1 {offsets = [8, 0], sizes = [8, 256], strides = [1, 1]} : vector<512x256xf32> to vector<8x256xf32>
    %55 = vector.extract_strided_slice %1 {offsets = [24, 0], sizes = [8, 256], strides = [1, 1]} : vector<512x256xf32> to vector<8x256xf32>
    %56 = vector.extract_strided_slice %1 {offsets = [40, 0], sizes = [8, 256], strides = [1, 1]} : vector<512x256xf32> to vector<8x256xf32>
    %cst_17 = arith.constant 0.000000e+00 : f32
    %57 = vector.broadcast %cst_17 : f32 to vector<8x256xf32>
    %58 = vector.extract_strided_slice %1 {offsets = [136, 0], sizes = [8, 256], strides = [1, 1]} : vector<512x256xf32> to vector<8x256xf32>
    %59 = vector.extract_strided_slice %1 {offsets = [152, 0], sizes = [8, 256], strides = [1, 1]} : vector<512x256xf32> to vector<8x256xf32>
    %60 = vector.extract_strided_slice %1 {offsets = [168, 0], sizes = [8, 256], strides = [1, 1]} : vector<512x256xf32> to vector<8x256xf32>
    %cst_18 = arith.constant 0.000000e+00 : f32
    %61 = vector.broadcast %cst_18 : f32 to vector<8x256xf32>
    %62 = vector.extract_strided_slice %1 {offsets = [264, 0], sizes = [8, 256], strides = [1, 1]} : vector<512x256xf32> to vector<8x256xf32>
    %63 = vector.extract_strided_slice %1 {offsets = [280, 0], sizes = [8, 256], strides = [1, 1]} : vector<512x256xf32> to vector<8x256xf32>
    %64 = vector.extract_strided_slice %1 {offsets = [296, 0], sizes = [8, 256], strides = [1, 1]} : vector<512x256xf32> to vector<8x256xf32>
    %cst_19 = arith.constant 0.000000e+00 : f32
    %65 = vector.broadcast %cst_19 : f32 to vector<8x256xf32>
    %66 = vector.extract_strided_slice %1 {offsets = [392, 0], sizes = [8, 256], strides = [1, 1]} : vector<512x256xf32> to vector<8x256xf32>
    %67 = vector.extract_strided_slice %1 {offsets = [408, 0], sizes = [8, 256], strides = [1, 1]} : vector<512x256xf32> to vector<8x256xf32>
    %68 = vector.extract_strided_slice %1 {offsets = [424, 0], sizes = [8, 256], strides = [1, 1]} : vector<512x256xf32> to vector<8x256xf32>
    %69 = tpu.concatenate %53, %54, %55, %56, %57, %58, %59, %60, %61, %62, %63, %64, %65, %66, %67, %68 in 0 : vector<8x256xf32>, vector<8x256xf32>, vector<8x256xf32>, vector<8x256xf32>, vector<8x256xf32>, vector<8x256xf32>, vector<8x256xf32>, vector<8x256xf32>, vector<8x256xf32>, vector<8x256xf32>, vector<8x256xf32>, vector<8x256xf32>, vector<8x256xf32>, vector<8x256xf32>, vector<8x256xf32>, vector<8x256xf32> -> vector<128x256xf32>
    %70 = vector.extract_strided_slice %1 {offsets = [0, 0], sizes = [8, 256], strides = [1, 1]} : vector<512x256xf32> to vector<8x256xf32>
    %71 = vector.extract_strided_slice %1 {offsets = [16, 0], sizes = [8, 256], strides = [1, 1]} : vector<512x256xf32> to vector<8x256xf32>
    %72 = vector.extract_strided_slice %1 {offsets = [32, 0], sizes = [8, 256], strides = [1, 1]} : vector<512x256xf32> to vector<8x256xf32>
    %73 = vector.extract_strided_slice %1 {offsets = [48, 0], sizes = [8, 256], strides = [1, 1]} : vector<512x256xf32> to vector<8x256xf32>
    %74 = vector.extract_strided_slice %1 {offsets = [128, 0], sizes = [8, 256], strides = [1, 1]} : vector<512x256xf32> to vector<8x256xf32>
    %75 = vector.extract_strided_slice %1 {offsets = [144, 0], sizes = [8, 256], strides = [1, 1]} : vector<512x256xf32> to vector<8x256xf32>
    %76 = vector.extract_strided_slice %1 {offsets = [160, 0], sizes = [8, 256], strides = [1, 1]} : vector<512x256xf32> to vector<8x256xf32>
    %77 = vector.extract_strided_slice %1 {offsets = [176, 0], sizes = [8, 256], strides = [1, 1]} : vector<512x256xf32> to vector<8x256xf32>
    %78 = vector.extract_strided_slice %1 {offsets = [256, 0], sizes = [8, 256], strides = [1, 1]} : vector<512x256xf32> to vector<8x256xf32>
    %79 = vector.extract_strided_slice %1 {offsets = [272, 0], sizes = [8, 256], strides = [1, 1]} : vector<512x256xf32> to vector<8x256xf32>
    %80 = vector.extract_strided_slice %1 {offsets = [288, 0], sizes = [8, 256], strides = [1, 1]} : vector<512x256xf32> to vector<8x256xf32>
    %81 = vector.extract_strided_slice %1 {offsets = [304, 0], sizes = [8, 256], strides = [1, 1]} : vector<512x256xf32> to vector<8x256xf32>
    %82 = vector.extract_strided_slice %1 {offsets = [384, 0], sizes = [8, 256], strides = [1, 1]} : vector<512x256xf32> to vector<8x256xf32>
    %83 = vector.extract_strided_slice %1 {offsets = [400, 0], sizes = [8, 256], strides = [1, 1]} : vector<512x256xf32> to vector<8x256xf32>
    %84 = vector.extract_strided_slice %1 {offsets = [416, 0], sizes = [8, 256], strides = [1, 1]} : vector<512x256xf32> to vector<8x256xf32>
    %85 = vector.extract_strided_slice %1 {offsets = [432, 0], sizes = [8, 256], strides = [1, 1]} : vector<512x256xf32> to vector<8x256xf32>
    %86 = tpu.concatenate %70, %71, %72, %73, %74, %75, %76, %77, %78, %79, %80, %81, %82, %83, %84, %85 in 0 : vector<8x256xf32>, vector<8x256xf32>, vector<8x256xf32>, vector<8x256xf32>, vector<8x256xf32>, vector<8x256xf32>, vector<8x256xf32>, vector<8x256xf32>, vector<8x256xf32>, vector<8x256xf32>, vector<8x256xf32>, vector<8x256xf32>, vector<8x256xf32>, vector<8x256xf32>, vector<8x256xf32>, vector<8x256xf32> -> vector<128x256xf32>
    %87 = vector.extract_strided_slice %1 {offsets = [8, 0], sizes = [8, 256], strides = [1, 1]} : vector<512x256xf32> to vector<8x256xf32>
    %88 = vector.extract_strided_slice %1 {offsets = [24, 0], sizes = [8, 256], strides = [1, 1]} : vector<512x256xf32> to vector<8x256xf32>
    %89 = vector.extract_strided_slice %1 {offsets = [40, 0], sizes = [8, 256], strides = [1, 1]} : vector<512x256xf32> to vector<8x256xf32>
    %90 = vector.extract_strided_slice %1 {offsets = [56, 0], sizes = [8, 256], strides = [1, 1]} : vector<512x256xf32> to vector<8x256xf32>
    %91 = vector.extract_strided_slice %1 {offsets = [136, 0], sizes = [8, 256], strides = [1, 1]} : vector<512x256xf32> to vector<8x256xf32>
    %92 = vector.extract_strided_slice %1 {offsets = [152, 0], sizes = [8, 256], strides = [1, 1]} : vector<512x256xf32> to vector<8x256xf32>
    %93 = vector.extract_strided_slice %1 {offsets = [168, 0], sizes = [8, 256], strides = [1, 1]} : vector<512x256xf32> to vector<8x256xf32>
    %94 = vector.extract_strided_slice %1 {offsets = [184, 0], sizes = [8, 256], strides = [1, 1]} : vector<512x256xf32> to vector<8x256xf32>
    %95 = vector.extract_strided_slice %1 {offsets = [264, 0], sizes = [8, 256], strides = [1, 1]} : vector<512x256xf32> to vector<8x256xf32>
    %96 = vector.extract_strided_slice %1 {offsets = [280, 0], sizes = [8, 256], strides = [1, 1]} : vector<512x256xf32> to vector<8x256xf32>
    %97 = vector.extract_strided_slice %1 {offsets = [296, 0], sizes = [8, 256], strides = [1, 1]} : vector<512x256xf32> to vector<8x256xf32>
    %98 = vector.extract_strided_slice %1 {offsets = [312, 0], sizes = [8, 256], strides = [1, 1]} : vector<512x256xf32> to vector<8x256xf32>
    %99 = vector.extract_strided_slice %1 {offsets = [392, 0], sizes = [8, 256], strides = [1, 1]} : vector<512x256xf32> to vector<8x256xf32>
    %100 = vector.extract_strided_slice %1 {offsets = [408, 0], sizes = [8, 256], strides = [1, 1]} : vector<512x256xf32> to vector<8x256xf32>
    %101 = vector.extract_strided_slice %1 {offsets = [424, 0], sizes = [8, 256], strides = [1, 1]} : vector<512x256xf32> to vector<8x256xf32>
    %102 = vector.extract_strided_slice %1 {offsets = [440, 0], sizes = [8, 256], strides = [1, 1]} : vector<512x256xf32> to vector<8x256xf32>
    %103 = tpu.concatenate %87, %88, %89, %90, %91, %92, %93, %94, %95, %96, %97, %98, %99, %100, %101, %102 in 0 : vector<8x256xf32>, vector<8x256xf32>, vector<8x256xf32>, vector<8x256xf32>, vector<8x256xf32>, vector<8x256xf32>, vector<8x256xf32>, vector<8x256xf32>, vector<8x256xf32>, vector<8x256xf32>, vector<8x256xf32>, vector<8x256xf32>, vector<8x256xf32>, vector<8x256xf32>, vector<8x256xf32>, vector<8x256xf32> -> vector<128x256xf32>
    %cst_20 = arith.constant 0.000000e+00 : f32
    %104 = vector.broadcast %cst_20 : f32 to vector<8x256xf32>
    %105 = vector.extract_strided_slice %1 {offsets = [72, 0], sizes = [8, 256], strides = [1, 1]} : vector<512x256xf32> to vector<8x256xf32>
    %106 = vector.extract_strided_slice %1 {offsets = [88, 0], sizes = [8, 256], strides = [1, 1]} : vector<512x256xf32> to vector<8x256xf32>
    %107 = vector.extract_strided_slice %1 {offsets = [104, 0], sizes = [8, 256], strides = [1, 1]} : vector<512x256xf32> to vector<8x256xf32>
    %cst_21 = arith.constant 0.000000e+00 : f32
    %108 = vector.broadcast %cst_21 : f32 to vector<8x256xf32>
    %109 = vector.extract_strided_slice %1 {offsets = [200, 0], sizes = [8, 256], strides = [1, 1]} : vector<512x256xf32> to vector<8x256xf32>
    %110 = vector.extract_strided_slice %1 {offsets = [216, 0], sizes = [8, 256], strides = [1, 1]} : vector<512x256xf32> to vector<8x256xf32>
    %111 = vector.extract_strided_slice %1 {offsets = [232, 0], sizes = [8, 256], strides = [1, 1]} : vector<512x256xf32> to vector<8x256xf32>
    %cst_22 = arith.constant 0.000000e+00 : f32
    %112 = vector.broadcast %cst_22 : f32 to vector<8x256xf32>
    %113 = vector.extract_strided_slice %1 {offsets = [328, 0], sizes = [8, 256], strides = [1, 1]} : vector<512x256xf32> to vector<8x256xf32>
    %114 = vector.extract_strided_slice %1 {offsets = [344, 0], sizes = [8, 256], strides = [1, 1]} : vector<512x256xf32> to vector<8x256xf32>
    %115 = vector.extract_strided_slice %1 {offsets = [360, 0], sizes = [8, 256], strides = [1, 1]} : vector<512x256xf32> to vector<8x256xf32>
    %cst_23 = arith.constant 0.000000e+00 : f32
    %116 = vector.broadcast %cst_23 : f32 to vector<8x256xf32>
    %117 = vector.extract_strided_slice %1 {offsets = [456, 0], sizes = [8, 256], strides = [1, 1]} : vector<512x256xf32> to vector<8x256xf32>
    %118 = vector.extract_strided_slice %1 {offsets = [472, 0], sizes = [8, 256], strides = [1, 1]} : vector<512x256xf32> to vector<8x256xf32>
    %119 = vector.extract_strided_slice %1 {offsets = [488, 0], sizes = [8, 256], strides = [1, 1]} : vector<512x256xf32> to vector<8x256xf32>
    %120 = tpu.concatenate %104, %105, %106, %107, %108, %109, %110, %111, %112, %113, %114, %115, %116, %117, %118, %119 in 0 : vector<8x256xf32>, vector<8x256xf32>, vector<8x256xf32>, vector<8x256xf32>, vector<8x256xf32>, vector<8x256xf32>, vector<8x256xf32>, vector<8x256xf32>, vector<8x256xf32>, vector<8x256xf32>, vector<8x256xf32>, vector<8x256xf32>, vector<8x256xf32>, vector<8x256xf32>, vector<8x256xf32>, vector<8x256xf32> -> vector<128x256xf32>
    %121 = vector.extract_strided_slice %1 {offsets = [64, 0], sizes = [8, 256], strides = [1, 1]} : vector<512x256xf32> to vector<8x256xf32>
    %122 = vector.extract_strided_slice %1 {offsets = [80, 0], sizes = [8, 256], strides = [1, 1]} : vector<512x256xf32> to vector<8x256xf32>
    %123 = vector.extract_strided_slice %1 {offsets = [96, 0], sizes = [8, 256], strides = [1, 1]} : vector<512x256xf32> to vector<8x256xf32>
    %124 = vector.extract_strided_slice %1 {offsets = [112, 0], sizes = [8, 256], strides = [1, 1]} : vector<512x256xf32> to vector<8x256xf32>
    %125 = vector.extract_strided_slice %1 {offsets = [192, 0], sizes = [8, 256], strides = [1, 1]} : vector<512x256xf32> to vector<8x256xf32>
    %126 = vector.extract_strided_slice %1 {offsets = [208, 0], sizes = [8, 256], strides = [1, 1]} : vector<512x256xf32> to vector<8x256xf32>
    %127 = vector.extract_strided_slice %1 {offsets = [224, 0], sizes = [8, 256], strides = [1, 1]} : vector<512x256xf32> to vector<8x256xf32>
    %128 = vector.extract_strided_slice %1 {offsets = [240, 0], sizes = [8, 256], strides = [1, 1]} : vector<512x256xf32> to vector<8x256xf32>
    %129 = vector.extract_strided_slice %1 {offsets = [320, 0], sizes = [8, 256], strides = [1, 1]} : vector<512x256xf32> to vector<8x256xf32>
    %130 = vector.extract_strided_slice %1 {offsets = [336, 0], sizes = [8, 256], strides = [1, 1]} : vector<512x256xf32> to vector<8x256xf32>
    %131 = vector.extract_strided_slice %1 {offsets = [352, 0], sizes = [8, 256], strides = [1, 1]} : vector<512x256xf32> to vector<8x256xf32>
    %132 = vector.extract_strided_slice %1 {offsets = [368, 0], sizes = [8, 256], strides = [1, 1]} : vector<512x256xf32> to vector<8x256xf32>
    %133 = vector.extract_strided_slice %1 {offsets = [448, 0], sizes = [8, 256], strides = [1, 1]} : vector<512x256xf32> to vector<8x256xf32>
    %134 = vector.extract_strided_slice %1 {offsets = [464, 0], sizes = [8, 256], strides = [1, 1]} : vector<512x256xf32> to vector<8x256xf32>
    %135 = vector.extract_strided_slice %1 {offsets = [480, 0], sizes = [8, 256], strides = [1, 1]} : vector<512x256xf32> to vector<8x256xf32>
    %136 = vector.extract_strided_slice %1 {offsets = [496, 0], sizes = [8, 256], strides = [1, 1]} : vector<512x256xf32> to vector<8x256xf32>
    %137 = tpu.concatenate %121, %122, %123, %124, %125, %126, %127, %128, %129, %130, %131, %132, %133, %134, %135, %136 in 0 : vector<8x256xf32>, vector<8x256xf32>, vector<8x256xf32>, vector<8x256xf32>, vector<8x256xf32>, vector<8x256xf32>, vector<8x256xf32>, vector<8x256xf32>, vector<8x256xf32>, vector<8x256xf32>, vector<8x256xf32>, vector<8x256xf32>, vector<8x256xf32>, vector<8x256xf32>, vector<8x256xf32>, vector<8x256xf32> -> vector<128x256xf32>
    %138 = vector.extract_strided_slice %1 {offsets = [72, 0], sizes = [8, 256], strides = [1, 1]} : vector<512x256xf32> to vector<8x256xf32>
    %139 = vector.extract_strided_slice %1 {offsets = [88, 0], sizes = [8, 256], strides = [1, 1]} : vector<512x256xf32> to vector<8x256xf32>
    %140 = vector.extract_strided_slice %1 {offsets = [104, 0], sizes = [8, 256], strides = [1, 1]} : vector<512x256xf32> to vector<8x256xf32>
    %141 = vector.extract_strided_slice %1 {offsets = [120, 0], sizes = [8, 256], strides = [1, 1]} : vector<512x256xf32> to vector<8x256xf32>
    %142 = vector.extract_strided_slice %1 {offsets = [200, 0], sizes = [8, 256], strides = [1, 1]} : vector<512x256xf32> to vector<8x256xf32>
    %143 = vector.extract_strided_slice %1 {offsets = [216, 0], sizes = [8, 256], strides = [1, 1]} : vector<512x256xf32> to vector<8x256xf32>
    %144 = vector.extract_strided_slice %1 {offsets = [232, 0], sizes = [8, 256], strides = [1, 1]} : vector<512x256xf32> to vector<8x256xf32>
    %145 = vector.extract_strided_slice %1 {offsets = [248, 0], sizes = [8, 256], strides = [1, 1]} : vector<512x256xf32> to vector<8x256xf32>
    %146 = vector.extract_strided_slice %1 {offsets = [328, 0], sizes = [8, 256], strides = [1, 1]} : vector<512x256xf32> to vector<8x256xf32>
    %147 = vector.extract_strided_slice %1 {offsets = [344, 0], sizes = [8, 256], strides = [1, 1]} : vector<512x256xf32> to vector<8x256xf32>
    %148 = vector.extract_strided_slice %1 {offsets = [360, 0], sizes = [8, 256], strides = [1, 1]} : vector<512x256xf32> to vector<8x256xf32>
    %149 = vector.extract_strided_slice %1 {offsets = [376, 0], sizes = [8, 256], strides = [1, 1]} : vector<512x256xf32> to vector<8x256xf32>
    %150 = vector.extract_strided_slice %1 {offsets = [456, 0], sizes = [8, 256], strides = [1, 1]} : vector<512x256xf32> to vector<8x256xf32>
    %151 = vector.extract_strided_slice %1 {offsets = [472, 0], sizes = [8, 256], strides = [1, 1]} : vector<512x256xf32> to vector<8x256xf32>
    %152 = vector.extract_strided_slice %1 {offsets = [488, 0], sizes = [8, 256], strides = [1, 1]} : vector<512x256xf32> to vector<8x256xf32>
    %153 = vector.extract_strided_slice %1 {offsets = [504, 0], sizes = [8, 256], strides = [1, 1]} : vector<512x256xf32> to vector<8x256xf32>
    %154 = tpu.concatenate %138, %139, %140, %141, %142, %143, %144, %145, %146, %147, %148, %149, %150, %151, %152, %153 in 0 : vector<8x256xf32>, vector<8x256xf32>, vector<8x256xf32>, vector<8x256xf32>, vector<8x256xf32>, vector<8x256xf32>, vector<8x256xf32>, vector<8x256xf32>, vector<8x256xf32>, vector<8x256xf32>, vector<8x256xf32>, vector<8x256xf32>, vector<8x256xf32>, vector<8x256xf32>, vector<8x256xf32>, vector<8x256xf32> -> vector<128x256xf32>
    %155 = tpu.concatenate %18, %35, %52, %69, %86, %103, %120, %137, %154 in 1 : vector<128x256xf32>, vector<128x256xf32>, vector<128x256xf32>, vector<128x256xf32>, vector<128x256xf32>, vector<128x256xf32>, vector<128x256xf32>, vector<128x256xf32>, vector<128x256xf32> -> vector<128x2304xf32>
    %156 = arith.truncf %155 : vector<128x2304xf32> to vector<128x2304xbf16>
    %c0_24 = arith.constant 0 : index
    %c0_25 = arith.constant 0 : index
    %157 = vector.load %arg2[%c0_24, %c0_25] : memref<2304x256xbf16, #tpu.memory_space<vmem>>, vector<2304x256xbf16>
    %cst_26 = arith.constant dense<0.000000e+00> : vector<128x256xf32>
    %158 = tpu.matmul %156, %157, %cst_26 {dimension_numbers = #tpu.dot_dimension_numbers<[1], [0], [0], [1], [0, 0, 1, 1], [], []>} : vector<128x2304xbf16>, vector<2304x256xbf16>, vector<128x256xf32> -> vector<128x256xf32>
    %c0_27 = arith.constant 0 : index
    %c0_28 = arith.constant 0 : index
    %159 = vector.load %arg3[%c0_27, %c0_28] : memref<1x256xf32, #tpu.memory_space<vmem>>, vector<1x256xf32>
    %160 = vector.broadcast %159 : vector<1x256xf32> to vector<128x256xf32>
    %161 = arith.addf %158, %160 : vector<128x256xf32>
    %cst_29 = arith.constant 0.000000e+00 : f32
    %162 = vector.broadcast %cst_29 : f32 to vector<128x256xf32>
    %163 = arith.cmpf oge, %161, %162 : vector<128x256xf32>
    %cst_30 = arith.constant 0.00999999977 : f32
    %164 = vector.broadcast %cst_30 : f32 to vector<128x256xf32>
    %165 = arith.mulf %164, %161 : vector<128x256xf32>
    %166 = arith.select %163, %161, %165 : vector<128x256xi1>, vector<128x256xf32>
    %cst_31 = arith.constant 0.000000e+00 : f32
    %167 = vector.broadcast %cst_31 : f32 to vector<8x256xf32>
    %cst_32 = arith.constant 0.000000e+00 : f32
    %168 = vector.broadcast %cst_32 : f32 to vector<8x256xf32>
    %cst_33 = arith.constant 0.000000e+00 : f32
    %169 = vector.broadcast %cst_33 : f32 to vector<8x256xf32>
    %170 = vector.extract_strided_slice %166 {offsets = [40, 0], sizes = [8, 256], strides = [1, 1]} : vector<128x256xf32> to vector<8x256xf32>
    %171 = tpu.concatenate %167, %168, %169, %170 in 0 : vector<8x256xf32>, vector<8x256xf32>, vector<8x256xf32>, vector<8x256xf32> -> vector<32x256xf32>
    %cst_34 = arith.constant 0.000000e+00 : f32
    %172 = vector.broadcast %cst_34 : f32 to vector<8x256xf32>
    %cst_35 = arith.constant 0.000000e+00 : f32
    %173 = vector.broadcast %cst_35 : f32 to vector<8x256xf32>
    %174 = vector.extract_strided_slice %166 {offsets = [32, 0], sizes = [8, 256], strides = [1, 1]} : vector<128x256xf32> to vector<8x256xf32>
    %175 = vector.extract_strided_slice %166 {offsets = [48, 0], sizes = [8, 256], strides = [1, 1]} : vector<128x256xf32> to vector<8x256xf32>
    %176 = tpu.concatenate %172, %173, %174, %175 in 0 : vector<8x256xf32>, vector<8x256xf32>, vector<8x256xf32>, vector<8x256xf32> -> vector<32x256xf32>
    %cst_36 = arith.constant 0.000000e+00 : f32
    %177 = vector.broadcast %cst_36 : f32 to vector<8x256xf32>
    %cst_37 = arith.constant 0.000000e+00 : f32
    %178 = vector.broadcast %cst_37 : f32 to vector<8x256xf32>
    %179 = vector.extract_strided_slice %166 {offsets = [40, 0], sizes = [8, 256], strides = [1, 1]} : vector<128x256xf32> to vector<8x256xf32>
    %180 = vector.extract_strided_slice %166 {offsets = [56, 0], sizes = [8, 256], strides = [1, 1]} : vector<128x256xf32> to vector<8x256xf32>
    %181 = tpu.concatenate %177, %178, %179, %180 in 0 : vector<8x256xf32>, vector<8x256xf32>, vector<8x256xf32>, vector<8x256xf32> -> vector<32x256xf32>
    %cst_38 = arith.constant 0.000000e+00 : f32
    %182 = vector.broadcast %cst_38 : f32 to vector<8x256xf32>
    %183 = vector.extract_strided_slice %166 {offsets = [8, 0], sizes = [8, 256], strides = [1, 1]} : vector<128x256xf32> to vector<8x256xf32>
    %cst_39 = arith.constant 0.000000e+00 : f32
    %184 = vector.broadcast %cst_39 : f32 to vector<8x256xf32>
    %185 = vector.extract_strided_slice %166 {offsets = [72, 0], sizes = [8, 256], strides = [1, 1]} : vector<128x256xf32> to vector<8x256xf32>
    %186 = tpu.concatenate %182, %183, %184, %185 in 0 : vector<8x256xf32>, vector<8x256xf32>, vector<8x256xf32>, vector<8x256xf32> -> vector<32x256xf32>
    %187 = vector.extract_strided_slice %166 {offsets = [0, 0], sizes = [8, 256], strides = [1, 1]} : vector<128x256xf32> to vector<8x256xf32>
    %188 = vector.extract_strided_slice %166 {offsets = [16, 0], sizes = [8, 256], strides = [1, 1]} : vector<128x256xf32> to vector<8x256xf32>
    %189 = vector.extract_strided_slice %166 {offsets = [64, 0], sizes = [8, 256], strides = [1, 1]} : vector<128x256xf32> to vector<8x256xf32>
    %190 = vector.extract_strided_slice %166 {offsets = [80, 0], sizes = [8, 256], strides = [1, 1]} : vector<128x256xf32> to vector<8x256xf32>
    %191 = tpu.concatenate %187, %188, %189, %190 in 0 : vector<8x256xf32>, vector<8x256xf32>, vector<8x256xf32>, vector<8x256xf32> -> vector<32x256xf32>
    %192 = vector.extract_strided_slice %166 {offsets = [8, 0], sizes = [8, 256], strides = [1, 1]} : vector<128x256xf32> to vector<8x256xf32>
    %193 = vector.extract_strided_slice %166 {offsets = [24, 0], sizes = [8, 256], strides = [1, 1]} : vector<128x256xf32> to vector<8x256xf32>
    %194 = vector.extract_strided_slice %166 {offsets = [72, 0], sizes = [8, 256], strides = [1, 1]} : vector<128x256xf32> to vector<8x256xf32>
    %195 = vector.extract_strided_slice %166 {offsets = [88, 0], sizes = [8, 256], strides = [1, 1]} : vector<128x256xf32> to vector<8x256xf32>
    %196 = tpu.concatenate %192, %193, %194, %195 in 0 : vector<8x256xf32>, vector<8x256xf32>, vector<8x256xf32>, vector<8x256xf32> -> vector<32x256xf32>
    %cst_40 = arith.constant 0.000000e+00 : f32
    %197 = vector.broadcast %cst_40 : f32 to vector<8x256xf32>
    %198 = vector.extract_strided_slice %166 {offsets = [40, 0], sizes = [8, 256], strides = [1, 1]} : vector<128x256xf32> to vector<8x256xf32>
    %cst_41 = arith.constant 0.000000e+00 : f32
    %199 = vector.broadcast %cst_41 : f32 to vector<8x256xf32>
    %200 = vector.extract_strided_slice %166 {offsets = [104, 0], sizes = [8, 256], strides = [1, 1]} : vector<128x256xf32> to vector<8x256xf32>
    %201 = tpu.concatenate %197, %198, %199, %200 in 0 : vector<8x256xf32>, vector<8x256xf32>, vector<8x256xf32>, vector<8x256xf32> -> vector<32x256xf32>
    %202 = vector.extract_strided_slice %166 {offsets = [32, 0], sizes = [8, 256], strides = [1, 1]} : vector<128x256xf32> to vector<8x256xf32>
    %203 = vector.extract_strided_slice %166 {offsets = [48, 0], sizes = [8, 256], strides = [1, 1]} : vector<128x256xf32> to vector<8x256xf32>
    %204 = vector.extract_strided_slice %166 {offsets = [96, 0], sizes = [8, 256], strides = [1, 1]} : vector<128x256xf32> to vector<8x256xf32>
    %205 = vector.extract_strided_slice %166 {offsets = [112, 0], sizes = [8, 256], strides = [1, 1]} : vector<128x256xf32> to vector<8x256xf32>
    %206 = tpu.concatenate %202, %203, %204, %205 in 0 : vector<8x256xf32>, vector<8x256xf32>, vector<8x256xf32>, vector<8x256xf32> -> vector<32x256xf32>
    %207 = vector.extract_strided_slice %166 {offsets = [40, 0], sizes = [8, 256], strides = [1, 1]} : vector<128x256xf32> to vector<8x256xf32>
    %208 = vector.extract_strided_slice %166 {offsets = [56, 0], sizes = [8, 256], strides = [1, 1]} : vector<128x256xf32> to vector<8x256xf32>
    %209 = vector.extract_strided_slice %166 {offsets = [104, 0], sizes = [8, 256], strides = [1, 1]} : vector<128x256xf32> to vector<8x256xf32>
    %210 = vector.extract_strided_slice %166 {offsets = [120, 0], sizes = [8, 256], strides = [1, 1]} : vector<128x256xf32> to vector<8x256xf32>
    %211 = tpu.concatenate %207, %208, %209, %210 in 0 : vector<8x256xf32>, vector<8x256xf32>, vector<8x256xf32>, vector<8x256xf32> -> vector<32x256xf32>
    %212 = tpu.concatenate %171, %176, %181, %186, %191, %196, %201, %206, %211 in 1 : vector<32x256xf32>, vector<32x256xf32>, vector<32x256xf32>, vector<32x256xf32>, vector<32x256xf32>, vector<32x256xf32>, vector<32x256xf32>, vector<32x256xf32>, vector<32x256xf32> -> vector<32x2304xf32>
    %213 = arith.truncf %212 : vector<32x2304xf32> to vector<32x2304xbf16>
    %c0_42 = arith.constant 0 : index
    %c0_43 = arith.constant 0 : index
    %214 = vector.load %arg4[%c0_42, %c0_43] : memref<2304x256xbf16, #tpu.memory_space<vmem>>, vector<2304x256xbf16>
    %cst_44 = arith.constant dense<0.000000e+00> : vector<32x256xf32>
    %215 = tpu.matmul %213, %214, %cst_44 {dimension_numbers = #tpu.dot_dimension_numbers<[1], [0], [0], [1], [0, 0, 1, 1], [], []>} : vector<32x2304xbf16>, vector<2304x256xbf16>, vector<32x256xf32> -> vector<32x256xf32>
    %c0_45 = arith.constant 0 : index
    %c0_46 = arith.constant 0 : index
    %216 = vector.load %arg5[%c0_45, %c0_46] : memref<1x256xf32, #tpu.memory_space<vmem>>, vector<1x256xf32>
    %217 = vector.broadcast %216 : vector<1x256xf32> to vector<32x256xf32>
    %218 = arith.addf %215, %217 : vector<32x256xf32>
    %cst_47 = arith.constant 0.000000e+00 : f32
    %219 = vector.broadcast %cst_47 : f32 to vector<32x256xf32>
    %220 = arith.cmpf oge, %218, %219 : vector<32x256xf32>
    %cst_48 = arith.constant 0.00999999977 : f32
    %221 = vector.broadcast %cst_48 : f32 to vector<32x256xf32>
    %222 = arith.mulf %221, %218 : vector<32x256xf32>
    %223 = arith.select %220, %218, %222 : vector<32x256xi1>, vector<32x256xf32>
    %224 = vector.extract_strided_slice %223 {offsets = [0, 0], sizes = [8, 256], strides = [1, 1]} : vector<32x256xf32> to vector<8x256xf32>
    %225 = vector.extract_strided_slice %223 {offsets = [8, 0], sizes = [8, 256], strides = [1, 1]} : vector<32x256xf32> to vector<8x256xf32>
    %226 = vector.extract_strided_slice %223 {offsets = [16, 0], sizes = [8, 256], strides = [1, 1]} : vector<32x256xf32> to vector<8x256xf32>
    %227 = vector.extract_strided_slice %223 {offsets = [24, 0], sizes = [8, 256], strides = [1, 1]} : vector<32x256xf32> to vector<8x256xf32>
    %228 = tpu.concatenate %224, %225, %226, %227 in 1 : vector<8x256xf32>, vector<8x256xf32>, vector<8x256xf32>, vector<8x256xf32> -> vector<8x1024xf32>
    %229 = arith.truncf %228 : vector<8x1024xf32> to vector<8x1024xbf16>
    %c0_49 = arith.constant 0 : index
    %c0_50 = arith.constant 0 : index
    %230 = vector.load %arg6[%c0_49, %c0_50] : memref<1024x256xbf16, #tpu.memory_space<vmem>>, vector<1024x256xbf16>
    %cst_51 = arith.constant dense<0.000000e+00> : vector<8x256xf32>
    %231 = tpu.matmul %229, %230, %cst_51 {dimension_numbers = #tpu.dot_dimension_numbers<[1], [0], [0], [1], [0, 0, 1, 1], [], []>} : vector<8x1024xbf16>, vector<1024x256xbf16>, vector<8x256xf32> -> vector<8x256xf32>
    %c0_52 = arith.constant 0 : index
    %c0_53 = arith.constant 0 : index
    %232 = vector.load %arg7[%c0_52, %c0_53] : memref<1x256xf32, #tpu.memory_space<vmem>>, vector<1x256xf32>
    %233 = vector.broadcast %232 : vector<1x256xf32> to vector<8x256xf32>
    %234 = arith.addf %231, %233 : vector<8x256xf32>
    %cst_54 = arith.constant 0.000000e+00 : f32
    %235 = vector.broadcast %cst_54 : f32 to vector<8x256xf32>
    %236 = arith.cmpf oge, %234, %235 : vector<8x256xf32>
    %cst_55 = arith.constant 0.00999999977 : f32
    %237 = vector.broadcast %cst_55 : f32 to vector<8x256xf32>
    %238 = arith.mulf %237, %234 : vector<8x256xf32>
    %239 = arith.select %236, %234, %238 : vector<8x256xi1>, vector<8x256xf32>
    %c0_56 = arith.constant 0 : index
    %c0_57 = arith.constant 0 : index
    %240 = vector.load %arg8[%c0_56, %c0_57] : memref<256x64xf32, #tpu.memory_space<vmem>>, vector<256x64xf32>
    %cst_58 = arith.constant dense<0.000000e+00> : vector<8x64xf32>
    %241 = tpu.matmul %239, %240, %cst_58 {dimension_numbers = #tpu.dot_dimension_numbers<[1], [0], [0], [1], [0, 0, 1, 1], [], []>} : vector<8x256xf32>, vector<256x64xf32>, vector<8x64xf32> -> vector<8x64xf32>
    %c0_59 = arith.constant 0 : index
    %c0_60 = arith.constant 0 : index
    %242 = vector.load %arg9[%c0_59, %c0_60] : memref<1x64xf32, #tpu.memory_space<vmem>>, vector<1x64xf32>
    %243 = vector.broadcast %242 : vector<1x64xf32> to vector<8x64xf32>
    %244 = arith.addf %241, %243 : vector<8x64xf32>
    %cst_61 = arith.constant 0.000000e+00 : f32
    %245 = vector.broadcast %cst_61 : f32 to vector<8x64xf32>
    %246 = arith.maximumf %244, %245 : vector<8x64xf32>
    %c0_62 = arith.constant 0 : index
    %c0_63 = arith.constant 0 : index
    %247 = vector.load %arg10[%c0_62, %c0_63] : memref<1x64xf32, #tpu.memory_space<vmem>>, vector<1x64xf32>
    %248 = vector.broadcast %247 : vector<1x64xf32> to vector<8x64xf32>
    %249 = arith.mulf %246, %248 : vector<8x64xf32>
    %cst_64 = arith.constant dense<0.000000e+00> : vector<8xf32>
    %250 = vector.multi_reduction <add>, %249, %cst_64 [1] : vector<8x64xf32> to vector<8xf32>
    %251 = vector.shape_cast %250 : vector<8xf32> to vector<8x1xf32>
    %c0_65 = arith.constant 0 : index
    %c0_66 = arith.constant 0 : index
    %252 = vector.load %arg11[%c0_65, %c0_66] : memref<1x1xf32, #tpu.memory_space<vmem>>, vector<1x1xf32>
    %253 = vector.broadcast %252 : vector<1x1xf32> to vector<8x1xf32>
    %254 = arith.addf %251, %253 : vector<8x1xf32>
    %255 = vector.shape_cast %254 : vector<8x1xf32> to vector<8x1xf32>
    %256 = vector.broadcast %255 : vector<8x1xf32> to vector<8x128xf32>
    %c0_67 = arith.constant 0 : index
    %c0_68 = arith.constant 0 : index
    %c0_69 = arith.constant 0 : index
    %257 = vector.load %arg12[%c0_67, %c0_68, %c0_69] : memref<1x8x128xf32, #tpu.memory_space<vmem>>, vector<1x8x128xf32>
    %258 = vector.shape_cast %257 : vector<1x8x128xf32> to vector<8x128xf32>
    %259 = vector.shape_cast %256 : vector<8x128xf32> to vector<1x8x128xf32>
    tpu.vector_store %arg12[%c0_67, %c0_68, %c0_69], %259 {strides = array<i32>} : memref<1x8x128xf32, #tpu.memory_space<vmem>>, vector<1x8x128xf32>,
    return
  }
  func.func @transform_0(%arg0: i32) -> (i32, i32, i32) {
    %c0_i32 = arith.constant 0 : i32
    %c0_i32_0 = arith.constant 0 : i32
    %c0_i32_1 = arith.constant 0 : i32
    return %arg0, %c0_i32, %c0_i32_0 : i32, i32, i32
  }
  func.func @transform_1(%arg0: i32) -> (i32, i32) {
    %c0_i32 = arith.constant 0 : i32
    %c0_i32_0 = arith.constant 0 : i32
    %c0_i32_1 = arith.constant 0 : i32
    return %c0_i32, %c0_i32_0 : i32, i32
  }
  func.func @transform_2(%arg0: i32) -> (i32, i32) {
    %c0_i32 = arith.constant 0 : i32
    %c0_i32_0 = arith.constant 0 : i32
    %c0_i32_1 = arith.constant 0 : i32
    return %c0_i32, %c0_i32_0 : i32, i32
  }
  func.func @transform_3(%arg0: i32) -> (i32, i32) {
    %c0_i32 = arith.constant 0 : i32
    %c0_i32_0 = arith.constant 0 : i32
    %c0_i32_1 = arith.constant 0 : i32
    return %c0_i32, %c0_i32_0 : i32, i32
  }
  func.func @transform_4(%arg0: i32) -> (i32, i32) {
    %c0_i32 = arith.constant 0 : i32
    %c0_i32_0 = arith.constant 0 : i32
    %c0_i32_1 = arith.constant 0 : i32
    return %c0_i32, %c0_i32_0 : i32, i32
  }
  func.func @transform_5(%arg0: i32) -> (i32, i32) {
    %c0_i32 = arith.constant 0 : i32
    %c0_i32_0 = arith.constant 0 : i32
    %c0_i32_1 = arith.constant 0 : i32
    return %c0_i32, %c0_i32_0 : i32, i32
  }
  func.func @transform_6(%arg0: i32) -> (i32, i32) {
    %c0_i32 = arith.constant 0 : i32
    %c0_i32_0 = arith.constant 0 : i32
    %c0_i32_1 = arith.constant 0 : i32
    return %c0_i32, %c0_i32_0 : i32, i32
  }
  func.func @transform_7(%arg0: i32) -> (i32, i32) {
    %c0_i32 = arith.constant 0 : i32
    %c0_i32_0 = arith.constant 0 : i32
    %c0_i32_1 = arith.constant 0 : i32
    return %c0_i32, %c0_i32_0 : i32, i32
  }
  func.func @transform_8(%arg0: i32) -> (i32, i32) {
    %c0_i32 = arith.constant 0 : i32
    %c0_i32_0 = arith.constant 0 : i32
    %c0_i32_1 = arith.constant 0 : i32
    return %c0_i32, %c0_i32_0 : i32, i32
  }
  func.func @transform_9(%arg0: i32) -> (i32, i32) {
    %c0_i32 = arith.constant 0 : i32
    %c0_i32_0 = arith.constant 0 : i32
    %c0_i32_1 = arith.constant 0 : i32
    return %c0_i32, %c0_i32_0 : i32, i32
  }
  func.func @transform_10(%arg0: i32) -> (i32, i32) {
    %c0_i32 = arith.constant 0 : i32
    %c0_i32_0 = arith.constant 0 : i32
    %c0_i32_1 = arith.constant 0 : i32
    return %c0_i32, %c0_i32_0 : i32, i32
  }
  func.func @transform_11(%arg0: i32) -> (i32, i32, i32) {
    %c0_i32 = arith.constant 0 : i32
    %c0_i32_0 = arith.constant 0 : i32
    %c0_i32_1 = arith.constant 0 : i32
    return %arg0, %c0_i32, %c0_i32_0 : i32, i32, i32
  }
}

</mosaic_0001>

<bundles_post_ra>
// kernel: tpu_custom_call.1
= control target key start
LH: loop header
LB: loop body
LE: loop exit
PB: predicated region body
PF: predicated region fallthrough
CT: control target
= control target key end

     0   :  { %s10067_s0 = inlined_call_operand.hbm [shape: f32[1,512,256], index: 0, kind: input, shape index: {}]   ;;  %s10068_s1 = inlined_call_operand.hbm [shape: bf16[2304,256], index: 1, kind: input, shape index: {}]   ;;  %s10069_s2 = inlined_call_operand.hbm [shape: f32[1,256], index: 2, kind: input, shape index: {}]   ;;  %s10070_s3 = inlined_call_operand.hbm [shape: bf16[2304,256], index: 3, kind: input, shape index: {}]   ;;  %s10071_s4 = inlined_call_operand.hbm [shape: f32[1,256], index: 4, kind: input, shape index: {}]   ;;  %s10072_s5 = inlined_call_operand.hbm [shape: bf16[1024,256], index: 5, kind: input, shape index: {}]   ;;  %s10073_s6 = inlined_call_operand.hbm [shape: f32[1,256], index: 6, kind: input, shape index: {}]   ;;  %s10074_s7 = inlined_call_operand.vmem [shape: f32[256,64], index: 7, kind: input, shape index: {}]   ;;  %s10075_s8 = inlined_call_operand.hbm [shape: f32[1,64], index: 8, kind: input, shape index: {}]   ;;  %s10076_s9 = inlined_call_operand.hbm [shape: f32[1,64], index: 9, kind: input, shape index: {}]   ;;  %s10077_s10 = inlined_call_operand.<no memory space> [shape: f32[1,1], index: 10, kind: input, shape index: {}]   ;;  %s10078_s11 = inlined_call_operand.hbm [shape: f32[1,8,128], index: 11, kind: output, shape index: {}]  }
   0x1   :  { %v16_v0 = vstv %s10077_s10 }
   0x2   :  { %17 = vst [vmem:[#allocation2] sm:$0x1] %v16_v0 }
   0x3   :  { %18 = vsyncpa [#allocation4], 0 }
   0x4   :  { %19 = vsyncpa [#allocation7], 0 }
   0x5   :  { %20 = vsyncpa [#allocation10], 0 }
   0x6   :  { %21 = vsyncpa [#allocation13], 0 }
   0x7   :  { %22 = vsyncpa [#allocation16], 0 }
   0x8   :  { %23 = vsyncpa [#allocation5], 0  ;;  %s8637_s19 = smov [#allocation6]  }
   0x9   :  { %s41_s20 = sshll.u32 %s8637_s19, 4  ;;  %s42_s20 = int_to_ptr.vmem [resolvable:$true] %s41_s20 }
   0xa   :  { %s8433_s21 = scalar_lea.vmem %s42_s20, 36864  ;;  %p8438_p1 = scmp.lt.s32.totalorder %s42_s20, %s42_s20 }
   0xb   :  { %p8434_p0 = scmp.ne.s32.totalorder %s42_s20, %s8433_s21  ;;  %p8439_p2 = scmp.lt.s32.totalorder %s8433_s21, %s8433_s21 }
   0xd   :  { %p8440_p3 = por %p8439_p2, %p8438_p1 }
   0xf   :  { %p8441_p4 = pnand %p8440_p3, %p8434_p0 }
  0x11   :  { %8444 = shalt.err (!%p8441_p4)
}
  0x12   :  { %s8638_s22 = smov 128   ;;  %s8639_s23 = smov 8  }
  0x13   :  { %47 = dma.hbm_to_vmem [thread:$0]  %s10068_s1, 36864, %s42_s20, [#allocation7], %s8638_s22, %s8638_s22, %s8639_s23  }
  0x14   :  { %s8640_s25 = smov [#allocation9]   ;;  %s8641_s27 = smov [#allocation12]  }
  0x15   :  { %s63_s26 = sshll.u32 %s8640_s25, 4  ;;  %s85_s28 = sshll.u32 %s8641_s27, 4  ;;  %s64_s26 = int_to_ptr.vmem [resolvable:$true] %s63_s26  ;;  %s86_s28 = int_to_ptr.vmem [resolvable:$true] %s85_s28 }
  0x16   :  { %s8453_s29 = scalar_lea.vmem %s64_s26, 36864  ;;  %p8458_p6 = scmp.lt.s32.totalorder %s64_s26, %s64_s26 }
  0x17   :  { %p8454_p5 = scmp.ne.s32.totalorder %s64_s26, %s8453_s29  ;;  %p8459_p7 = scmp.lt.s32.totalorder %s8453_s29, %s8453_s29 }
  0x19   :  { %p8460_p8 = por %p8459_p7, %p8458_p6 }
  0x1b   :  { %p8461_p9 = pnand %p8460_p8, %p8454_p5 }
  0x1d   :  { %8464 = shalt.err (!%p8461_p9)
}
  0x1e   :  { %69 = dma.hbm_to_vmem [thread:$0]  %s10070_s3, 36864, %s64_s26, [#allocation10], %s8638_s22, %s8638_s22, %s8639_s23  }
  0x1f   :  { %s8473_s13 = scalar_lea.vmem %s86_s28, 16384  ;;  %p8478_p11 = scmp.lt.s32.totalorder %s86_s28, %s86_s28 }
  0x20   :  { %p8474_p10 = scmp.ne.s32.totalorder %s86_s28, %s8473_s13  ;;  %p8479_p12 = scmp.lt.s32.totalorder %s8473_s13, %s8473_s13 }
  0x22   :  { %p8480_p13 = por %p8479_p12, %p8478_p11 }
  0x24   :  { %p8481_p0 = pnand %p8480_p13, %p8474_p10 }
  0x26   :  { %8484 = shalt.err (!%p8481_p0)
}
  0x27   :  { %91 = dma.hbm_to_vmem [thread:$0]  %s10072_s5, 16384, %s86_s28, [#allocation13], %s8638_s22, %s8638_s22, %s8639_s23  }
  0x28   :  { %s8642_s15 = smov [#allocation15]   ;;  %s8643_s17 = smov [#allocation3]  }
  0x29   :  { %s110_s16 = sshll.u32 %s8642_s15, 4  ;;  %s29_s18 = sshll.u32 %s8643_s17, 4  ;;  %s111_s16 = int_to_ptr.vmem [resolvable:$true] %s110_s16  ;;  %s30_s18 = int_to_ptr.vmem [resolvable:$true] %s29_s18 }
  0x2a   :  { %s8493_s19 = scalar_lea.vmem %s111_s16, 16  ;;  %s8497_s3 = scalar_lea.vmem %s111_s16, 32 }
  0x2b   :  { %p8494_p1 = scmp.ne.s32.totalorder %s111_s16, %s8493_s19  ;;  %p8498_p2 = scmp.lt.s32.totalorder %s111_s16, %s111_s16 }
  0x2c   :  { %p8499_p3 = scmp.lt.s32.totalorder %s8497_s3, %s8493_s19 }
  0x2e   :  { %p8500_p4 = por %p8499_p3, %p8498_p2 }
  0x30   :  { %p8501_p5 = pnand %p8500_p4, %p8494_p1 }
  0x32   :  { %8504 = shalt.err (!%p8501_p5)
}
  0x33   :  { %113 = dma.hbm_to_vmem [thread:$0]  %s10075_s8, 16, %s111_s16, [#allocation16]  }
  0x34   :  { %s8513_s10 = scalar_lea.vmem %s30_s18, 16384  ;;  %p8518_p7 = scmp.lt.s32.totalorder %s30_s18, %s30_s18 }
  0x35   :  { %p8514_p6 = scmp.ne.s32.totalorder %s30_s18, %s8513_s10  ;;  %p8519_p8 = scmp.lt.s32.totalorder %s8513_s10, %s8513_s10 }
  0x37   :  { %p8520_p9 = por %p8519_p8, %p8518_p7 }
  0x39   :  { %p8521_p10 = pnand %p8520_p9, %p8514_p6 }
  0x3b   :  { %8524 = shalt.err (!%p8521_p10)
}
  0x3c   :  { %s8644_s5 = smov 256   ;;  %s8645_s22 = smov 16  }
  0x3d   :  { %35 = dma.hbm_to_vmem [thread:$0]  %s10067_s0, 16384, %s30_s18, [#allocation4], %s8644_s5, %s8644_s5, %s8645_s22  }
  0x3e   :  { %s8646_s25 = smov [#allocation8]   ;;  %s8647_s27 = smov [#allocation11]  }
  0x3f   :  { %s54_s26 = sshll.u32 %s8646_s25, 4  ;;  %s76_s28 = sshll.u32 %s8647_s27, 4  ;;  %s55_s26 = int_to_ptr.vmem [resolvable:$true] %s54_s26  ;;  %s77_s28 = int_to_ptr.vmem [resolvable:$true] %s76_s28 }
  0x40   :  { %s8533_s8 = scalar_lea.vmem %s55_s26, 32  ;;  %p8538_p12 = scmp.lt.s32.totalorder %s55_s26, %s55_s26 }
  0x41   :  { %p8534_p11 = scmp.ne.s32.totalorder %s55_s26, %s8533_s8  ;;  %p8539_p13 = scmp.lt.s32.totalorder %s8533_s8, %s8533_s8 }
  0x43   :  { %p8540_p0 = por %p8539_p13, %p8538_p12 }
  0x45   :  { %p8541_p1 = pnand %p8540_p0, %p8534_p11 }
  0x47   :  { %8544 = shalt.err (!%p8541_p1)
}
  0x48   :  { %57 = dma.hbm_to_vmem [thread:$0]  %s10069_s2, 32, %s55_s26, [#allocation7]  }
  0x49   :  { %s8553_s12 = scalar_lea.vmem %s77_s28, 32  ;;  %p8558_p3 = scmp.lt.s32.totalorder %s77_s28, %s77_s28 }
  0x4a   :  { %p8554_p2 = scmp.ne.s32.totalorder %s77_s28, %s8553_s12  ;;  %p8559_p4 = scmp.lt.s32.totalorder %s8553_s12, %s8553_s12 }
  0x4c   :  { %p8560_p5 = por %p8559_p4, %p8558_p3 }
  0x4e   :  { %p8561_p6 = pnand %p8560_p5, %p8554_p2 }
  0x50   :  { %8564 = shalt.err (!%p8561_p6)
}
  0x51   :  { %79 = dma.hbm_to_vmem [thread:$0]  %s10071_s4, 32, %s77_s28, [#allocation10]  }
  0x52   :  { %s8648_s1 = smov [#allocation14]   ;;  %s8649_s15 = smov [#allocation17]  }
  0x53   :  { %s98_s14 = sshll.u32 %s8648_s1, 4  ;;  %s120_s16 = sshll.u32 %s8649_s15, 4  ;;  %s99_s14 = int_to_ptr.vmem [resolvable:$true] %s98_s14  ;;  %s121_s16 = int_to_ptr.vmem [resolvable:$true] %s120_s16 }
  0x54   :  { %s8573_s17 = scalar_lea.vmem %s99_s14, 32  ;;  %p8578_p8 = scmp.lt.s32.totalorder %s99_s14, %s99_s14 }
  0x55   :  { %p8574_p7 = scmp.ne.s32.totalorder %s99_s14, %s8573_s17  ;;  %p8579_p9 = scmp.lt.s32.totalorder %s8573_s17, %s8573_s17 }
  0x57   :  { %p8580_p10 = por %p8579_p9, %p8578_p8 }
  0x59   :  { %p8581_p11 = pnand %p8580_p10, %p8574_p7 }
  0x5b   :  { %8584 = shalt.err (!%p8581_p11)
}
  0x5c   :  { %101 = dma.hbm_to_vmem [thread:$0]  %s10073_s6, 32, %s99_s14, [#allocation13]  }
  0x5d   :  { %s8593_s19 = scalar_lea.vmem %s121_s16, 16  ;;  %s8597_s4 = scalar_lea.vmem %s121_s16, 32 }
  0x5e   :  { %p8594_p12 = scmp.ne.s32.totalorder %s121_s16, %s8593_s19  ;;  %p8598_p13 = scmp.lt.s32.totalorder %s121_s16, %s121_s16 }
  0x5f   :  { %p8599_p0 = scmp.lt.s32.totalorder %s8597_s4, %s8593_s19 }
  0x61   :  { %p8600_p1 = por %p8599_p0, %p8598_p13 }
  0x63   :  { %p8601_p2 = pnand %p8600_p1, %p8594_p12 }
  0x65   :  { %8604 = shalt.err (!%p8601_p2)
}
  0x66   :  { %123 = dma.hbm_to_vmem [thread:$0]  %s10076_s9, 16, %s121_s16, [#allocation16]  }
  0x67   :  { %8625 = dma.done.wait [#allocation4], 16384  }
  0x68   :  { %8626 = vsyncadd [#allocation4], 4294950912 }
  0x69   :  { %8627 = dma.done.wait [#allocation7], 36896  }
  0x6a   :  { %8628 = vsyncadd [#allocation7], 4294930400 }
  0x6b   :  { %8629 = dma.done.wait [#allocation10], 36896  }
  0x6c   :  { %8630 = vsyncadd [#allocation10], 4294930400 }
  0x6d   :  { %8631 = dma.done.wait [#allocation13], 16416  }
  0x6e   :  { %8632 = vsyncadd [#allocation13], 4294950880 }
  0x6f   :  { %8633 = dma.done.wait [#allocation16], 32  }
  0x70   :  { %8634 = vsyncadd [#allocation16], 4294967264  ;;  %v10079_v1 = vmov 0.0|0.0   ;;  %v7369_v2 = vld [vmem:[#allocation6 + $0x74] ss:$8 sps:$4 sm:$0xff]  }
  0x71   :  { %2150 = vmatprep.mubr.bf16.mxu0 %v10079_v1  ;;  %2263 = vmatprep.mubr.bf16.mxu1 %v10079_v1  ;;  %v7371_v3 = vld [vmem:[#allocation6 + $0x70] ss:$8 sps:$4 sm:$0xff]   ;;  %v7372_v4 = vld [vmem:[#allocation6 + $0x174] ss:$8 sps:$4 sm:$0xff]   ;;  %v7375_v6 = vld [vmem:[#allocation6 + $0x64] ss:$8 sps:$4 sm:$0xff]  }
  0x72   :  { %2118 = vmatprep.subr.bf16.mxu0 %v7369_v2  ;;  %v7374_v5 = vld [vmem:[#allocation6 + $0x170] ss:$8 sps:$4 sm:$0xff]   ;;  %v7377_v7 = vld [vmem:[#allocation6 + $0x60] ss:$8 sps:$4 sm:$0xff]   ;;  %2231 = vmatprep.subr.bf16.mxu1 %v7372_v4  ;;  %v7378_v8 = vld [vmem:[#allocation6 + $0x164] ss:$8 sps:$4 sm:$0xff]  }
  0x73   :  { %2119 = vmatpush1.bf16.msra.mxu0 %v7371_v3  ;;  %2232 = vmatpush1.bf16.msra.mxu1 %v7374_v5  ;;  %v7380_v9 = vld [vmem:[#allocation6 + $0x160] ss:$8 sps:$4 sm:$0xff]   ;;  %v7381_v10 = vld [vmem:[#allocation6 + $0x54] ss:$8 sps:$4 sm:$0xff]   ;;  %v7383_v11 = vld [vmem:[#allocation6 + $0x50] ss:$8 sps:$4 sm:$0xff]  }
  0x74   :  { %2120 = vmatprep.subr.bf16.mxu0 %v7375_v6  ;;  %2233 = vmatprep.subr.bf16.mxu1 %v7378_v8  ;;  %v7384_v12 = vld [vmem:[#allocation6 + $0x154] ss:$8 sps:$4 sm:$0xff]   ;;  %v7387_v13 = vld [vmem:[#allocation6 + $0x44] ss:$8 sps:$4 sm:$0xff]   ;;  %v7386_v14 = vld [vmem:[#allocation6 + $0x150] ss:$8 sps:$4 sm:$0xff]  }
  0x75   :  { %v7390_v15 = vld [vmem:[#allocation6 + $0x144] ss:$8 sps:$4 sm:$0xff]   ;;  %v7389_v16 = vld [vmem:[#allocation6 + $0x40] ss:$8 sps:$4 sm:$0xff]   ;;  %v7393_v17 = vld [vmem:[#allocation6 + $0x34] ss:$8 sps:$4 sm:$0xff]  }
  0x76   :  { %v7392_v18 = vld [vmem:[#allocation6 + $0x140] ss:$8 sps:$4 sm:$0xff]   ;;  %v7396_v19 = vld [vmem:[#allocation6 + $0x134] ss:$8 sps:$4 sm:$0xff]   ;;  %v7395_v20 = vld [vmem:[#allocation6 + $0x30] ss:$8 sps:$4 sm:$0xff]  }
  0x77   :  { %2121 = vmatpush1.bf16.msra.mxu0 %v7377_v7  ;;  %2234 = vmatpush1.bf16.msra.mxu1 %v7380_v9  ;;  %v7399_v21 = vld [vmem:[#allocation6 + $0x24] ss:$8 sps:$4 sm:$0xff]   ;;  %v7398_v22 = vld [vmem:[#allocation6 + $0x130] ss:$8 sps:$4 sm:$0xff]   ;;  %v7401_v24 = vld [vmem:[#allocation6 + $0x20] ss:$8 sps:$4 sm:$0xff]  }
  0x78   :  { %2122 = vmatprep.subr.bf16.mxu0 %v7381_v10  ;;  %2235 = vmatprep.subr.bf16.mxu1 %v7384_v12  ;;  %v7402_v23 = vld [vmem:[#allocation6 + $0x124] ss:$8 sps:$4 sm:$0xff]   ;;  %v7405_v25 = vld [vmem:[#allocation6 + $0x14] ss:$8 sps:$4 sm:$0xff]   ;;  %v7404_v26 = vld [vmem:[#allocation6 + $0x120] ss:$8 sps:$4 sm:$0xff]  }
  0x79   :  { %v7408_v27 = vld [vmem:[#allocation6 + $0x114] ss:$8 sps:$4 sm:$0xff]   ;;  %v7407_v28 = vld [vmem:[#allocation6 + $0x10] ss:$8 sps:$4 sm:$0xff]   ;;  %v7411_v29 = vld [vmem:[#allocation6 + $0x4] ss:$8 sps:$4 sm:$0xff]  }
  0x7a   :  { %v7410_v30 = vld [vmem:[#allocation6 + $0x110] ss:$8 sps:$4 sm:$0xff]   ;;  %v7414_v31 = vld [vmem:[#allocation6 + $0x104] ss:$8 sps:$4 sm:$0xff]   ;;  %v7413_v32 = vld [vmem:[#allocation6] ss:$8 sps:$4 sm:$0xff]  }
  0x7b   :  { %2123 = vmatpush1.bf16.msra.mxu0 %v7383_v11  ;;  %2236 = vmatpush1.bf16.msra.mxu1 %v7386_v14  ;;  %v7417_v33 = vld [vmem:[#allocation6 + $0xf4] ss:$8 sps:$4 sm:$0xff]   ;;  %v7416_v34 = vld [vmem:[#allocation6 + $0x100] ss:$8 sps:$4 sm:$0xff]   ;;  %v7419_v36 = vld [vmem:[#allocation6 + $0xf0] ss:$8 sps:$4 sm:$0xff]  }
  0x7c   :  { %2124 = vmatprep.subr.bf16.mxu0 %v7387_v13  ;;  %2237 = vmatprep.subr.bf16.mxu1 %v7390_v15  ;;  %v7420_v35 = vld [vmem:[#allocation6 + $0x1f4] ss:$8 sps:$4 sm:$0xff]   ;;  %v7423_v37 = vld [vmem:[#allocation6 + $0xe4] ss:$8 sps:$4 sm:$0xff]   ;;  %v7422_v38 = vld [vmem:[#allocation6 + $0x1f0] ss:$8 sps:$4 sm:$0xff]  }
  0x7d   :  { %v7426_v39 = vld [vmem:[#allocation6 + $0x1e4] ss:$8 sps:$4 sm:$0xff]   ;;  %v7425_v40 = vld [vmem:[#allocation6 + $0xe0] ss:$8 sps:$4 sm:$0xff]   ;;  %v7429_v41 = vld [vmem:[#allocation6 + $0xd4] ss:$8 sps:$4 sm:$0xff]  }
  0x7e   :  { %v7428_v42 = vld [vmem:[#allocation6 + $0x1e0] ss:$8 sps:$4 sm:$0xff]   ;;  %v7432_v43 = vld [vmem:[#allocation6 + $0x1d4] ss:$8 sps:$4 sm:$0xff]   ;;  %v7431_v44 = vld [vmem:[#allocation6 + $0xd0] ss:$8 sps:$4 sm:$0xff]  }
  0x7f   :  { %2125 = vmatpush1.bf16.msra.mxu0 %v7389_v16  ;;  %2238 = vmatpush1.bf16.msra.mxu1 %v7392_v18  ;;  %v7435_v45 = vld [vmem:[#allocation6 + $0xc4] ss:$8 sps:$4 sm:$0xff]   ;;  %v7434_v46 = vld [vmem:[#allocation6 + $0x1d0] ss:$8 sps:$4 sm:$0xff]   ;;  %v7437_v48 = vld [vmem:[#allocation6 + $0xc0] ss:$8 sps:$4 sm:$0xff]  }
  0x80   :  { %2126 = vmatprep.subr.bf16.mxu0 %v7393_v17  ;;  %2239 = vmatprep.subr.bf16.mxu1 %v7396_v19  ;;  %v7438_v47 = vld [vmem:[#allocation6 + $0x1c4] ss:$8 sps:$4 sm:$0xff]   ;;  %v7441_v49 = vld [vmem:[#allocation6 + $0xb4] ss:$8 sps:$4 sm:$0xff]   ;;  %v7440_v50 = vld [vmem:[#allocation6 + $0x1c0] ss:$8 sps:$4 sm:$0xff]  }
  0x81   :  { %v7444_v51 = vld [vmem:[#allocation6 + $0x1b4] ss:$8 sps:$4 sm:$0xff]   ;;  %v7443_v52 = vld [vmem:[#allocation6 + $0xb0] ss:$8 sps:$4 sm:$0xff]   ;;  %v7447_v53 = vld [vmem:[#allocation6 + $0xa4] ss:$8 sps:$4 sm:$0xff]  }
  0x82   :  { %v7446_v54 = vld [vmem:[#allocation6 + $0x1b0] ss:$8 sps:$4 sm:$0xff]   ;;  %v7450_v55 = vld [vmem:[#allocation6 + $0x1a4] ss:$8 sps:$4 sm:$0xff]   ;;  %v7449_v56 = vld [vmem:[#allocation6 + $0xa0] ss:$8 sps:$4 sm:$0xff]  }
  0x83   :  { %2127 = vmatpush1.bf16.msra.mxu0 %v7395_v20  ;;  %2240 = vmatpush1.bf16.msra.mxu1 %v7398_v22  ;;  %v7453_v57 = vld [vmem:[#allocation6 + $0x94] ss:$8 sps:$4 sm:$0xff]   ;;  %v7452_v58 = vld [vmem:[#allocation6 + $0x1a0] ss:$8 sps:$4 sm:$0xff]   ;;  %v7455_v60 = vld [vmem:[#allocation6 + $0x90] ss:$8 sps:$4 sm:$0xff]  }
  0x84   :  { %2128 = vmatprep.subr.bf16.mxu0 %v7399_v21  ;;  %2241 = vmatprep.subr.bf16.mxu1 %v7402_v23  ;;  %v7456_v59 = vld [vmem:[#allocation6 + $0x194] ss:$8 sps:$4 sm:$0xff]   ;;  %v7459_v61 = vld [vmem:[#allocation6 + $0x84] ss:$8 sps:$4 sm:$0xff]   ;;  %v7458_v62 = vld [vmem:[#allocation6 + $0x190] ss:$8 sps:$4 sm:$0xff]  }
  0x85   :  { %v7462_v63 = vld [vmem:[#allocation6 + $0x184] ss:$8 sps:$4 sm:$0xff]   ;;  %v7461_v0 = vld [vmem:[#allocation6 + $0x80] ss:$8 sps:$4 sm:$0xff]   ;;  %v7467_v2 = vld [vmem:[#allocation6 + $0x274] ss:$8 sps:$4 sm:$0xff]  }
  0x86   :  { %v7464_v3 = vld [vmem:[#allocation6 + $0x180] ss:$8 sps:$4 sm:$0xff]   ;;  %v7470_v4 = vld [vmem:[#allocation6 + $0x374] ss:$8 sps:$4 sm:$0xff]   ;;  %v7465_v5 = vld [vmem:[#allocation6 + $0x270] ss:$8 sps:$4 sm:$0xff]  }
  0x87   :  { %2129 = vmatpush1.bf16.msra.mxu0 %v7401_v24  ;;  %2242 = vmatpush1.bf16.msra.mxu1 %v7404_v26  ;;  %v7473_v6 = vld [vmem:[#allocation6 + $0x264] ss:$8 sps:$4 sm:$0xff]   ;;  %v7468_v7 = vld [vmem:[#allocation6 + $0x370] ss:$8 sps:$4 sm:$0xff]   ;;  %v7471_v9 = vld [vmem:[#allocation6 + $0x260] ss:$8 sps:$4 sm:$0xff]  }
  0x88   :  { %2130 = vmatprep.subr.bf16.mxu0 %v7405_v25  ;;  %2243 = vmatprep.subr.bf16.mxu1 %v7408_v27  ;;  %v7476_v8 = vld [vmem:[#allocation6 + $0x364] ss:$8 sps:$4 sm:$0xff]   ;;  %v7479_v10 = vld [vmem:[#allocation6 + $0x254] ss:$8 sps:$4 sm:$0xff]   ;;  %v7474_v12 = vld [vmem:[#allocation6 + $0x360] ss:$8 sps:$4 sm:$0xff]  }
  0x89   :  { %v8749_v11 = vld [vmem:[#allocation3 + $0x98] sm:$0xff]  ;;  %v170_v14 = vld [vmem:[#allocation3 + $0x88] sm:$0xff]  ;;  %v10081_v17 = vmov 0.0   ;;  %v8760_v25 = vld [vmem:[#allocation3 + $0x90] sm:$0xff] }
  0x8a   :  { %v7482_v13 = vld [vmem:[#allocation6 + $0x354] ss:$8 sps:$4 sm:$0xff]   ;;  %v174_v15 = vld [vmem:[#allocation3 + $0xa8] sm:$0xff]  ;;  %v7477_v16 = vld [vmem:[#allocation6 + $0x250] ss:$8 sps:$4 sm:$0xff]   ;;  %v8754_v18 = vpack.c.bf16 %v8749_v11, %v10081_v17 }
  0x8b   :  { %2131 = vmatpush1.bf16.msra.mxu0 %v7407_v28  ;;  %2244 = vmatpush1.bf16.msra.mxu1 %v7410_v30  ;;  %v7485_v19 = vld [vmem:[#allocation6 + $0x244] ss:$8 sps:$4 sm:$0xff]   ;;  %v7480_v20 = vld [vmem:[#allocation6 + $0x350] ss:$8 sps:$4 sm:$0xff]   ;;  %v8756_v21 = vpack.c.bf16 %v174_v15, %v170_v14  ;;  %v7483_v22 = vld [vmem:[#allocation6 + $0x240] ss:$8 sps:$4 sm:$0xff]  }
  0x8c   :  { %2132 = vmatprep.subr.bf16.mxu0 %v7411_v29  ;;  %2245 = vmatprep.subr.bf16.mxu1 %v7414_v31  ;;  %v7488_v23 = vld [vmem:[#allocation6 + $0x344] ss:$8 sps:$4 sm:$0xff]   ;;  %v7486_v24 = vld [vmem:[#allocation6 + $0x340] ss:$8 sps:$4 sm:$0xff]   ;;  %v7491_v26 = vld [vmem:[#allocation6 + $0x234] ss:$8 sps:$4 sm:$0xff]   ;;  %v8770_v31 = vpack.c.bf16 %v8760_v25, %v10081_v17 }
  0x8d   :  { %v169_v27 = vld [vmem:[#allocation3 + $0x80] sm:$0xff]  ;;  %v8763_v28 = vld [vmem:[#allocation3 + $0xb8] sm:$0xff] }
  0x8e   :  { %v8765_v29 = vld [vmem:[#allocation3 + $0xd8] sm:$0xff]  ;;  %v173_v30 = vld [vmem:[#allocation3 + $0xa0] sm:$0xff] }
  0x8f   :  { %2133 = vmatpush1.bf16.msra.mxu0 %v7413_v32  ;;  %2246 = vmatpush1.bf16.msra.mxu1 %v7416_v34  ;;  %v7494_v32 = vld [vmem:[#allocation6 + $0x334] ss:$8 sps:$4 sm:$0xff]   ;;  %v182_v34 = vld [vmem:[#allocation3 + $0xe8] sm:$0xff]  ;;  %v7516_v14 = vld [vmem:[#allocation6 + $0x3f0] ss:$8 sps:$4 sm:$0xff]  }
  0x90   :  { %2134 = vmatprep.subr.bf16.mxu0 %v7417_v33  ;;  %2247 = vmatprep.subr.bf16.mxu1 %v7420_v35  ;;  %v178_v33 = vld [vmem:[#allocation3 + $0xc8] sm:$0xff]  ;;  %v7489_v35 = vld [vmem:[#allocation6 + $0x230] ss:$8 sps:$4 sm:$0xff]  }
  0x91   :  { %v7521_v15 = vld [vmem:[#allocation6 + $0x2e4] ss:$8 sps:$4 sm:$0xff]  }
  0x93   :  { %2135 = vmatpush2.bf16.msra.mxu0 %v7419_v36  ;;  %2248 = vmatpush2.bf16.msra.mxu1 %v7422_v38  ;;  %v8774_v36 = vpack.c.bf16 %v8765_v29, %v8763_v28  ;;  %v7497_v38 = vld [vmem:[#allocation6 + $0x224] ss:$8 sps:$4 sm:$0xff]  }
  0x94   :  { %2136 = vmatprep.subr.bf16.mxu0 %v7423_v37  ;;  %2249 = vmatprep.subr.bf16.mxu1 %v7426_v39  ;;  %v8776_v37 = vpack.c.bf16 %v173_v30, %v169_v27  ;;  %v7492_v39 = vld [vmem:[#allocation6 + $0x330] ss:$8 sps:$4 sm:$0xff]   ;;  %v209_v27 = vld [vmem:[#allocation3 + $0x1c0] sm:$0xff] }
  0x95   :  { %v213_v30 = vld [vmem:[#allocation3 + $0x1e0] sm:$0xff] }
  0x97   :  { %2137 = vmatpush2.bf16.msra.mxu0 %v7425_v40  ;;  %2250 = vmatpush2.bf16.msra.mxu1 %v7428_v42  ;;  %v8778_v40 = vpack.c.bf16 %v182_v34, %v178_v33  ;;  %v7500_v42 = vld [vmem:[#allocation6 + $0x324] ss:$8 sps:$4 sm:$0xff]   ;;  %v7530_v33 = vld [vmem:[#allocation6 + $0x3d4] ss:$8 sps:$4 sm:$0xff]  }
  0x98   :  { %2138 = vmatprep.subr.bf16.mxu0 %v7429_v41  ;;  %2251 = vmatprep.subr.bf16.mxu1 %v7432_v43  ;;  %v7495_v41 = vld [vmem:[#allocation6 + $0x220] ss:$8 sps:$4 sm:$0xff]  }
  0x99   :  { %v7498_v43 = vld [vmem:[#allocation6 + $0x320] ss:$8 sps:$4 sm:$0xff]  }
  0x9b   :  { %2139 = vmatpush2.bf16.msra.mxu0 %v7431_v44  ;;  %2252 = vmatpush2.bf16.msra.mxu1 %v7434_v46  ;;  %v8782_v44 = vld [vmem:[#allocation3 + $0xb0] sm:$0xff] }
  0x9c   :  { %2140 = vmatprep.subr.bf16.mxu0 %v7435_v45  ;;  %2253 = vmatprep.subr.bf16.mxu1 %v7438_v47  ;;  %v8784_v45 = vld [vmem:[#allocation3 + $0xd0] sm:$0xff]  ;;  %v8787_v47 = vld [vmem:[#allocation3 + $0x198] sm:$0xff] }
  0x9d   :  { %v7503_v46 = vld [vmem:[#allocation6 + $0x214] ss:$8 sps:$4 sm:$0xff]  }
  0x9f   :  { %2141 = vmatpush2.bf16.msra.mxu0 %v7437_v48  ;;  %2254 = vmatpush2.bf16.msra.mxu1 %v7440_v50  ;;  %v177_v48 = vld [vmem:[#allocation3 + $0xc0] sm:$0xff]  ;;  %v8792_v50 = vpack.c.bf16 %v8784_v45, %v8782_v44 }
  0xa0   :  { %2142 = vmatprep.subr.bf16.mxu0 %v7441_v49  ;;  %2255 = vmatprep.subr.bf16.mxu1 %v7444_v51  ;;  %v181_v49 = vld [vmem:[#allocation3 + $0xe0] sm:$0xff]  ;;  %v7506_v51 = vld [vmem:[#allocation6 + $0x314] ss:$8 sps:$4 sm:$0xff]  }
  0xa3   :  { %2143 = vmatpush2.bf16.msra.mxu0 %v7443_v52  ;;  %2256 = vmatpush2.bf16.msra.mxu1 %v7446_v54  ;;  %v202_v52 = vld [vmem:[#allocation3 + $0x188] sm:$0xff]  ;;  %v7501_v54 = vld [vmem:[#allocation6 + $0x210] ss:$8 sps:$4 sm:$0xff]  }
  0xa4   :  { %2144 = vmatprep.subr.bf16.mxu0 %v7447_v53  ;;  %2257 = vmatprep.subr.bf16.mxu1 %v7450_v55  ;;  %v206_v53 = vld [vmem:[#allocation3 + $0x1a8] sm:$0xff]  ;;  %v8796_v55 = vpack.c.bf16 %v8787_v47, %v10081_v17 }
  0xa7   :  { %2145 = vmatpush2.bf16.msra.mxu0 %v7449_v56  ;;  %2258 = vmatpush2.bf16.msra.mxu1 %v7452_v58  ;;  %v8798_v56 = vpack.c.bf16 %v181_v49, %v177_v48  ;;  %v7504_v58 = vld [vmem:[#allocation6 + $0x310] ss:$8 sps:$4 sm:$0xff]   ;;  %v7531_v48 = vld [vmem:[#allocation6 + $0x2c0] ss:$8 sps:$4 sm:$0xff]  }
  0xa8   :  { %2146 = vmatprep.subr.bf16.mxu0 %v7453_v57  ;;  %2259 = vmatprep.subr.bf16.mxu1 %v7456_v59  ;;  %v7509_v57 = vld [vmem:[#allocation6 + $0x204] ss:$8 sps:$4 sm:$0xff]   ;;  %v7507_v59 = vld [vmem:[#allocation6 + $0x200] ss:$8 sps:$4 sm:$0xff]  }
  0xab   :  { %2147 = vmatpush2.bf16.msra.mxu0 %v7455_v60  ;;  %2260 = vmatpush2.bf16.msra.mxu1 %v7458_v62  ;;  %v8800_v60 = vpack.c.bf16 %v206_v53, %v202_v52  ;;  %v7510_v62 = vld [vmem:[#allocation6 + $0x300] ss:$8 sps:$4 sm:$0xff]   ;;  %v8847_v52 = vld [vmem:[#allocation3 + $0x290] sm:$0xff] }
  0xac   :  { %2148 = vmatprep.subr.bf16.mxu0 %v7459_v61  ;;  %2261 = vmatprep.subr.bf16.mxu1 %v7462_v63  ;;  %v7512_v61 = vld [vmem:[#allocation6 + $0x304] ss:$8 sps:$4 sm:$0xff]   ;;  %v8804_v63 = vld [vmem:[#allocation3 + $0x190] sm:$0xff] }
  0xad   :  { %v7539_v53 = vld [vmem:[#allocation6 + $0x2b4] ss:$8 sps:$4 sm:$0xff]  }
  0xaf   :  { %2149 = vmatpush2.bf16.msra.mxu0 %v7461_v0  ;;  %2262 = vmatpush2.bf16.msra.mxu1 %v7464_v3  ;;  %v7515_v0 = vld [vmem:[#allocation6 + $0x2f4] ss:$8 sps:$4 sm:$0xff]  }
  0xb0   :  { %2344 = vmatprep.subr.bf16.mxu0 %v7467_v2  ;;  %2457 = vmatprep.subr.bf16.mxu1 %v7470_v4  ;;  %v8807_v2 = vld [vmem:[#allocation3 + $0x1b8] sm:$0xff]  ;;  %v201_v4 = vld [vmem:[#allocation3 + $0x180] sm:$0xff] }
  0xb1   :  { %v8809_v3 = vld [vmem:[#allocation3 + $0x1d8] sm:$0xff] }
  0xb2   :  { %2151 = vmatmul.mubr.bf16.vlgmr.msra.gmra.mxu0 %v10079_v1  ;;  %2264 = vmatmul.mubr.bf16.vlgmr.msra.gmra.mxu1 %v10079_v1 }
  0xb3   :  { %2345 = vmatpush1.bf16.msra.mxu0 %v7465_v5  ;;  %2160 = vmatprep.mubr.bf16.mxu0 %v10079_v1  ;;  %v205_v5 = vld [vmem:[#allocation3 + $0x1a0] sm:$0xff] }
  0xb4   :  { %2346 = vmatprep.subr.bf16.mxu0 %v7473_v6  ;;  %2458 = vmatpush1.bf16.msra.mxu1 %v7468_v7  ;;  %v8814_v6 = vpack.c.bf16 %v8804_v63, %v10081_v17  ;;  %v7518_v7 = vld [vmem:[#allocation6 + $0x3f4] ss:$8 sps:$4 sm:$0xff]  }
  0xb5   :  { %2273 = vmatprep.mubr.bf16.mxu1 %v10079_v1  ;;  %2459 = vmatprep.subr.bf16.mxu1 %v7476_v8  ;;  %v210_v8 = vld [vmem:[#allocation3 + $0x1c8] sm:$0xff] }
  0xb7   :  { %2347 = vmatpush1.bf16.msra.mxu0 %v7471_v9  ;;  %v214_v9 = vld [vmem:[#allocation3 + $0x1e8] sm:$0xff] }
  0xb8   :  { %2348 = vmatprep.subr.bf16.mxu0 %v7479_v10  ;;  %2460 = vmatpush1.bf16.msra.mxu1 %v7474_v12  ;;  %v7513_v10 = vld [vmem:[#allocation6 + $0x2f0] ss:$8 sps:$4 sm:$0xff]   ;;  %v8818_v12 = vpack.c.bf16 %v8809_v3, %v8807_v2 }
  0xb9   :  { %2461 = vmatprep.subr.bf16.mxu1 %v7482_v13  ;;  %v8820_v13 = vpack.c.bf16 %v205_v5, %v201_v4  ;;  %v242_v4 = vld [vmem:[#allocation3 + $0x2c8] sm:$0xff] }
  0xba   :  { %2161 = vmatmul.mubr.bf16.gmra.mxu0 %v10079_v1  ;;  %2274 = vmatmul.mubr.bf16.gmra.mxu1 %v10079_v1  ;;  %v246_v5 = vld [vmem:[#allocation3 + $0x2e8] sm:$0xff] }
  0xbb   :  { %2349 = vmatpush1.bf16.msra.mxu0 %v7477_v16  ;;  %2170 = vmatprep.mubr.bf16.mxu0 %v8754_v18  ;;  %v7519_v16 = vld [vmem:[#allocation6 + $0x2e0] ss:$8 sps:$4 sm:$0xff]  }
  0xbc   :  { %2350 = vmatprep.subr.bf16.mxu0 %v7485_v19  ;;  %2462 = vmatpush1.bf16.msra.mxu1 %v7480_v20  ;;  %v7524_v19 = vld [vmem:[#allocation6 + $0x3e4] ss:$8 sps:$4 sm:$0xff]   ;;  %v8822_v20 = vld [vmem:[#allocation3 + $0x1b0] sm:$0xff] }
  0xbd   :  { %2283 = vmatprep.mubr.bf16.mxu1 %v8756_v21  ;;  %2463 = vmatprep.subr.bf16.mxu1 %v7488_v23  ;;  %v8827_v23 = vld [vmem:[#allocation3 + $0x1d0] sm:$0xff] }
  0xbe   :  { %v8836_v34 = vpack.c.bf16 %v8827_v23, %v8822_v20 }
  0xbf   :  { %2351 = vmatpush1.bf16.msra.mxu0 %v7483_v22  ;;  %v8824_v22 = vpack.c.bf16 %v214_v9, %v210_v8 }
  0xc0   :  { %2352 = vmatprep.subr.bf16.mxu0 %v7491_v26  ;;  %2464 = vmatpush1.bf16.msra.mxu1 %v7486_v24  ;;  %v7522_v24 = vld [vmem:[#allocation6 + $0x3e0] ss:$8 sps:$4 sm:$0xff]   ;;  %v7527_v26 = vld [vmem:[#allocation6 + $0x2d4] ss:$8 sps:$4 sm:$0xff]  }
  0xc1   :  { %2465 = vmatprep.subr.bf16.mxu1 %v7494_v32  ;;  %v8831_v32 = vld [vmem:[#allocation3 + $0x298] sm:$0xff] }
  0xc2   :  { %2171 = vmatmul.mubr.bf16.gmra.mxu0 %v8770_v31  ;;  %2284 = vmatmul.mubr.bf16.gmra.mxu1 %v8776_v37 }
  0xc3   :  { %2353 = vmatpush1.bf16.msra.mxu0 %v7489_v35  ;;  %2180 = vmatprep.mubr.bf16.mxu0 %v8774_v36  ;;  %v234_v35 = vld [vmem:[#allocation3 + $0x288] sm:$0xff] }
  0xc4   :  { %2354 = vmatprep.subr.bf16.mxu0 %v7497_v38  ;;  %2466 = vmatpush1.bf16.msra.mxu1 %v7492_v39  ;;  %v238_v38 = vld [vmem:[#allocation3 + $0x2a8] sm:$0xff]  ;;  %v7525_v39 = vld [vmem:[#allocation6 + $0x2d0] ss:$8 sps:$4 sm:$0xff]  }
  0xc5   :  { %2293 = vmatprep.mubr.bf16.mxu1 %v8778_v40  ;;  %2467 = vmatprep.subr.bf16.mxu1 %v7500_v42  ;;  %v8840_v42 = vpack.c.bf16 %v8831_v32, %v10081_v17  ;;  %v8844_v49 = vpack.c.bf16 %v238_v38, %v234_v35  ;;  %v245_v35 = vld [vmem:[#allocation3 + $0x2e0] sm:$0xff] }
  0xc7   :  { %2355 = vmatpush1.bf16.msra.mxu0 %v7495_v41  ;;  %v7528_v41 = vld [vmem:[#allocation6 + $0x3d0] ss:$8 sps:$4 sm:$0xff]  }
  0xc8   :  { %2356 = vmatprep.subr.bf16.mxu0 %v7503_v46  ;;  %2468 = vmatpush1.bf16.msra.mxu1 %v7498_v43  ;;  %v8842_v43 = vpack.c.bf16 %v213_v30, %v209_v27  ;;  %v7533_v46 = vld [vmem:[#allocation6 + $0x2c4] ss:$8 sps:$4 sm:$0xff]   ;;  %v7546_v27 = vld [vmem:[#allocation6 + $0x3a0] ss:$8 sps:$4 sm:$0xff]   ;;  %v7551_v30 = vld [vmem:[#allocation6 + $0x294] ss:$8 sps:$4 sm:$0xff]  }
  0xc9   :  { %2469 = vmatprep.subr.bf16.mxu1 %v7506_v51  ;;  %v7536_v51 = vld [vmem:[#allocation6 + $0x3c4] ss:$8 sps:$4 sm:$0xff]  }
  0xca   :  { %2181 = vmatmul.mubr.bf16.gmra.mxu0 %v8792_v50  ;;  %2294 = vmatmul.mubr.bf16.gmra.mxu1 %v8798_v56 }
  0xcb   :  { %2357 = vmatpush1.bf16.msra.mxu0 %v7501_v54  ;;  %2190 = vmatprep.mubr.bf16.mxu0 %v8796_v55  ;;  %v7534_v54 = vld [vmem:[#allocation6 + $0x3c0] ss:$8 sps:$4 sm:$0xff]  }
  0xcc   :  { %2358 = vmatprep.subr.bf16.mxu0 %v7509_v57  ;;  %2470 = vmatpush1.bf16.msra.mxu1 %v7504_v58  ;;  %v233_v57 = vld [vmem:[#allocation3 + $0x280] sm:$0xff] }
  0xcd   :  { %2303 = vmatprep.mubr.bf16.mxu1 %v8800_v60  ;;  %2471 = vmatprep.subr.bf16.mxu1 %v7512_v61  ;;  %v237_v58 = vld [vmem:[#allocation3 + $0x2a0] sm:$0xff]  ;;  %v8853_v61 = vld [vmem:[#allocation3 + $0x2d8] sm:$0xff] }
  0xce   :  { %v8864_v9 = vpack.c.bf16 %v237_v58, %v233_v57  ;;  %v7560_v57 = vld [vmem:[#allocation6 + $0x384] ss:$8 sps:$4 sm:$0xff]   ;;  %v7555_v58 = vld [vmem:[#allocation6 + $0x280] ss:$8 sps:$4 sm:$0xff]  }
  0xcf   :  { %2359 = vmatpush1.bf16.msra.mxu0 %v7507_v59  ;;  %v8850_v59 = vld [vmem:[#allocation3 + $0x2b8] sm:$0xff] }
  0xd0   :  { %2360 = vmatprep.subr.bf16.mxu0 %v7515_v0  ;;  %2472 = vmatpush1.bf16.msra.mxu1 %v7510_v62  ;;  %v7542_v62 = vld [vmem:[#allocation6 + $0x3b4] ss:$8 sps:$4 sm:$0xff]   ;;  %v8858_v0 = vpack.c.bf16 %v8847_v52, %v10081_v17  ;;  %v8862_v8 = vpack.c.bf16 %v8853_v61, %v8850_v59 }
  0xd1   :  { %2473 = vmatprep.subr.bf16.mxu1 %v7518_v7  ;;  %v7537_v7 = vld [vmem:[#allocation6 + $0x2b0] ss:$8 sps:$4 sm:$0xff]  }
  0xd2   :  { %2191 = vmatmul.mubr.bf16.gmra.mxu0 %v8814_v6  ;;  %2304 = vmatmul.mubr.bf16.gmra.mxu1 %v8820_v13 }
  0xd3   :  { %2361 = vmatpush2.bf16.msra.mxu0 %v7513_v10  ;;  %2200 = vmatprep.mubr.bf16.mxu0 %v8818_v12  ;;  %v7545_v10 = vld [vmem:[#allocation6 + $0x2a4] ss:$8 sps:$4 sm:$0xff]  }
  0xd4   :  { %2362 = vmatprep.subr.bf16.mxu0 %v7521_v15  ;;  %2474 = vmatpush2.bf16.msra.mxu1 %v7516_v14  ;;  %v7540_v14 = vld [vmem:[#allocation6 + $0x3b0] ss:$8 sps:$4 sm:$0xff]   ;;  %v7543_v15 = vld [vmem:[#allocation6 + $0x2a0] ss:$8 sps:$4 sm:$0xff]  }
  0xd5   :  { %2313 = vmatprep.mubr.bf16.mxu1 %v8824_v22  ;;  %2475 = vmatprep.subr.bf16.mxu1 %v7524_v19  ;;  %v8866_v19 = vpack.c.bf16 %v246_v5, %v242_v4  ;;  %v7563_v4 = vld [vmem:[#allocation6 + $0x474] ss:$8 sps:$4 sm:$0xff]  }
  0xd6   :  { %v8889_v5 = vld [vmem:[#allocation3 + $0x10] sm:$0xff] }
  0xd7   :  { %2363 = vmatpush2.bf16.msra.mxu0 %v7519_v16  ;;  %v7548_v16 = vld [vmem:[#allocation6 + $0x3a4] ss:$8 sps:$4 sm:$0xff]  }
  0xd8   :  { %2364 = vmatprep.subr.bf16.mxu0 %v7527_v26  ;;  %2476 = vmatpush2.bf16.msra.mxu1 %v7522_v24  ;;  %v8869_v24 = vld [vmem:[#allocation3 + $0x2b0] sm:$0xff] }
  0xd9   :  { %2477 = vmatprep.subr.bf16.mxu1 %v7530_v33  ;;  %v8872_v26 = vld [vmem:[#allocation3 + $0x2d0] sm:$0xff]  ;;  %v241_v33 = vld [vmem:[#allocation3 + $0x2c0] sm:$0xff] }
  0xda   :  { %2201 = vmatmul.mubr.bf16.gmra.mxu0 %v8836_v34  ;;  %2314 = vmatmul.mubr.bf16.gmra.mxu1 %v8842_v43  ;;  %v8878_v38 = vpack.c.bf16 %v8872_v26, %v8869_v24 }
  0xdb   :  { %2365 = vmatpush2.bf16.msra.mxu0 %v7525_v39  ;;  %2210 = vmatprep.mubr.bf16.mxu0 %v8840_v42  ;;  %v7554_v39 = vld [vmem:[#allocation6 + $0x394] ss:$8 sps:$4 sm:$0xff]  }
  0xdc   :  { %2366 = vmatprep.subr.bf16.mxu0 %v7533_v46  ;;  %2478 = vmatpush2.bf16.msra.mxu1 %v7528_v41  ;;  %10104 = vst [vmem:[#allocation25_spill] sm:$0xff] %v8878_v38  ;;  %v8880_v41 = vld [vmem:[#allocation3 + $0x18] sm:$0xff] }
  0xdd   :  { %2323 = vmatprep.mubr.bf16.mxu1 %v8844_v49  ;;  %2479 = vmatprep.subr.bf16.mxu1 %v7536_v51  ;;  %v7549_v46 = vld [vmem:[#allocation6 + $0x290] ss:$8 sps:$4 sm:$0xff]   ;;  %v7557_v51 = vld [vmem:[#allocation6 + $0x284] ss:$8 sps:$4 sm:$0xff]  }
  0xdf   :  { %2367 = vmatpush2.bf16.msra.mxu0 %v7531_v48  ;;  %v8882_v48 = vpack.c.bf16 %v245_v35, %v241_v33  ;;  %v7572_v35 = vld [vmem:[#allocation6 + $0x564] ss:$8 sps:$4 sm:$0xff]  }
  0xe0   :  { %2368 = vmatprep.subr.bf16.mxu0 %v7539_v53  ;;  %2480 = vmatpush2.bf16.msra.mxu1 %v7534_v54  ;;  %v7552_v53 = vld [vmem:[#allocation6 + $0x390] ss:$8 sps:$4 sm:$0xff]   ;;  %v283_v54 = vpack.c.bf16 %v8880_v41, %v10081_v17 }
  0xe1   :  { %2481 = vmatprep.subr.bf16.mxu1 %v7542_v62  ;;  %10105 = vst [vmem:[#allocation26_spill] sm:$0xff] %v8882_v48  ;;  %v7558_v62 = vld [vmem:[#allocation6 + $0x380] ss:$8 sps:$4 sm:$0xff]  }
  0xe2   :  { %2211 = vmatmul.mubr.bf16.gmra.mxu0 %v8858_v0  ;;  %2324 = vmatmul.mubr.bf16.gmra.mxu1 %v8864_v9 }
  0xe3   :  { %2369 = vmatpush2.bf16.msra.mxu0 %v7537_v7  ;;  %2220 = vmatprep.mubr.bf16.mxu0 %v8862_v8  ;;  %v7566_v7 = vld [vmem:[#allocation6 + $0x574] ss:$8 sps:$4 sm:$0xff]  }
  0xe4   :  { %2370 = vmatprep.subr.bf16.mxu0 %v7545_v10  ;;  %2482 = vmatpush2.bf16.msra.mxu1 %v7540_v14  ;;  %v8891_v10 = vld [vmem:[#allocation3 + $0x38] sm:$0xff] }
  0xe5   :  { %2333 = vmatprep.mubr.bf16.mxu1 %v8866_v19  ;;  %2483 = vmatprep.subr.bf16.mxu1 %v7548_v16  ;;  %v8893_v14 = vld [vmem:[#allocation3 + $0x58] sm:$0xff]  ;;  %v282_v16 = vpack.c.bf16 %v8889_v5, %v10081_v17 }
  0xe6   :  { %v295_v33 = vpack.c.bf16 %v8893_v14, %v8891_v10 }
  0xe7   :  { %2371 = vmatpush2.bf16.msra.mxu0 %v7543_v15  ;;  %v7561_v15 = vld [vmem:[#allocation6 + $0x470] ss:$8 sps:$4 sm:$0xff]  }
  0xe8   :  { %2372 = vmatprep.subr.bf16.mxu0 %v7551_v30  ;;  %2484 = vmatpush2.bf16.msra.mxu1 %v7546_v27  ;;  %v7569_v27 = vld [vmem:[#allocation6 + $0x464] ss:$8 sps:$4 sm:$0xff]   ;;  %v7564_v30 = vld [vmem:[#allocation6 + $0x570] ss:$8 sps:$4 sm:$0xff]  }
  0xe9   :  { %2485 = vmatprep.subr.bf16.mxu1 %v7554_v39  ;;  %v7567_v39 = vld [vmem:[#allocation6 + $0x460] ss:$8 sps:$4 sm:$0xff]  }
  0xea   :  { %2221 = vmatmul.mubr.bf16.gmra.mxu0 %v8878_v38  ;;  %2334 = vmatmul.mubr.bf16.gmra.mxu1 %v8882_v48  ;;  %v9014_v48 = vld [vmem:[#allocation3 + $0x350] sm:$0xff] }
  0xeb   :  { %2373 = vmatpush2.bf16.msra.mxu0 %v7549_v46  ;;  %2376 = vmatprep.mubr.bf16.mxu0 %v10079_v1  ;;  %v7575_v46 = vld [vmem:[#allocation6 + $0x454] ss:$8 sps:$4 sm:$0xff]   ;;  %v7648_v38 = vld [vmem:[#allocation6 + $0x590] ss:$8 sps:$4 sm:$0xff]  }
  0xec   :  { %2374 = vmatprep.subr.bf16.mxu0 %v7557_v51  ;;  %2486 = vmatpush2.bf16.msra.mxu1 %v7552_v53  ;;  %v7570_v51 = vld [vmem:[#allocation6 + $0x560] ss:$8 sps:$4 sm:$0xff]   ;;  %v8901_v53 = vld [vmem:[#allocation3 + $0x30] sm:$0xff] }
  0xed   :  { %2489 = vmatprep.mubr.bf16.mxu1 %v283_v54  ;;  %2487 = vmatprep.subr.bf16.mxu1 %v7560_v57  ;;  %v8903_v54 = vld [vmem:[#allocation3 + $0x50] sm:$0xff] }
  0xee   :  { %v7578_v57 = vld [vmem:[#allocation6 + $0x554] ss:$8 sps:$4 sm:$0xff]  }
  0xef   :  { %2375 = vmatpush2.bf16.msra.mxu0 %v7555_v58  ;;  %v8905_v58 = vld [vmem:[#allocation3 + $0x118] sm:$0xff] }
  0xf0   :  { %2570 = vmatprep.subr.bf16.mxu0 %v7563_v4  ;;  %2488 = vmatpush2.bf16.msra.mxu1 %v7558_v62  ;;  %v7573_v62 = vld [vmem:[#allocation6 + $0x450] ss:$8 sps:$4 sm:$0xff]   ;;  %v8909_v4 = vpack.c.bf16 %v8763_v28, %v8749_v11  ;;  %v7587_v11 = vld [vmem:[#allocation6 + $0x434] ss:$8 sps:$4 sm:$0xff]  }
  0xf1   :  { %2683 = vmatprep.subr.bf16.mxu1 %v7566_v7  ;;  %v294_v7 = vpack.c.bf16 %v8903_v54, %v8901_v53  ;;  %v8917_v28 = vld [vmem:[#allocation3 + $0x110] sm:$0xff] }
  0xf2   :  { %2377 = vmatmul.mubr.bf16.vlgmr.msra.gmra.mxu0 %v10079_v1  ;;  %10106 = vst [vmem:[#allocation27_spill] sm:$0xff] %v8909_v4 }
  0xf3   :  { %2571 = vmatpush1.bf16.msra.mxu0 %v7561_v15  ;;  %2386 = vmatprep.mubr.bf16.mxu0 %v10079_v1  ;;  %v7581_v15 = vld [vmem:[#allocation6 + $0x444] ss:$8 sps:$4 sm:$0xff]  }
  0xf4   :  { %2490 = vmatmul.mubr.bf16.vlgmr.msra.gmra.mxu1 %v282_v16  ;;  %2572 = vmatprep.subr.bf16.mxu0 %v7569_v27  ;;  %v7576_v16 = vld [vmem:[#allocation6 + $0x550] ss:$8 sps:$4 sm:$0xff]   ;;  %v307_v27 = vpack.c.bf16 %v8905_v58, %v10081_v17 }
  0xf5   :  { %2684 = vmatpush1.bf16.msra.mxu1 %v7564_v30  ;;  %2499 = vmatprep.mubr.bf16.mxu1 %v295_v33  ;;  %v7579_v30 = vld [vmem:[#allocation6 + $0x440] ss:$8 sps:$4 sm:$0xff]   ;;  %v7584_v33 = vld [vmem:[#allocation6 + $0x544] ss:$8 sps:$4 sm:$0xff]  }
  0xf6   :  { %2685 = vmatprep.subr.bf16.mxu1 %v7572_v35  ;;  %v7582_v35 = vld [vmem:[#allocation6 + $0x540] ss:$8 sps:$4 sm:$0xff]  }
  0xf7   :  { %2573 = vmatpush1.bf16.msra.mxu0 %v7567_v39  ;;  %v184_v39 = vld [vmem:[#allocation3 + $0xf8] sm:$0xff] }
  0xf8   :  { %2574 = vmatprep.subr.bf16.mxu0 %v7575_v46  ;;  %v7590_v46 = vld [vmem:[#allocation6 + $0x534] ss:$8 sps:$4 sm:$0xff]  }
  0xf9   :  { %2686 = vmatpush1.bf16.msra.mxu1 %v7570_v51  ;;  %v8919_v51 = vld [vmem:[#allocation3 + $0x138] sm:$0xff] }
  0xfa   :  { %2387 = vmatmul.mubr.bf16.gmra.mxu0 %v10079_v1  ;;  %2687 = vmatprep.subr.bf16.mxu1 %v7578_v57  ;;  %v8923_v57 = vpack.c.bf16 %v8782_v44, %v8760_v25  ;;  %v7585_v1 = vld [vmem:[#allocation6 + $0x430] ss:$8 sps:$4 sm:$0xff]   ;;  %v7591_v25 = vld [vmem:[#allocation6 + $0x420] ss:$8 sps:$4 sm:$0xff]   ;;  %v7596_v44 = vld [vmem:[#allocation6 + $0x524] ss:$8 sps:$4 sm:$0xff]  }
  0xfb   :  { %2575 = vmatpush1.bf16.msra.mxu0 %v7573_v62  ;;  %2396 = vmatprep.mubr.bf16.mxu0 %v8909_v4  ;;  %v8925_v62 = vld [vmem:[#allocation3 + $0x158] sm:$0xff] }
  0xfc   :  { %2500 = vmatmul.mubr.bf16.gmra.mxu1 %v294_v7  ;;  %2576 = vmatprep.subr.bf16.mxu0 %v7581_v15  ;;  %10107 = vst [vmem:[#allocation28_spill] sm:$0xff] %v8923_v57  ;;  %v8928_v7 = vpack.c.bf16 %v184_v39, %v8765_v29  ;;  %v306_v15 = vpack.c.bf16 %v8917_v28, %v10081_v17  ;;  %v183_v29 = vld [vmem:[#allocation3 + $0xf0] sm:$0xff] }
  0xfd   :  { %2688 = vmatpush1.bf16.msra.mxu1 %v7576_v16  ;;  %2509 = vmatprep.mubr.bf16.mxu1 %v307_v27  ;;  %v7593_v16 = vld [vmem:[#allocation6 + $0x424] ss:$8 sps:$4 sm:$0xff]   ;;  %v7588_v27 = vld [vmem:[#allocation6 + $0x530] ss:$8 sps:$4 sm:$0xff]   ;;  %v8941_v17 = vpack.c.bf16 %v183_v29, %v8784_v45  ;;  %v7606_v29 = vld [vmem:[#allocation6 + $0x500] ss:$8 sps:$4 sm:$0xff]  }
  0xfe   :  { %2689 = vmatprep.subr.bf16.mxu1 %v7584_v33  ;;  %10108 = vst [vmem:[#allocation29_spill] sm:$0xff] %v8928_v7  ;;  %v319_v33 = vpack.c.bf16 %v8925_v62, %v8919_v51  ;;  %v8936_v39 = vld [vmem:[#allocation3 + $0x130] sm:$0xff] }
  0xff   :  { %2577 = vmatpush1.bf16.msra.mxu0 %v7579_v30  ;;  %v7594_v30 = vld [vmem:[#allocation6 + $0x520] ss:$8 sps:$4 sm:$0xff]   ;;  %10109 = vst [vmem:[#allocation30_spill] sm:$0xff] %v8941_v17 }
 0x100   :  { %2578 = vmatprep.subr.bf16.mxu0 %v7587_v11  ;;  %v7599_v11 = vld [vmem:[#allocation6 + $0x414] ss:$8 sps:$4 sm:$0xff]  }
 0x101   :  { %2690 = vmatpush1.bf16.msra.mxu1 %v7582_v35  ;;  %v8938_v35 = vld [vmem:[#allocation3 + $0x150] sm:$0xff] }
 0x102   :  { %2397 = vmatmul.mubr.bf16.gmra.mxu0 %v8923_v57  ;;  %2691 = vmatprep.subr.bf16.mxu1 %v7590_v46  ;;  %v7602_v46 = vld [vmem:[#allocation6 + $0x514] ss:$8 sps:$4 sm:$0xff]  }
 0x103   :  { %2579 = vmatpush1.bf16.msra.mxu0 %v7585_v1  ;;  %2406 = vmatprep.mubr.bf16.mxu0 %v8928_v7  ;;  %v8943_v57 = vld [vmem:[#allocation3 + $0x218] sm:$0xff]  ;;  %v8947_v7 = vpack.c.bf16 %v8807_v2, %v8787_v47 }
 0x104   :  { %2510 = vmatmul.mubr.bf16.gmra.mxu1 %v306_v15  ;;  %2580 = vmatprep.subr.bf16.mxu0 %v7593_v16  ;;  %v7597_v1 = vld [vmem:[#allocation6 + $0x410] ss:$8 sps:$4 sm:$0xff]   ;;  %v318_v15 = vpack.c.bf16 %v8938_v35, %v8936_v39  ;;  %v7605_v16 = vld [vmem:[#allocation6 + $0x404] ss:$8 sps:$4 sm:$0xff]   ;;  %v7611_v47 = vld [vmem:[#allocation6 + $0x4f4] ss:$8 sps:$4 sm:$0xff]  }
 0x105   :  { %2692 = vmatpush1.bf16.msra.mxu1 %v7588_v27  ;;  %2519 = vmatprep.mubr.bf16.mxu1 %v319_v33  ;;  %10110 = vst [vmem:[#allocation31_spill] sm:$0xff] %v8947_v7  ;;  %v7600_v27 = vld [vmem:[#allocation6 + $0x510] ss:$8 sps:$4 sm:$0xff]   ;;  %v10111_v33 = vmov 0.0  }
 0x106   :  { %2693 = vmatprep.subr.bf16.mxu1 %v7596_v44  ;;  %v331_v45 = vpack.c.bf16 %v8943_v57, %v10111_v33  ;;  %v7603_v44 = vld [vmem:[#allocation6 + $0x400] ss:$8 sps:$4 sm:$0xff]   ;;  %v216_v2 = vld [vmem:[#allocation3 + $0x1f8] sm:$0xff] }
 0x107   :  { %2581 = vmatpush1.bf16.msra.mxu0 %v7591_v25  ;;  %v7608_v25 = vld [vmem:[#allocation6 + $0x504] ss:$8 sps:$4 sm:$0xff]  }
 0x108   :  { %2582 = vmatprep.subr.bf16.mxu0 %v7599_v11  ;;  %v8959_v11 = vpack.c.bf16 %v8822_v20, %v8804_v63  ;;  %v7620_v20 = vld [vmem:[#allocation6 + $0x5e4] ss:$8 sps:$4 sm:$0xff]  }
 0x109   :  { %2694 = vmatpush1.bf16.msra.mxu1 %v7594_v30  ;;  %v8955_v30 = vld [vmem:[#allocation3 + $0x210] sm:$0xff] }
 0x10a   :  { %2407 = vmatmul.mubr.bf16.gmra.mxu0 %v8941_v17  ;;  %2695 = vmatprep.subr.bf16.mxu1 %v7602_v46  ;;  %10112 = vst [vmem:[#allocation32_spill] sm:$0xff] %v8959_v11  ;;  %v7614_v46 = vld [vmem:[#allocation6 + $0x5f4] ss:$8 sps:$4 sm:$0xff]  }
 0x10b   :  { %2583 = vmatpush1.bf16.msra.mxu0 %v7597_v1  ;;  %2416 = vmatprep.mubr.bf16.mxu0 %v8947_v7  ;;  %v8961_v17 = vld [vmem:[#allocation3 + $0x238] sm:$0xff] }
 0x10c   :  { %2520 = vmatmul.mubr.bf16.gmra.mxu1 %v318_v15  ;;  %2584 = vmatprep.subr.bf16.mxu0 %v7605_v16  ;;  %v8963_v1 = vld [vmem:[#allocation3 + $0x258] sm:$0xff]  ;;  %v8966_v15 = vpack.c.bf16 %v216_v2, %v8809_v3  ;;  %v330_v16 = vpack.c.bf16 %v8955_v30, %v10111_v33  ;;  %v215_v3 = vld [vmem:[#allocation3 + $0x1f0] sm:$0xff] }
 0x10d   :  { %2696 = vmatpush1.bf16.msra.mxu1 %v7600_v27  ;;  %2529 = vmatprep.mubr.bf16.mxu1 %v331_v45  ;;  %v7609_v7 = vld [vmem:[#allocation6 + $0x4f0] ss:$8 sps:$4 sm:$0xff]   ;;  %v7617_v27 = vld [vmem:[#allocation6 + $0x4e4] ss:$8 sps:$4 sm:$0xff]   ;;  %v343_v63 = vpack.c.bf16 %v8963_v1, %v8961_v17  ;;  %v8979_v4 = vpack.c.bf16 %v215_v3, %v8827_v23 }
 0x10e   :  { %2697 = vmatprep.subr.bf16.mxu1 %v7608_v25  ;;  %10113 = vst [vmem:[#allocation33_spill] sm:$0xff] %v8966_v15  ;;  %v7612_v45 = vld [vmem:[#allocation6 + $0x5f0] ss:$8 sps:$4 sm:$0xff]   ;;  %v7615_v25 = vld [vmem:[#allocation6 + $0x4e0] ss:$8 sps:$4 sm:$0xff]  }
 0x10f   :  { %2585 = vmatpush1.bf16.msra.mxu0 %v7603_v44  ;;  %v7618_v44 = vld [vmem:[#allocation6 + $0x5e0] ss:$8 sps:$4 sm:$0xff]   ;;  %v8976_v2 = vld [vmem:[#allocation3 + $0x250] sm:$0xff]  ;;  %10114 = vst [vmem:[#allocation34_spill] sm:$0xff] %v8979_v4  ;;  %v248_v3 = vld [vmem:[#allocation3 + $0x2f8] sm:$0xff] }
 0x110   :  { %2586 = vmatprep.subr.bf16.mxu0 %v7611_v47  ;;  %v7623_v47 = vld [vmem:[#allocation6 + $0x4d4] ss:$8 sps:$4 sm:$0xff]  }
 0x111   :  { %2698 = vmatpush1.bf16.msra.mxu1 %v7606_v29  ;;  %v8974_v29 = vld [vmem:[#allocation3 + $0x230] sm:$0xff] }
 0x112   :  { %2417 = vmatmul.mubr.bf16.gmra.mxu0 %v8959_v11  ;;  %2699 = vmatprep.subr.bf16.mxu1 %v7614_v46  ;;  %v7626_v46 = vld [vmem:[#allocation6 + $0x5d4] ss:$8 sps:$4 sm:$0xff]  }
 0x113   :  { %2587 = vmatpush2.bf16.msra.mxu0 %v7609_v7  ;;  %2426 = vmatprep.mubr.bf16.mxu0 %v8966_v15  ;;  %v8981_v11 = vld [vmem:[#allocation3 + $0x318] sm:$0xff] }
 0x114   :  { %2530 = vmatmul.mubr.bf16.gmra.mxu1 %v330_v16  ;;  %2588 = vmatprep.subr.bf16.mxu0 %v7617_v27  ;;  %v7621_v7 = vld [vmem:[#allocation6 + $0x4d0] ss:$8 sps:$4 sm:$0xff]   ;;  %v8985_v16 = vpack.c.bf16 %v8850_v59, %v8831_v32  ;;  %v342_v27 = vpack.c.bf16 %v8976_v2, %v8974_v29  ;;  %v355_v23 = vpack.c.bf16 %v8981_v11, %v10111_v33  ;;  %v7630_v32 = vld [vmem:[#allocation6 + $0x5c0] ss:$8 sps:$4 sm:$0xff]   ;;  %v7635_v59 = vld [vmem:[#allocation6 + $0x4b4] ss:$8 sps:$4 sm:$0xff]  }
 0x115   :  { %2700 = vmatpush2.bf16.msra.mxu1 %v7612_v45  ;;  %2539 = vmatprep.mubr.bf16.mxu1 %v343_v63  ;;  %v7629_v45 = vld [vmem:[#allocation6 + $0x4c4] ss:$8 sps:$4 sm:$0xff]   ;;  %v7624_v63 = vld [vmem:[#allocation6 + $0x5d0] ss:$8 sps:$4 sm:$0xff]  }
 0x116   :  { %2701 = vmatprep.subr.bf16.mxu1 %v7620_v20  ;;  %10115 = vst [vmem:[#allocation35_spill] sm:$0xff] %v8985_v16  ;;  %v7632_v20 = vld [vmem:[#allocation6 + $0x5c4] ss:$8 sps:$4 sm:$0xff]   ;;  %v8995_v15 = vld [vmem:[#allocation3 + $0x338] sm:$0xff] }
 0x117   :  { %2589 = vmatpush2.bf16.msra.mxu0 %v7615_v25  ;;  %v7627_v25 = vld [vmem:[#allocation6 + $0x4c0] ss:$8 sps:$4 sm:$0xff]  }
 0x118   :  { %2590 = vmatprep.subr.bf16.mxu0 %v7623_v47  ;;  %v7638_v47 = vld [vmem:[#allocation6 + $0x5b4] ss:$8 sps:$4 sm:$0xff]  }
 0x119   :  { %2702 = vmatpush2.bf16.msra.mxu1 %v7618_v44  ;;  %v8993_v44 = vld [vmem:[#allocation3 + $0x310] sm:$0xff] }
 0x11a   :  { %2427 = vmatmul.mubr.bf16.gmra.mxu0 %v8979_v4  ;;  %2703 = vmatprep.subr.bf16.mxu1 %v7626_v46  ;;  %v8999_v46 = vpack.c.bf16 %v8869_v24, %v8847_v52  ;;  %v7639_v52 = vld [vmem:[#allocation6 + $0x4a0] ss:$8 sps:$4 sm:$0xff]   ;;  %v7644_v24 = vld [vmem:[#allocation6 + $0x5a4] ss:$8 sps:$4 sm:$0xff]  }
 0x11b   :  { %2591 = vmatpush2.bf16.msra.mxu0 %v7621_v7  ;;  %2436 = vmatprep.mubr.bf16.mxu0 %v8985_v16  ;;  %v9001_v7 = vld [vmem:[#allocation3 + $0x358] sm:$0xff]  ;;  %v158_v4 = vld [vmem:[#allocation3 + $0x28] sm:$0xff] }
 0x11c   :  { %2540 = vmatmul.mubr.bf16.gmra.mxu1 %v342_v27  ;;  %2592 = vmatprep.subr.bf16.mxu0 %v7629_v45  ;;  %10116 = vst [vmem:[#allocation36_spill] sm:$0xff] %v8999_v46  ;;  %v7633_v27 = vld [vmem:[#allocation6 + $0x4b0] ss:$8 sps:$4 sm:$0xff]   ;;  %v9004_v45 = vpack.c.bf16 %v248_v3, %v8853_v61 }
 0x11d   :  { %2704 = vmatpush2.bf16.msra.mxu1 %v7624_v63  ;;  %2549 = vmatprep.mubr.bf16.mxu1 %v355_v23  ;;  %v354_v63 = vpack.c.bf16 %v8993_v44, %v10111_v33  ;;  %v7641_v23 = vld [vmem:[#allocation6 + $0x4a4] ss:$8 sps:$4 sm:$0xff]   ;;  %v7636_v16 = vld [vmem:[#allocation6 + $0x5b0] ss:$8 sps:$4 sm:$0xff]  }
 0x11e   :  { %2705 = vmatprep.subr.bf16.mxu1 %v7632_v20  ;;  %10117 = vst [vmem:[#allocation37_spill] sm:$0xff] %v9004_v45  ;;  %v367_v20 = vpack.c.bf16 %v9001_v7, %v8995_v15  ;;  %v247_v61 = vld [vmem:[#allocation3 + $0x2f0] sm:$0xff] }
 0x11f   :  { %2593 = vmatpush2.bf16.msra.mxu0 %v7627_v25  ;;  %v7642_v25 = vld [vmem:[#allocation6 + $0x5a0] ss:$8 sps:$4 sm:$0xff]   ;;  %v9012_v3 = vld [vmem:[#allocation3 + $0x330] sm:$0xff] }
 0x120   :  { %2594 = vmatprep.subr.bf16.mxu0 %v7635_v59  ;;  %v7647_v59 = vld [vmem:[#allocation6 + $0x494] ss:$8 sps:$4 sm:$0xff]   ;;  %v7660_v33 = vld [vmem:[#allocation6 + $0x770] ss:$8 sps:$4 sm:$0xff]  }
 0x121   :  { %2706 = vmatpush2.bf16.msra.mxu1 %v7630_v32  ;;  %v154_v32 = vld [vmem:[#allocation3 + $0x8] sm:$0xff] }
 0x122   :  { %2437 = vmatmul.mubr.bf16.gmra.mxu0 %v8999_v46  ;;  %2707 = vmatprep.subr.bf16.mxu1 %v7638_v47  ;;  %v9017_v47 = vpack.c.bf16 %v247_v61, %v8872_v26  ;;  %v7645_v46 = vld [vmem:[#allocation6 + $0x490] ss:$8 sps:$4 sm:$0xff]   ;;  %v7656_v26 = vld [vmem:[#allocation6 + $0x584] ss:$8 sps:$4 sm:$0xff]  }
 0x123   :  { %2595 = vmatpush2.bf16.msra.mxu0 %v7633_v27  ;;  %2446 = vmatprep.mubr.bf16.mxu0 %v9004_v45  ;;  %v7650_v27 = vld [vmem:[#allocation6 + $0x594] ss:$8 sps:$4 sm:$0xff]   ;;  %v285_v45 = vpack.c.bf16 %v158_v4, %v154_v32  ;;  %v162_v61 = vld [vmem:[#allocation3 + $0x48] sm:$0xff] }
 0x124   :  { %2550 = vmatmul.mubr.bf16.gmra.mxu1 %v354_v63  ;;  %2596 = vmatprep.subr.bf16.mxu0 %v7641_v23  ;;  %10118 = vst [vmem:[#allocation38_spill] sm:$0xff] %v9017_v47  ;;  %v366_v63 = vpack.c.bf16 %v9014_v48, %v9012_v3  ;;  %v7653_v23 = vld [vmem:[#allocation6 + $0x484] ss:$8 sps:$4 sm:$0xff]   ;;  %v7659_v4 = vld [vmem:[#allocation6 + $0x674] ss:$8 sps:$4 sm:$0xff]  }
 0x125   :  { %2708 = vmatpush2.bf16.msra.mxu1 %v7636_v16  ;;  %2559 = vmatprep.mubr.bf16.mxu1 %v367_v20  ;;  %v287_v16 = vpack.c.bf16 %v8891_v10, %v8880_v41  ;;  %v7651_v20 = vld [vmem:[#allocation6 + $0x480] ss:$8 sps:$4 sm:$0xff]   ;;  %v7662_v32 = vld [vmem:[#allocation6 + $0x774] ss:$8 sps:$4 sm:$0xff]  }
 0x126   :  { %2709 = vmatprep.subr.bf16.mxu1 %v7644_v24  ;;  %v153_v24 = vld [vmem:[#allocation3] sm:$0xff]  ;;  %v168_v10 = vld [vmem:[#allocation3 + $0x78] sm:$0xff] }
 0x127   :  { %2597 = vmatpush2.bf16.msra.mxu0 %v7639_v52  ;;  %v157_v52 = vld [vmem:[#allocation3 + $0x20] sm:$0xff] }
 0x128   :  { %2598 = vmatprep.subr.bf16.mxu0 %v7647_v59  ;;  %v166_v59 = vld [vmem:[#allocation3 + $0x68] sm:$0xff]  ;;  %v284_v41 = vpack.c.bf16 %v157_v52, %v153_v24 }
 0x129   :  { %2710 = vmatpush2.bf16.msra.mxu1 %v7642_v25  ;;  %v7654_v25 = vld [vmem:[#allocation6 + $0x580] ss:$8 sps:$4 sm:$0xff]  }
 0x12a   :  { %2447 = vmatmul.mubr.bf16.gmra.mxu0 %v9017_v47  ;;  %2711 = vmatprep.subr.bf16.mxu1 %v7650_v27  ;;  %v7657_v27 = vld [vmem:[#allocation6 + $0x670] ss:$8 sps:$4 sm:$0xff]   ;;  %v297_v47 = vpack.c.bf16 %v166_v59, %v162_v61  ;;  %v186_v24 = vld [vmem:[#allocation3 + $0x108] sm:$0xff]  ;;  %v7674_v61 = vld [vmem:[#allocation6 + $0x754] ss:$8 sps:$4 sm:$0xff]  }
 0x12b   :  { %2599 = vmatpush2.bf16.msra.mxu0 %v7645_v46  ;;  %2602 = vmatprep.mubr.bf16.mxu0 %v285_v45  ;;  %v286_v46 = vpack.c.bf16 %v8901_v53, %v8889_v5  ;;  %v7665_v45 = vld [vmem:[#allocation6 + $0x664] ss:$8 sps:$4 sm:$0xff]   ;;  %v7666_v5 = vld [vmem:[#allocation6 + $0x760] ss:$8 sps:$4 sm:$0xff]   ;;  %v167_v53 = vld [vmem:[#allocation3 + $0x70] sm:$0xff] }
 0x12c   :  { %2560 = vmatmul.mubr.bf16.gmra.mxu1 %v366_v63  ;;  %2600 = vmatprep.subr.bf16.mxu0 %v7653_v23  ;;  %v7663_v63 = vld [vmem:[#allocation6 + $0x660] ss:$8 sps:$4 sm:$0xff]   ;;  %v299_v23 = vpack.c.bf16 %v168_v10, %v8893_v14  ;;  %v7669_v14 = vld [vmem:[#allocation6 + $0x650] ss:$8 sps:$4 sm:$0xff]   ;;  %v7680_v10 = vld [vmem:[#allocation6 + $0x744] ss:$8 sps:$4 sm:$0xff]  }
 0x12d   :  { %2712 = vmatpush2.bf16.msra.mxu1 %v7648_v38  ;;  %2715 = vmatprep.mubr.bf16.mxu1 %v287_v16  ;;  %v7668_v38 = vld [vmem:[#allocation6 + $0x764] ss:$8 sps:$4 sm:$0xff]  }
 0x12e   :  { %2713 = vmatprep.subr.bf16.mxu1 %v7656_v26  ;;  %v161_v16 = vld [vmem:[#allocation3 + $0x40] sm:$0xff]  ;;  %v190_v52 = vld [vmem:[#allocation3 + $0x128] sm:$0xff] }
 0x12f   :  { %2601 = vmatpush2.bf16.msra.mxu0 %v7651_v20  ;;  %v165_v26 = vld [vmem:[#allocation3 + $0x60] sm:$0xff]  ;;  %v7671_v20 = vld [vmem:[#allocation6 + $0x654] ss:$8 sps:$4 sm:$0xff]   ;;  %v309_v59 = vpack.c.bf16 %v190_v52, %v186_v24  ;;  %v310_v24 = vpack.c.bf16 %v8936_v39, %v8917_v28 }
 0x130   :  { %2796 = vmatprep.subr.bf16.mxu0 %v7659_v4  ;;  %v296_v4 = vpack.c.bf16 %v165_v26, %v161_v16  ;;  %v7686_v16 = vld [vmem:[#allocation6 + $0x734] ss:$8 sps:$4 sm:$0xff]   ;;  %v7689_v52 = vld [vmem:[#allocation6 + $0x624] ss:$8 sps:$4 sm:$0xff]  }
 0x131   :  { %2714 = vmatpush2.bf16.msra.mxu1 %v7654_v25  ;;  %v298_v25 = vpack.c.bf16 %v167_v53, %v8903_v54  ;;  %v7678_v54 = vld [vmem:[#allocation6 + $0x740] ss:$8 sps:$4 sm:$0xff]   ;;  %v200_v26 = vld [vmem:[#allocation3 + $0x178] sm:$0xff]  ;;  %v7692_v53 = vld [vmem:[#allocation6 + $0x724] ss:$8 sps:$4 sm:$0xff]  }
 0x132   :  { %2603 = vmatmul.mubr.bf16.vlgmr.msra.gmra.mxu0 %v284_v41  ;;  %2909 = vmatprep.subr.bf16.mxu1 %v7662_v32  ;;  %v7677_v32 = vld [vmem:[#allocation6 + $0x644] ss:$8 sps:$4 sm:$0xff]   ;;  %v7675_v41 = vld [vmem:[#allocation6 + $0x640] ss:$8 sps:$4 sm:$0xff]   ;;  %v199_v28 = vld [vmem:[#allocation3 + $0x170] sm:$0xff] }
 0x133   :  { %2797 = vmatpush1.bf16.msra.mxu0 %v7657_v27  ;;  %2612 = vmatprep.mubr.bf16.mxu0 %v297_v47  ;;  %v7672_v47 = vld [vmem:[#allocation6 + $0x750] ss:$8 sps:$4 sm:$0xff]   ;;  %v185_v27 = vld [vmem:[#allocation3 + $0x100] sm:$0xff] }
 0x134   :  { %2716 = vmatmul.mubr.bf16.vlgmr.msra.gmra.mxu1 %v286_v46  ;;  %2798 = vmatprep.subr.bf16.mxu0 %v7665_v45  ;;  %v189_v46 = vld [vmem:[#allocation3 + $0x120] sm:$0xff]  ;;  %v7683_v45 = vld [vmem:[#allocation6 + $0x634] ss:$8 sps:$4 sm:$0xff]  }
 0x135   :  { %2910 = vmatpush1.bf16.msra.mxu1 %v7660_v33  ;;  %2725 = vmatprep.mubr.bf16.mxu1 %v299_v23  ;;  %v311_v33 = vpack.c.bf16 %v8919_v51, %v8905_v58  ;;  %v198_v23 = vld [vmem:[#allocation3 + $0x168] sm:$0xff]  ;;  %v7681_v58 = vld [vmem:[#allocation6 + $0x630] ss:$8 sps:$4 sm:$0xff]  }
 0x136   :  { %2911 = vmatprep.subr.bf16.mxu1 %v7668_v38  ;;  %v308_v38 = vpack.c.bf16 %v189_v46, %v185_v27  ;;  %v7684_v51 = vld [vmem:[#allocation6 + $0x730] ss:$8 sps:$4 sm:$0xff]   ;;  %v322_v27 = vpack.c.bf16 %v199_v28, %v8938_v35  ;;  %v7701_v46 = vld [vmem:[#allocation6 + $0x604] ss:$8 sps:$4 sm:$0xff]   ;;  %v7702_v35 = vld [vmem:[#allocation6 + $0x700] ss:$8 sps:$4 sm:$0xff]  }
 0x137   :  { %2799 = vmatpush1.bf16.msra.mxu0 %v7663_v63  ;;  %v194_v63 = vld [vmem:[#allocation3 + $0x148] sm:$0xff] }
 0x138   :  { %2800 = vmatprep.subr.bf16.mxu0 %v7671_v20  ;;  %v321_v20 = vpack.c.bf16 %v198_v23, %v194_v63  ;;  %v7704_v63 = vld [vmem:[#allocation6 + $0x704] ss:$8 sps:$4 sm:$0xff]  }
 0x139   :  { %2912 = vmatpush1.bf16.msra.mxu1 %v7666_v5  ;;  %v7687_v5 = vld [vmem:[#allocation6 + $0x620] ss:$8 sps:$4 sm:$0xff]  }
 0x13a   :  { %2613 = vmatmul.mubr.bf16.gmra.mxu0 %v296_v4  ;;  %2913 = vmatprep.subr.bf16.mxu1 %v7674_v61  ;;  %v193_v4 = vld [vmem:[#allocation3 + $0x140] sm:$0xff]  ;;  %v323_v61 = vpack.c.bf16 %v200_v26, %v8925_v62  ;;  %v7696_v62 = vld [vmem:[#allocation6 + $0x710] ss:$8 sps:$4 sm:$0xff]   ;;  %v226_v26 = vld [vmem:[#allocation3 + $0x248] sm:$0xff] }
 0x13b   :  { %2801 = vmatpush1.bf16.msra.mxu0 %v7669_v14  ;;  %2622 = vmatprep.mubr.bf16.mxu0 %v309_v59  ;;  %v197_v14 = vld [vmem:[#allocation3 + $0x160] sm:$0xff]  ;;  %v7695_v59 = vld [vmem:[#allocation6 + $0x614] ss:$8 sps:$4 sm:$0xff]   ;;  %v254_v28 = vld [vmem:[#allocation3 + $0x328] sm:$0xff] }
 0x13c   :  { %2726 = vmatmul.mubr.bf16.gmra.mxu1 %v298_v25  ;;  %2802 = vmatprep.subr.bf16.mxu0 %v7677_v32  ;;  %v218_v25 = vld [vmem:[#allocation3 + $0x208] sm:$0xff]  ;;  %v320_v39 = vpack.c.bf16 %v197_v14, %v193_v4  ;;  %v217_v23 = vld [vmem:[#allocation3 + $0x200] sm:$0xff] }
 0x13d   :  { %2914 = vmatpush1.bf16.msra.mxu1 %v7672_v47  ;;  %2735 = vmatprep.mubr.bf16.mxu1 %v311_v33  ;;  %v222_v32 = vld [vmem:[#allocation3 + $0x228] sm:$0xff] }
 0x13e   :  { %2915 = vmatprep.subr.bf16.mxu1 %v7680_v10  ;;  %v7690_v47 = vld [vmem:[#allocation6 + $0x720] ss:$8 sps:$4 sm:$0xff]   ;;  %v7698_v10 = vld [vmem:[#allocation6 + $0x714] ss:$8 sps:$4 sm:$0xff]   ;;  %v333_v33 = vpack.c.bf16 %v222_v32, %v218_v25  ;;  %v7716_v14 = vld [vmem:[#allocation6 + $0x7e4] ss:$8 sps:$4 sm:$0xff]  }
 0x13f   :  { %2803 = vmatpush1.bf16.msra.mxu0 %v7675_v41  ;;  %v7693_v41 = vld [vmem:[#allocation6 + $0x610] ss:$8 sps:$4 sm:$0xff]   ;;  %v229_v25 = vld [vmem:[#allocation3 + $0x260] sm:$0xff]  ;;  %v7719_v32 = vld [vmem:[#allocation6 + $0x6d4] ss:$8 sps:$4 sm:$0xff]  }
 0x140   :  { %2804 = vmatprep.subr.bf16.mxu0 %v7683_v45  ;;  %v7699_v45 = vld [vmem:[#allocation6 + $0x600] ss:$8 sps:$4 sm:$0xff]  }
 0x141   :  { %2916 = vmatpush1.bf16.msra.mxu1 %v7678_v54  ;;  %v335_v54 = vpack.c.bf16 %v8961_v17, %v8943_v57  ;;  %v334_v57 = vpack.c.bf16 %v8974_v29, %v8955_v30  ;;  %v7714_v30 = vld [vmem:[#allocation6 + $0x7e0] ss:$8 sps:$4 sm:$0xff]   ;;  %v231_v29 = vld [vmem:[#allocation3 + $0x270] sm:$0xff] }
 0x142   :  { %2623 = vmatmul.mubr.bf16.gmra.mxu0 %v308_v38  ;;  %2917 = vmatprep.subr.bf16.mxu1 %v7686_v16  ;;  %v221_v38 = vld [vmem:[#allocation3 + $0x220] sm:$0xff]  ;;  %v7707_v16 = vld [vmem:[#allocation6 + $0x6f4] ss:$8 sps:$4 sm:$0xff]  }
 0x143   :  { %2805 = vmatpush1.bf16.msra.mxu0 %v7681_v58  ;;  %2632 = vmatprep.mubr.bf16.mxu0 %v321_v20  ;;  %v230_v58 = vld [vmem:[#allocation3 + $0x268] sm:$0xff]  ;;  %v7710_v20 = vld [vmem:[#allocation6 + $0x7f4] ss:$8 sps:$4 sm:$0xff]  }
 0x144   :  { %2736 = vmatmul.mubr.bf16.gmra.mxu1 %v310_v24  ;;  %2806 = vmatprep.subr.bf16.mxu0 %v7689_v52  ;;  %v232_v24 = vld [vmem:[#allocation3 + $0x278] sm:$0xff]  ;;  %v345_v17 = vpack.c.bf16 %v230_v58, %v226_v26  ;;  %v262_v26 = vld [vmem:[#allocation3 + $0x368] sm:$0xff] }
 0x145   :  { %2918 = vmatpush1.bf16.msra.mxu1 %v7684_v51  ;;  %2745 = vmatprep.mubr.bf16.mxu1 %v323_v61  ;;  %v332_v51 = vpack.c.bf16 %v221_v38, %v217_v23  ;;  %v7705_v52 = vld [vmem:[#allocation6 + $0x6f0] ss:$8 sps:$4 sm:$0xff]   ;;  %v347_v4 = vpack.c.bf16 %v232_v24, %v8963_v1  ;;  %v7711_v61 = vld [vmem:[#allocation6 + $0x6e0] ss:$8 sps:$4 sm:$0xff]   ;;  %v7722_v1 = vld [vmem:[#allocation6 + $0x7d4] ss:$8 sps:$4 sm:$0xff]  }
 0x146   :  { %2919 = vmatprep.subr.bf16.mxu1 %v7692_v53  ;;  %v7708_v53 = vld [vmem:[#allocation6 + $0x7f0] ss:$8 sps:$4 sm:$0xff]   ;;  %v253_v23 = vld [vmem:[#allocation3 + $0x320] sm:$0xff]  ;;  %v7731_v38 = vld [vmem:[#allocation6 + $0x6b4] ss:$8 sps:$4 sm:$0xff]  }
 0x147   :  { %2807 = vmatpush1.bf16.msra.mxu0 %v7687_v5  ;;  %v7713_v5 = vld [vmem:[#allocation6 + $0x6e4] ss:$8 sps:$4 sm:$0xff]   ;;  %v7726_v58 = vld [vmem:[#allocation6 + $0x7c0] ss:$8 sps:$4 sm:$0xff]  }
 0x148   :  { %2808 = vmatprep.subr.bf16.mxu0 %v7695_v59  ;;  %v225_v59 = vld [vmem:[#allocation3 + $0x240] sm:$0xff] }
 0x149   :  { %2920 = vmatpush1.bf16.msra.mxu1 %v7690_v47  ;;  %v250_v47 = vld [vmem:[#allocation3 + $0x308] sm:$0xff] }
 0x14a   :  { %2633 = vmatmul.mubr.bf16.gmra.mxu0 %v320_v39  ;;  %2921 = vmatprep.subr.bf16.mxu1 %v7698_v10  ;;  %v344_v39 = vpack.c.bf16 %v229_v25, %v225_v59  ;;  %v357_v10 = vpack.c.bf16 %v254_v28, %v250_v47  ;;  %v7737_v24 = vld [vmem:[#allocation6 + $0x6a4] ss:$8 sps:$4 sm:$0xff]   ;;  %v263_v59 = vld [vmem:[#allocation3 + $0x370] sm:$0xff]  ;;  %v668_v25 = vlaneseq }
 0x14b   :  { %2809 = vmatpush1.bf16.msra.mxu0 %v7693_v41  ;;  %2642 = vmatprep.mubr.bf16.mxu0 %v333_v33  ;;  %v7717_v41 = vld [vmem:[#allocation6 + $0x6d0] ss:$8 sps:$4 sm:$0xff]   ;;  %v7749_v28 = vld [vmem:[#allocation6 + $0x684] ss:$8 sps:$4 sm:$0xff]  }
 0x14c   :  { %2746 = vmatmul.mubr.bf16.gmra.mxu1 %v322_v27  ;;  %2810 = vmatprep.subr.bf16.mxu0 %v7701_v46  ;;  %v7720_v33 = vld [vmem:[#allocation6 + $0x7d0] ss:$8 sps:$4 sm:$0xff]   ;;  %v7725_v27 = vld [vmem:[#allocation6 + $0x6c4] ss:$8 sps:$4 sm:$0xff]  }
 0x14d   :  { %2922 = vmatpush1.bf16.msra.mxu1 %v7696_v62  ;;  %2755 = vmatprep.mubr.bf16.mxu1 %v335_v54  ;;  %v346_v62 = vpack.c.bf16 %v231_v29, %v8976_v2  ;;  %v7728_v46 = vld [vmem:[#allocation6 + $0x7c4] ss:$8 sps:$4 sm:$0xff]   ;;  %v359_v54 = vpack.c.bf16 %v8995_v15, %v8981_v11  ;;  %v7734_v2 = vld [vmem:[#allocation6 + $0x7b4] ss:$8 sps:$4 sm:$0xff]   ;;  %v7732_v11 = vld [vmem:[#allocation6 + $0x7b0] ss:$8 sps:$4 sm:$0xff]  }
 0x14e   :  { %2923 = vmatprep.subr.bf16.mxu1 %v7704_v63  ;;  %v249_v63 = vld [vmem:[#allocation3 + $0x300] sm:$0xff]  ;;  %v7744_v47 = vld [vmem:[#allocation6 + $0x790] ss:$8 sps:$4 sm:$0xff]  }
 0x14f   :  { %2811 = vmatpush1.bf16.msra.mxu0 %v7699_v45  ;;  %v7723_v45 = vld [vmem:[#allocation6 + $0x6c0] ss:$8 sps:$4 sm:$0xff]   ;;  %v7752_v29 = vld [vmem:[#allocation6 + $0x784] ss:$8 sps:$4 sm:$0xff]  }
 0x150   :  { %2812 = vmatprep.subr.bf16.mxu0 %v7707_v16  ;;  %v258_v16 = vld [vmem:[#allocation3 + $0x348] sm:$0xff] }
 0x151   :  { %2924 = vmatpush1.bf16.msra.mxu1 %v7702_v35  ;;  %v264_v35 = vld [vmem:[#allocation3 + $0x378] sm:$0xff]  ;;  %v369_v15 = vpack.c.bf16 %v262_v26, %v258_v16 }
 0x152   :  { %2643 = vmatmul.mubr.bf16.gmra.mxu0 %v332_v51  ;;  %2925 = vmatprep.subr.bf16.mxu1 %v7710_v20  ;;  %v7729_v51 = vld [vmem:[#allocation6 + $0x6b0] ss:$8 sps:$4 sm:$0xff]   ;;  %v356_v20 = vpack.c.bf16 %v253_v23, %v249_v63  ;;  %v7761_v23 = vld [vmem:[#allocation6 + $0x854] ss:$8 sps:$4 sm:$0xff]  }
 0x153   :  { %2813 = vmatpush2.bf16.msra.mxu0 %v7705_v52  ;;  %2652 = vmatprep.mubr.bf16.mxu0 %v345_v17  ;;  %v358_v52 = vpack.c.bf16 %v9012_v3, %v8993_v44  ;;  %v7740_v17 = vld [vmem:[#allocation6 + $0x7a4] ss:$8 sps:$4 sm:$0xff]   ;;  %v7746_v3 = vld [vmem:[#allocation6 + $0x794] ss:$8 sps:$4 sm:$0xff]  }
 0x154   :  { %2756 = vmatmul.mubr.bf16.gmra.mxu1 %v334_v57  ;;  %2814 = vmatprep.subr.bf16.mxu0 %v7713_v5  ;;  %v7735_v57 = vld [vmem:[#allocation6 + $0x6a0] ss:$8 sps:$4 sm:$0xff]  }
 0x155   :  { %2926 = vmatpush2.bf16.msra.mxu1 %v7708_v53  ;;  %2765 = vmatprep.mubr.bf16.mxu1 %v347_v4  ;;  %v257_v5 = vld [vmem:[#allocation3 + $0x340] sm:$0xff]  ;;  %v371_v4 = vpack.c.bf16 %v264_v35, %v9001_v7  ;;  %v669_v7 = vshrl.u32 %v668_v25, 7 }
 0x156   :  { %2927 = vmatprep.subr.bf16.mxu1 %v7716_v14  ;;  %v261_v53 = vld [vmem:[#allocation3 + $0x360] sm:$0xff] }
 0x157   :  { %2815 = vmatpush2.bf16.msra.mxu0 %v7711_v61  ;;  %v7743_v61 = vld [vmem:[#allocation6 + $0x694] ss:$8 sps:$4 sm:$0xff]   ;;  %v7738_v14 = vld [vmem:[#allocation6 + $0x7a0] ss:$8 sps:$4 sm:$0xff]   ;;  %v368_v44 = vpack.c.bf16 %v261_v53, %v257_v5  ;;  %v7764_v35 = vld [vmem:[#allocation6 + $0x844] ss:$8 sps:$4 sm:$0xff]  }
 0x158   :  { %2816 = vmatprep.subr.bf16.mxu0 %v7719_v32  ;;  %v7741_v32 = vld [vmem:[#allocation6 + $0x690] ss:$8 sps:$4 sm:$0xff]  }
 0x159   :  { %2928 = vmatpush2.bf16.msra.mxu1 %v7714_v30  ;;  %v370_v30 = vpack.c.bf16 %v263_v59, %v9014_v48  ;;  %v9050_v48 = vsub.s32 1, %v669_v7  ;;  %v7765_v59 = vld [vmem:[#allocation6 + $0x830] ss:$8 sps:$4 sm:$0xff]  }
 0x15a   :  { %2653 = vmatmul.mubr.bf16.gmra.mxu0 %v344_v39  ;;  %2929 = vmatprep.subr.bf16.mxu1 %v7722_v1  ;;  %v7747_v39 = vld [vmem:[#allocation6 + $0x680] ss:$8 sps:$4 sm:$0xff]  }
 0x15b   :  { %2817 = vmatpush2.bf16.msra.mxu0 %v7717_v41  ;;  %2662 = vmatprep.mubr.bf16.mxu0 %v357_v10  ;;  %v666_v1 = vld [vmem:[#allocation8] sm:$0x3]  ;;  %v7755_v41 = vld [vmem:[#allocation6 + $0x874] ss:$8 sps:$4 sm:$0xff]   ;;  %10120 = vst [vmem:[#allocation40_spill] sm:$0xff] %v9050_v48 }
 0x15c   :  { %2766 = vmatmul.mubr.bf16.gmra.mxu1 %v346_v62  ;;  %2818 = vmatprep.subr.bf16.mxu0 %v7725_v27  ;;  %v7750_v10 = vld [vmem:[#allocation6 + $0x780] ss:$8 sps:$4 sm:$0xff]   ;;  %v9047_v62 = vsub.s32 0, %v669_v7  ;;  %v7758_v27 = vld [vmem:[#allocation6 + $0x864] ss:$8 sps:$4 sm:$0xff]  }
 0x15d   :  { %2930 = vmatpush2.bf16.msra.mxu1 %v7720_v33  ;;  %2775 = vmatprep.mubr.bf16.mxu1 %v359_v54  ;;  %v7753_v33 = vld [vmem:[#allocation6 + $0x870] ss:$8 sps:$4 sm:$0xff]   ;;  %v7768_v7 = vld [vmem:[#allocation6 + $0x820] ss:$8 sps:$4 sm:$0xff]  }
 0x15e   :  { %2931 = vmatprep.subr.bf16.mxu1 %v7728_v46  ;;  %10119 = vst [vmem:[#allocation39_spill] sm:$0xff] %v9047_v62  ;;  %v9053_v46 = vrot.slane %v666_v1, %v9047_v62  ;;  %v10134_v62 = vld [vmem:[#allocation36_spill] sm:$0xff] }
 0x15f   :  { %2819 = vmatpush2.bf16.msra.mxu0 %v7723_v45  ;;  %v7756_v45 = vld [vmem:[#allocation6 + $0x860] ss:$8 sps:$4 sm:$0xff]  }
 0x160   :  { %2820 = vmatprep.subr.bf16.mxu0 %v7731_v38 }
 0x161   :  { %2932 = vmatpush2.bf16.msra.mxu1 %v7726_v58  ;;  %v7759_v58 = vld [vmem:[#allocation6 + $0x850] ss:$8 sps:$4 sm:$0xff]  }
 0x162   :  { %2663 = vmatmul.mubr.bf16.gmra.mxu0 %v356_v20  ;;  %2933 = vmatprep.subr.bf16.mxu1 %v7734_v2 }
 0x163   :  { %2821 = vmatpush2.bf16.msra.mxu0 %v7729_v51  ;;  %2672 = vmatprep.mubr.bf16.mxu0 %v369_v15  ;;  %v7762_v15 = vld [vmem:[#allocation6 + $0x840] ss:$8 sps:$4 sm:$0xff]  }
 0x164   :  { %2776 = vmatmul.mubr.bf16.gmra.mxu1 %v358_v52  ;;  %2822 = vmatprep.subr.bf16.mxu0 %v7737_v24 }
 0x165   :  { %2934 = vmatpush2.bf16.msra.mxu1 %v7732_v11  ;;  %2785 = vmatprep.mubr.bf16.mxu1 %v371_v4 }
 0x166   :  { %2935 = vmatprep.subr.bf16.mxu1 %v7740_v17 }
 0x167   :  { %2823 = vmatpush2.bf16.msra.mxu0 %v7735_v57 }
 0x168   :  { %2824 = vmatprep.subr.bf16.mxu0 %v7743_v61 }
 0x169   :  { %2936 = vmatpush2.bf16.msra.mxu1 %v7738_v14 }
 0x16a   :  { %2673 = vmatmul.mubr.bf16.gmra.mxu0 %v368_v44  ;;  %2937 = vmatprep.subr.bf16.mxu1 %v7746_v3 }
 0x16b   :  { %2825 = vmatpush2.bf16.msra.mxu0 %v7741_v32  ;;  %2828 = vmatprep.mubr.bf16.mxu0 %v8754_v18  ;;  %v9056_v18 = vrot.slane %v666_v1, %v9050_v48  ;;  %v7770_v32 = vld [vmem:[#allocation6 + $0x824] ss:$8 sps:$4 sm:$0xff]   ;;  %v10132_v48 = vld [vmem:[#allocation34_spill] sm:$0xff] }
 0x16c   :  { %2786 = vmatmul.mubr.bf16.gmra.mxu1 %v370_v30  ;;  %2826 = vmatprep.subr.bf16.mxu0 %v7749_v28 }
 0x16d   :  { %2938 = vmatpush2.bf16.msra.mxu1 %v7744_v47  ;;  %2941 = vmatprep.mubr.bf16.mxu1 %v8756_v21 }
 0x16e   :  { %2939 = vmatprep.subr.bf16.mxu1 %v7752_v29 }
 0x16f   :  { %2827 = vmatpush2.bf16.msra.mxu0 %v7747_v39 }
 0x170   :  { %3022 = vmatprep.subr.bf16.mxu0 %v7755_v41 }
 0x171   :  { %2940 = vmatpush2.bf16.msra.mxu1 %v7750_v10 }
 0x172   :  { %v2152_v63 = vpop.f32.mrf.mxu0  ;;  %2829 = vmatmul.mubr.bf16.vlgmr.msra.gmra.mxu0 %v8770_v31  ;;  %v2265_v38 = vpop.f32.mrf.mxu1 }
 0x173   :  { %v2153_v21 = vadd.f32 %v2152_v63, %v9053_v46  ;;  %3023 = vmatpush1.bf16.msra.mxu0 %v7753_v33  ;;  %2838 = vmatprep.mubr.bf16.mxu0 %v8774_v36 }
 0x174   :  { %v2154_v54 = vpop.f32.mrf.mxu0  ;;  %2942 = vmatmul.mubr.bf16.vlgmr.msra.gmra.mxu1 %v8776_v37  ;;  %3024 = vmatprep.subr.bf16.mxu0 %v7758_v27  ;;  %v2267_v31 = vpop.f32.mrf.mxu1 }
 0x175   :  { %v2155_v16 = vadd.f32 %v2154_v54, %v9056_v18  ;;  %v9063_v26 = vadd.f32 %v2265_v38, %v2153_v21  ;;  %2951 = vmatprep.mubr.bf16.mxu1 %v8778_v40  ;;  %v7767_v40 = vld [vmem:[#allocation6 + $0x834] ss:$8 sps:$4 sm:$0xff]  }
 0x176   :  { %v2156_v2 = vpop.f32.mrf.mxu0  ;;  %v2269_v24 = vpop.f32.mrf.mxu1 }
 0x177   :  { %v2157_v51 = vadd.f32 %v2156_v2, %v9053_v46  ;;  %v9067_v20 = vadd.f32 %v2267_v31, %v2155_v16  ;;  %3025 = vmatpush1.bf16.msra.mxu0 %v7756_v45  ;;  %v7771_v45 = vld [vmem:[#allocation6 + $0x810] ss:$8 sps:$4 sm:$0xff]  }
 0x178   :  { %v2158_v36 = vpop.f32.mrf.mxu0  ;;  %3026 = vmatprep.subr.bf16.mxu0 %v7761_v23  ;;  %v2271_v17 = vpop.f32.mrf.mxu1  ;;  %v7776_v23 = vld [vmem:[#allocation6 + $0x804] ss:$8 sps:$4 sm:$0xff]  }
 0x179   :  { %v2159_v37 = vadd.f32 %v2158_v36, %v9056_v18  ;;  %v9070_v11 = vadd.f32 %v2269_v24, %v2157_v51 }
 0x17a   :  { %v2162_v52 = vpop.f32.mrf.mxu0  ;;  %2839 = vmatmul.mubr.bf16.gmra.mxu0 %v8792_v50  ;;  %v2275_v4 = vpop.f32.mrf.mxu1 }
 0x17b   :  { %v2163_v57 = vadd.f32 %v2162_v52, %v9053_v46  ;;  %v9074_v5 = vadd.f32 %v2271_v17, %v2159_v37  ;;  %3027 = vmatpush1.bf16.msra.mxu0 %v7759_v58  ;;  %2848 = vmatprep.mubr.bf16.mxu0 %v8796_v55  ;;  %v7774_v58 = vld [vmem:[#allocation6 + $0x800] ss:$8 sps:$4 sm:$0xff]   ;;  %v7777_v52 = vld [vmem:[#allocation6 + $0x8f0] ss:$8 sps:$4 sm:$0xff]  }
 0x17c   :  { %v2164_v53 = vpop.f32.mrf.mxu0  ;;  %2952 = vmatmul.mubr.bf16.gmra.mxu1 %v8798_v56  ;;  %3028 = vmatprep.subr.bf16.mxu0 %v7764_v35  ;;  %v2277_v25 = vpop.f32.mrf.mxu1 }
 0x17d   :  { %v2165_v61 = vadd.f32 %v2164_v53, %v9056_v18  ;;  %v9079_v14 = vadd.f32 %v2275_v4, %v2163_v57  ;;  %2961 = vmatprep.mubr.bf16.mxu1 %v8800_v60  ;;  %v7773_v60 = vld [vmem:[#allocation6 + $0x814] ss:$8 sps:$4 sm:$0xff]  }
 0x17e   :  { %v2166_v50 = vpop.f32.mrf.mxu0  ;;  %v2279_v47 = vpop.f32.mrf.mxu1 }
 0x17f   :  { %v2167_v44 = vadd.f32 %v2166_v50, %v9053_v46  ;;  %v9083_v3 = vadd.f32 %v2277_v25, %v2165_v61  ;;  %3029 = vmatpush1.bf16.msra.mxu0 %v7762_v15  ;;  %v7803_v50 = vld [vmem:[#allocation9 + $0x74] ss:$8 sps:$4 sm:$0xff]  }
 0x180   :  { %v2168_v55 = vpop.f32.mrf.mxu0  ;;  %3030 = vmatprep.subr.bf16.mxu0 %v7767_v40  ;;  %v2281_v29 = vpop.f32.mrf.mxu1  ;;  %v7782_v40 = vld [vmem:[#allocation6 + $0x8e4] ss:$8 sps:$4 sm:$0xff]   ;;  %4995 = vmatprep.subr.bf16.mxu1 %v7803_v50  ;;  %v10123_v50 = vld [vmem:[#allocation26_spill] sm:$0xff] }
 0x181   :  { %v2169_v56 = vadd.f32 %v2168_v55, %v9056_v18  ;;  %v9086_v28 = vadd.f32 %v2279_v47, %v2167_v44  ;;  %v7801_v44 = vld [vmem:[#allocation9 + $0x70] ss:$8 sps:$4 sm:$0xff]  }
 0x182   :  { %v2172_v30 = vpop.f32.mrf.mxu0  ;;  %2849 = vmatmul.mubr.bf16.gmra.mxu0 %v8814_v6  ;;  %v2285_v10 = vpop.f32.mrf.mxu1  ;;  %4996 = vmatpush1.bf16.msra.mxu1 %v7801_v44 }
 0x183   :  { %v2173_v39 = vadd.f32 %v2172_v30, %v9053_v46  ;;  %v9090_v1 = vadd.f32 %v2281_v29, %v2169_v56  ;;  %3031 = vmatpush1.bf16.msra.mxu0 %v7765_v59  ;;  %2858 = vmatprep.mubr.bf16.mxu0 %v8818_v12  ;;  %v7780_v59 = vld [vmem:[#allocation6 + $0x8e0] ss:$8 sps:$4 sm:$0xff]   ;;  %v9125_v56 = vld [vmem:[#allocation3 + $0x398] sm:$0xff] }
 0x184   :  { %v2174_v41 = vpop.f32.mrf.mxu0  ;;  %2962 = vmatmul.mubr.bf16.gmra.mxu1 %v8820_v13  ;;  %3032 = vmatprep.subr.bf16.mxu0 %v7770_v32  ;;  %v2287_v63 = vpop.f32.mrf.mxu1  ;;  %v266_v29 = vld [vmem:[#allocation3 + $0x388] sm:$0xff] }
 0x185   :  { %v2175_v33 = vadd.f32 %v2174_v41, %v9056_v18  ;;  %v9095_v27 = vadd.f32 %v2285_v10, %v2173_v39  ;;  %2971 = vmatprep.mubr.bf16.mxu1 %v8824_v22  ;;  %v7779_v22 = vld [vmem:[#allocation6 + $0x8f4] ss:$8 sps:$4 sm:$0xff]   ;;  %v7809_v41 = vld [vmem:[#allocation9 + $0x64] ss:$8 sps:$4 sm:$0xff]  }
 0x186   :  { %v2176_v6 = vpop.f32.mrf.mxu0  ;;  %v2289_v38 = vpop.f32.mrf.mxu1  ;;  %4997 = vmatprep.subr.bf16.mxu1 %v7809_v41 }
 0x187   :  { %v2177_v21 = vadd.f32 %v2176_v6, %v9053_v46  ;;  %v9099_v54 = vadd.f32 %v2287_v63, %v2175_v33  ;;  %3033 = vmatpush1.bf16.msra.mxu0 %v7768_v7  ;;  %v10121_v63 = vmov 0.0  }
 0x188   :  { %v2178_v12 = vpop.f32.mrf.mxu0  ;;  %3034 = vmatprep.subr.bf16.mxu0 %v7773_v60  ;;  %v2291_v31 = vpop.f32.mrf.mxu1  ;;  %v270_v60 = vld [vmem:[#allocation3 + $0x3a8] sm:$0xff] }
 0x189   :  { %v2179_v13 = vadd.f32 %v2178_v12, %v9056_v18  ;;  %v9102_v16 = vadd.f32 %v2289_v38, %v2177_v21 }
 0x18a   :  { %v2182_v2 = vpop.f32.mrf.mxu0  ;;  %2859 = vmatmul.mubr.bf16.gmra.mxu0 %v8836_v34  ;;  %v2295_v24 = vpop.f32.mrf.mxu1 }
 0x18b   :  { %v2183_v35 = vadd.f32 %v2182_v2, %v9053_v46  ;;  %v9106_v51 = vadd.f32 %v2291_v31, %v2179_v13  ;;  %3035 = vmatpush1.bf16.msra.mxu0 %v7771_v45  ;;  %2868 = vmatprep.mubr.bf16.mxu0 %v8840_v42  ;;  %v9140_v2 = vld [vmem:[#allocation3 + $0x390] sm:$0xff]  ;;  %v363_v31 = vpack.c.bf16 %v270_v60, %v266_v29  ;;  %v7819_v60 = vld [vmem:[#allocation9 + $0x40] ss:$8 sps:$4 sm:$0xff]  }
 0x18c   :  { %v2184_v36 = vpop.f32.mrf.mxu0  ;;  %2972 = vmatmul.mubr.bf16.gmra.mxu1 %v8842_v43  ;;  %3036 = vmatprep.subr.bf16.mxu0 %v7776_v23  ;;  %v2297_v17 = vpop.f32.mrf.mxu1  ;;  %v361_v23 = vpack.c.bf16 %v9125_v56, %v10121_v63  ;;  %v360_v29 = vpack.c.bf16 %v9140_v2, %v10121_v63 }
 0x18d   :  { %v2185_v37 = vadd.f32 %v2184_v36, %v9056_v18  ;;  %v9111_v15 = vadd.f32 %v2295_v24, %v2183_v35  ;;  %2981 = vmatprep.mubr.bf16.mxu1 %v8844_v49  ;;  %v7785_v49 = vld [vmem:[#allocation6 + $0x8d4] ss:$8 sps:$4 sm:$0xff]  }
 0x18e   :  { %v2186_v34 = vpop.f32.mrf.mxu0  ;;  %v2299_v4 = vpop.f32.mrf.mxu1  ;;  %v10122_v24 = vld [vmem:[#allocation25_spill] sm:$0xff] }
 0x18f   :  { %v2187_v57 = vadd.f32 %v2186_v34, %v9053_v46  ;;  %v9115_v53 = vadd.f32 %v2297_v17, %v2185_v37  ;;  %3037 = vmatpush1.bf16.msra.mxu0 %v7774_v58  ;;  %v7786_v58 = vld [vmem:[#allocation6 + $0x8c0] ss:$8 sps:$4 sm:$0xff]   ;;  %v7791_v37 = vld [vmem:[#allocation6 + $0x8b4] ss:$8 sps:$4 sm:$0xff]  }
 0x190   :  { %v2188_v42 = vpop.f32.mrf.mxu0  ;;  %3038 = vmatprep.subr.bf16.mxu0 %v7779_v22  ;;  %v2301_v32 = vpop.f32.mrf.mxu1  ;;  %v7815_v22 = vld [vmem:[#allocation9 + $0x54] ss:$8 sps:$4 sm:$0xff]   ;;  %v7813_v34 = vld [vmem:[#allocation9 + $0x50] ss:$8 sps:$4 sm:$0xff]  }
 0x191   :  { %v2189_v43 = vadd.f32 %v2188_v42, %v9056_v18  ;;  %v9118_v61 = vadd.f32 %v2299_v4, %v2187_v57  ;;  %v265_v57 = vld [vmem:[#allocation3 + $0x380] sm:$0xff]  ;;  %v9148_v4 = vld [vmem:[#allocation3 + $0x3d8] sm:$0xff] }
 0x192   :  { %v2192_v25 = vpop.f32.mrf.mxu0  ;;  %2869 = vmatmul.mubr.bf16.gmra.mxu0 %v8858_v0  ;;  %v2305_v30 = vpop.f32.mrf.mxu1  ;;  %v269_v42 = vld [vmem:[#allocation3 + $0x3a0] sm:$0xff] }
 0x193   :  { %v2193_v55 = vadd.f32 %v2192_v25, %v9053_v46  ;;  %v9122_v47 = vadd.f32 %v2301_v32, %v2189_v43  ;;  %3039 = vmatpush2.bf16.msra.mxu0 %v7777_v52  ;;  %2878 = vmatprep.mubr.bf16.mxu0 %v8862_v8  ;;  %v7807_v8 = vld [vmem:[#allocation9 + $0x60] ss:$8 sps:$4 sm:$0xff]   ;;  %v9143_v52 = vld [vmem:[#allocation3 + $0x3b8] sm:$0xff] }
 0x194   :  { %v2194_v7 = vpop.f32.mrf.mxu0  ;;  %2982 = vmatmul.mubr.bf16.gmra.mxu1 %v8864_v9  ;;  %3040 = vmatprep.subr.bf16.mxu0 %v7782_v40  ;;  %v2307_v33 = vpop.f32.mrf.mxu1  ;;  %v7783_v9 = vld [vmem:[#allocation6 + $0x8d0] ss:$8 sps:$4 sm:$0xff]   ;;  %v274_v25 = vld [vmem:[#allocation3 + $0x3c8] sm:$0xff] }
 0x195   :  { %v2195_v0 = vadd.f32 %v2194_v7, %v9056_v18  ;;  %v9129_v39 = vadd.f32 %v2305_v30, %v2193_v55  ;;  %2991 = vmatprep.mubr.bf16.mxu1 %v8866_v19  ;;  %v7788_v19 = vld [vmem:[#allocation6 + $0x8c4] ss:$8 sps:$4 sm:$0xff]   ;;  %4998 = vmatpush1.bf16.msra.mxu1 %v7807_v8 }
 0x196   :  { %v2196_v10 = vpop.f32.mrf.mxu0  ;;  %v2309_v12 = vpop.f32.mrf.mxu1  ;;  %v278_v32 = vld [vmem:[#allocation3 + $0x3e8] sm:$0xff]  ;;  %4999 = vmatprep.subr.bf16.mxu1 %v7815_v22  ;;  %v7827_v22 = vld [vmem:[#allocation9 + $0x34] ss:$8 sps:$4 sm:$0xff]  }
 0x197   :  { %v2197_v45 = vadd.f32 %v2196_v10, %v9053_v46  ;;  %v9133_v6 = vadd.f32 %v2307_v33, %v2195_v0  ;;  %3041 = vmatpush2.bf16.msra.mxu0 %v7780_v59  ;;  %v7821_v55 = vld [vmem:[#allocation9 + $0x44] ss:$8 sps:$4 sm:$0xff]   ;;  %v373_v33 = vpack.c.bf16 %v9148_v4, %v9143_v52 }
 0x198   :  { %v2198_v21 = vpop.f32.mrf.mxu0  ;;  %3042 = vmatprep.subr.bf16.mxu0 %v7785_v49  ;;  %v2311_v36 = vpop.f32.mrf.mxu1  ;;  %v7789_v10 = vld [vmem:[#allocation6 + $0x8b0] ss:$8 sps:$4 sm:$0xff]  }
 0x199   :  { %v2199_v38 = vadd.f32 %v2198_v21, %v9056_v18  ;;  %v9138_v13 = vadd.f32 %v2309_v12, %v2197_v45  ;;  %5000 = vmatpush1.bf16.msra.mxu1 %v7813_v34 }
 0x19a   :  { %v2202_v35 = vpop.f32.mrf.mxu0  ;;  %2879 = vmatmul.mubr.bf16.gmra.mxu0 %v10122_v24  ;;  %v2315_v59 = vpop.f32.mrf.mxu1  ;;  %5001 = vmatprep.subr.bf16.mxu1 %v7821_v55  ;;  %v7797_v24 = vld [vmem:[#allocation6 + $0x894] ss:$8 sps:$4 sm:$0xff]  }
 0x19b   :  { %v2203_v17 = vadd.f32 %v2202_v35, %v9053_v46  ;;  %v9146_v40 = vadd.f32 %v2311_v36, %v2199_v38  ;;  %3043 = vmatpush2.bf16.msra.mxu0 %v7783_v9  ;;  %2888 = vmatprep.mubr.bf16.mxu0 %v361_v23  ;;  %v362_v9 = vpack.c.bf16 %v269_v42, %v265_v57  ;;  %v7794_v23 = vld [vmem:[#allocation6 + $0x8a4] ss:$8 sps:$4 sm:$0xff]   ;;  %v9166_v38 = vld [vmem:[#allocation3 + $0x3b0] sm:$0xff] }
 0x19c   :  { %v2204_v43 = vpop.f32.mrf.mxu0  ;;  %2992 = vmatmul.mubr.bf16.gmra.mxu1 %v10123_v50  ;;  %3044 = vmatprep.subr.bf16.mxu0 %v7788_v19  ;;  %v2317_v30 = vpop.f32.mrf.mxu1  ;;  %v7792_v19 = vld [vmem:[#allocation6 + $0x8a0] ss:$8 sps:$4 sm:$0xff]  }
 0x19d   :  { %v2205_v49 = vadd.f32 %v2204_v43, %v9056_v18  ;;  %v9152_v44 = vadd.f32 %v2315_v59, %v2203_v17  ;;  %3001 = vmatprep.mubr.bf16.mxu1 %v363_v31  ;;  %v9168_v31 = vld [vmem:[#allocation3 + $0x3d0] sm:$0xff]  ;;  %5002 = vmatpush1.bf16.msra.mxu1 %v7819_v60  ;;  %v273_v17 = vld [vmem:[#allocation3 + $0x3c0] sm:$0xff] }
 0x19e   :  { %v2206_v7 = vpop.f32.mrf.mxu0  ;;  %v2319_v45 = vpop.f32.mrf.mxu1  ;;  %v277_v43 = vld [vmem:[#allocation3 + $0x3e0] sm:$0xff]  ;;  %5003 = vmatprep.subr.bf16.mxu1 %v7827_v22  ;;  %v372_v55 = vpack.c.bf16 %v9168_v31, %v9166_v38  ;;  %v7795_v60 = vld [vmem:[#allocation6 + $0x890] ss:$8 sps:$4 sm:$0xff]  }
 0x19f   :  { %v2207_v0 = vadd.f32 %v2206_v7, %v9053_v46  ;;  %v9157_v41 = vadd.f32 %v2317_v30, %v2205_v49  ;;  %3045 = vmatpush2.bf16.msra.mxu0 %v7786_v58  ;;  %v375_v58 = vpack.c.bf16 %v278_v32, %v274_v25  ;;  %v7833_v25 = vld [vmem:[#allocation9 + $0x24] ss:$8 sps:$4 sm:$0xff]   ;;  %v7831_v7 = vld [vmem:[#allocation9 + $0x20] ss:$8 sps:$4 sm:$0xff]  }
 0x1a0   :  { %v2208_v8 = vpop.f32.mrf.mxu0  ;;  %3046 = vmatprep.subr.bf16.mxu0 %v7791_v37  ;;  %v9170_v36 = vpop.f32.mrf.mxu1  ;;  %v7825_v37 = vld [vmem:[#allocation9 + $0x30] ss:$8 sps:$4 sm:$0xff]  }
 0x1a1   :  { %v9162_v21 = vadd.f32 %v2208_v8, %v9056_v18  ;;  %v9164_v12 = vadd.f32 %v2319_v45, %v2207_v0  ;;  %5004 = vmatpush1.bf16.msra.mxu1 %v7825_v37  ;;  %v7800_v8 = vld [vmem:[#allocation6 + $0x884] ss:$8 sps:$4 sm:$0xff]   ;;  %v7798_v37 = vld [vmem:[#allocation6 + $0x880] ss:$8 sps:$4 sm:$0xff]  }
 0x1a2   :  { %v2212_v35 = vpop.f32.mrf.mxu0  ;;  %2889 = vmatmul.mubr.bf16.gmra.mxu0 %v360_v29  ;;  %v2325_v42 = vpop.f32.mrf.mxu1  ;;  %5005 = vmatprep.subr.bf16.mxu1 %v7833_v25  ;;  %v10125_v25 = vmov 0.0|0.0  }
 0x1a3   :  { %v2213_v34 = vadd.f32 %v2212_v35, %v9053_v46  ;;  %3047 = vmatpush2.bf16.msra.mxu0 %v7789_v10  ;;  %2898 = vmatprep.mubr.bf16.mxu0 %v373_v33  ;;  %v374_v33 = vpack.c.bf16 %v277_v43, %v273_v17  ;;  %v7837_v35 = vld [vmem:[#allocation9 + $0x10] ss:$8 sps:$4 sm:$0xff]  }
 0x1a4   :  { %v2214_v57 = vpop.f32.mrf.mxu0  ;;  %3002 = vmatmul.mubr.bf16.gmra.mxu1 %v362_v9  ;;  %3048 = vmatprep.subr.bf16.mxu0 %v7794_v23  ;;  %v2327_v49 = vpop.f32.mrf.mxu1  ;;  %v7839_v23 = vld [vmem:[#allocation9 + $0x14] ss:$8 sps:$4 sm:$0xff]  }
 0x1a5   :  { %v2215_v59 = vadd.f32 %v2214_v57, %v9056_v18  ;;  %v9174_v50 = vadd.f32 %v2325_v42, %v2213_v34  ;;  %3011 = vmatprep.mubr.bf16.mxu1 %v375_v58  ;;  %5006 = vmatpush1.bf16.msra.mxu1 %v7831_v7  ;;  %v10124_v34 = vld [vmem:[#allocation27_spill] sm:$0xff]  ;;  %v7806_v57 = vld [vmem:[#allocation9 + $0x174] ss:$8 sps:$4 sm:$0xff]  }
 0x1a6   :  { %v2216_v32 = vpop.f32.mrf.mxu0  ;;  %v2329_v10 = vpop.f32.mrf.mxu1  ;;  %5007 = vmatprep.subr.bf16.mxu1 %v7839_v23 }
 0x1a7   :  { %v2217_v30 = vadd.f32 %v2216_v32, %v9053_v46  ;;  %v9179_v29 = vadd.f32 %v2327_v49, %v2215_v59  ;;  %3049 = vmatpush2.bf16.msra.mxu0 %v7792_v19  ;;  %v7845_v59 = vld [vmem:[#allocation9 + $0x4] ss:$8 sps:$4 sm:$0xff]  }
 0x1a8   :  { %v2218_v0 = vpop.f32.mrf.mxu0  ;;  %3050 = vmatprep.subr.bf16.mxu0 %v7797_v24  ;;  %v9186_v22 = vpop.f32.mrf.mxu1 }
 0x1a9   :  { %v9182_v45 = vadd.f32 %v2218_v0, %v9056_v18  ;;  %v9184_v9 = vadd.f32 %v2329_v10, %v2217_v30  ;;  %5008 = vmatpush1.bf16.msra.mxu1 %v7837_v35 }
 0x1aa   :  { %v2222_v58 = vpop.f32.mrf.mxu0  ;;  %2899 = vmatmul.mubr.bf16.gmra.mxu0 %v372_v55  ;;  %v2335_v17 = vpop.f32.mrf.mxu1  ;;  %v7843_v55 = vld [vmem:[#allocation9] ss:$8 sps:$4 sm:$0xff]   ;;  %5009 = vmatprep.subr.bf16.mxu1 %v7845_v59 }
 0x1ab   :  { %v2223_v19 = vadd.f32 %v2222_v58, %v9053_v46  ;;  %3051 = vmatpush2.bf16.msra.mxu0 %v7795_v60  ;;  %3054 = vmatprep.mubr.bf16.mxu0 %v10124_v34  ;;  %v7804_v60 = vld [vmem:[#allocation9 + $0x170] ss:$8 sps:$4 sm:$0xff]   ;;  %v7851_v58 = vld [vmem:[#allocation9 + $0xf4] ss:$8 sps:$4 sm:$0xff]   ;;  %v10126_v34 = vld [vmem:[#allocation28_spill] sm:$0xff] }
 0x1ac   :  { %v2224_v24 = vpop.f32.mrf.mxu0  ;;  %3012 = vmatmul.mubr.bf16.gmra.mxu1 %v374_v33  ;;  %3052 = vmatprep.subr.bf16.mxu0 %v7800_v8  ;;  %v2337_v49 = vpop.f32.mrf.mxu1  ;;  %v7812_v33 = vld [vmem:[#allocation9 + $0x164] ss:$8 sps:$4 sm:$0xff]  }
 0x1ad   :  { %v2225_v42 = vadd.f32 %v2224_v24, %v9056_v18  ;;  %v9191_v43 = vadd.f32 %v2335_v17, %v2223_v19  ;;  %5027 = vmatprep.mubr.bf16.mxu1 %v10125_v25  ;;  %5010 = vmatpush1.bf16.msra.mxu1 %v7843_v55  ;;  %v10127_v24 = vld [vmem:[#allocation29_spill] sm:$0xff]  ;;  %v7810_v17 = vld [vmem:[#allocation9 + $0x160] ss:$8 sps:$4 sm:$0xff]  }
 0x1ae   :  { %v2226_v32 = vpop.f32.mrf.mxu0  ;;  %v2339_v10 = vpop.f32.mrf.mxu1  ;;  %5011 = vmatprep.subr.bf16.mxu1 %v7851_v58  ;;  %v7855_v55 = vld [vmem:[#allocation9 + $0xe0] ss:$8 sps:$4 sm:$0xff]   ;;  %v7824_v58 = vld [vmem:[#allocation9 + $0x144] ss:$8 sps:$4 sm:$0xff]  }
 0x1af   :  { %v2227_v7 = vadd.f32 %v2226_v32, %v9053_v46  ;;  %v9195_v30 = vadd.f32 %v2337_v49, %v2225_v42  ;;  %3053 = vmatpush2.bf16.msra.mxu0 %v7798_v37  ;;  %v7849_v46 = vld [vmem:[#allocation9 + $0xf0] ss:$8 sps:$4 sm:$0xff]   ;;  %v7857_v49 = vld [vmem:[#allocation9 + $0xe4] ss:$8 sps:$4 sm:$0xff]  }
 0x1b0   :  { %v2228_v0 = vpop.f32.mrf.mxu0  ;;  %5048 = vmatprep.subr.bf16.mxu0 %v7806_v57  ;;  %v9202_v19 = vpop.f32.mrf.mxu1 }
 0x1b1   :  { %v9198_v8 = vadd.f32 %v2228_v0, %v9056_v18  ;;  %v9200_v23 = vadd.f32 %v2339_v10, %v2227_v7  ;;  %v7818_v18 = vld [vmem:[#allocation9 + $0x154] ss:$8 sps:$4 sm:$0xff]   ;;  %5012 = vmatpush2.bf16.msra.mxu1 %v7849_v46 }
 0x1b2   :  { %v2378_v35 = vpop.f32.mrf.mxu0  ;;  %3055 = vmatmul.mubr.bf16.vlgmr.msra.gmra.mxu0 %v10126_v34  ;;  %5013 = vmatprep.subr.bf16.mxu1 %v7857_v49 }
 0x1b3   :  { %v2379_v37 = vadd.f32 %v2378_v35, %v9063_v26  ;;  %3064 = vmatprep.mubr.bf16.mxu0 %v10127_v24  ;;  %5049 = vmatpush1.bf16.msra.mxu0 %v7804_v60  ;;  %v7816_v60 = vld [vmem:[#allocation9 + $0x150] ss:$8 sps:$4 sm:$0xff]  }
 0x1b4   :  { %v2380_v57 = vpop.f32.mrf.mxu0  ;;  %v2491_v42 = vpop.f32.mrf.mxu1  ;;  %5050 = vmatprep.subr.bf16.mxu0 %v7812_v33 }
 0x1b5   :  { %v2381_v59 = vadd.f32 %v2380_v57, %v9067_v20  ;;  %v9208_v32 = vadd.f32 %v2491_v42, %v2379_v37  ;;  %v7863_v37 = vld [vmem:[#allocation9 + $0xd4] ss:$8 sps:$4 sm:$0xff]   ;;  %5014 = vmatpush2.bf16.msra.mxu1 %v7855_v55  ;;  %v10129_v42 = vld [vmem:[#allocation31_spill] sm:$0xff] }
 0x1b6   :  { %v2382_v7 = vpop.f32.mrf.mxu0  ;;  %v2493_v0 = vpop.f32.mrf.mxu1  ;;  %v10128_v57 = vld [vmem:[#allocation30_spill] sm:$0xff]  ;;  %5015 = vmatprep.subr.bf16.mxu1 %v7863_v37  ;;  %v7867_v55 = vld [vmem:[#allocation9 + $0xc0] ss:$8 sps:$4 sm:$0xff]   ;;  %v7836_v37 = vld [vmem:[#allocation9 + $0x124] ss:$8 sps:$4 sm:$0xff]  }
 0x1b7   :  { %v2383_v26 = vadd.f32 %v2382_v7, %v9070_v11  ;;  %v9211_v10 = vadd.f32 %v2493_v0, %v2381_v59  ;;  %5051 = vmatpush1.bf16.msra.mxu0 %v7810_v17  ;;  %v7861_v11 = vld [vmem:[#allocation9 + $0xd0] ss:$8 sps:$4 sm:$0xff]  }
 0x1b8   :  { %v2384_v35 = vpop.f32.mrf.mxu0  ;;  %v2495_v33 = vpop.f32.mrf.mxu1  ;;  %5052 = vmatprep.subr.bf16.mxu0 %v7818_v18  ;;  %v7822_v18 = vld [vmem:[#allocation9 + $0x140] ss:$8 sps:$4 sm:$0xff]  }
 0x1b9   :  { %v9214_v20 = vadd.f32 %v2384_v35, %v9074_v5  ;;  %v9216_v34 = vadd.f32 %v2495_v33, %v2383_v26  ;;  %v7830_v5 = vld [vmem:[#allocation9 + $0x134] ss:$8 sps:$4 sm:$0xff]   ;;  %v7869_v26 = vld [vmem:[#allocation9 + $0xc4] ss:$8 sps:$4 sm:$0xff]   ;;  %5016 = vmatpush2.bf16.msra.mxu1 %v7861_v11 }
 0x1ba   :  { %v2388_v24 = vpop.f32.mrf.mxu0  ;;  %v9218_v46 = vpop.f32.mrf.mxu1  ;;  %3065 = vmatmul.mubr.bf16.gmra.mxu0 %v10128_v57  ;;  %5017 = vmatprep.subr.bf16.mxu1 %v7869_v26 }
 0x1bb   :  { %v2389_v17 = vadd.f32 %v2388_v24, %v9079_v14  ;;  %3074 = vmatprep.mubr.bf16.mxu0 %v10129_v42  ;;  %5053 = vmatpush1.bf16.msra.mxu0 %v7816_v60  ;;  %v7828_v60 = vld [vmem:[#allocation9 + $0x130] ss:$8 sps:$4 sm:$0xff]   ;;  %v7875_v42 = vld [vmem:[#allocation9 + $0xb4] ss:$8 sps:$4 sm:$0xff]  }
 0x1bc   :  { %v2390_v59 = vpop.f32.mrf.mxu0  ;;  %v2501_v49 = vpop.f32.mrf.mxu1  ;;  %5054 = vmatprep.subr.bf16.mxu0 %v7824_v58 }
 0x1bd   :  { %v2391_v7 = vadd.f32 %v2390_v59, %v9083_v3  ;;  %v9224_v0 = vadd.f32 %v2501_v49, %v2389_v17  ;;  %v10130_v49 = vld [vmem:[#allocation32_spill] sm:$0xff]  ;;  %5018 = vmatpush2.bf16.msra.mxu1 %v7867_v55 }
 0x1be   :  { %v2392_v35 = vpop.f32.mrf.mxu0  ;;  %v2503_v33 = vpop.f32.mrf.mxu1  ;;  %5019 = vmatprep.subr.bf16.mxu1 %v7875_v42  ;;  %v7879_v55 = vld [vmem:[#allocation9 + $0xa0] ss:$8 sps:$4 sm:$0xff]   ;;  %v7848_v42 = vld [vmem:[#allocation9 + $0x104] ss:$8 sps:$4 sm:$0xff]  }
 0x1bf   :  { %v2393_v14 = vadd.f32 %v2392_v35, %v9086_v28  ;;  %v9227_v24 = vadd.f32 %v2503_v33, %v2391_v7  ;;  %5055 = vmatpush1.bf16.msra.mxu0 %v7822_v18  ;;  %v7873_v28 = vld [vmem:[#allocation9 + $0xb0] ss:$8 sps:$4 sm:$0xff]  }
 0x1c0   :  { %v2394_v57 = vpop.f32.mrf.mxu0  ;;  %v2505_v58 = vpop.f32.mrf.mxu1  ;;  %5056 = vmatprep.subr.bf16.mxu0 %v7830_v5  ;;  %v10131_v7 = vld [vmem:[#allocation33_spill] sm:$0xff]  ;;  %v7834_v5 = vld [vmem:[#allocation9 + $0x120] ss:$8 sps:$4 sm:$0xff]  }
 0x1c1   :  { %v9230_v3 = vadd.f32 %v2394_v57, %v9090_v1  ;;  %v9232_v17 = vadd.f32 %v2505_v58, %v2393_v14  ;;  %v7842_v1 = vld [vmem:[#allocation9 + $0x114] ss:$8 sps:$4 sm:$0xff]   ;;  %v7881_v57 = vld [vmem:[#allocation9 + $0xa4] ss:$8 sps:$4 sm:$0xff]   ;;  %5020 = vmatpush2.bf16.msra.mxu1 %v7873_v28 }
 0x1c2   :  { %v2398_v59 = vpop.f32.mrf.mxu0  ;;  %v9234_v11 = vpop.f32.mrf.mxu1  ;;  %3075 = vmatmul.mubr.bf16.gmra.mxu0 %v10130_v49  ;;  %5021 = vmatprep.subr.bf16.mxu1 %v7881_v57 }
 0x1c3   :  { %v2399_v18 = vadd.f32 %v2398_v59, %v9095_v27  ;;  %3084 = vmatprep.mubr.bf16.mxu0 %v10131_v7  ;;  %5057 = vmatpush1.bf16.msra.mxu0 %v7828_v60  ;;  %v7840_v60 = vld [vmem:[#allocation9 + $0x110] ss:$8 sps:$4 sm:$0xff]  }
 0x1c4   :  { %v2400_v26 = vpop.f32.mrf.mxu0  ;;  %v2511_v35 = vpop.f32.mrf.mxu1  ;;  %5058 = vmatprep.subr.bf16.mxu0 %v7836_v37 }
 0x1c5   :  { %v2401_v33 = vadd.f32 %v2400_v26, %v9099_v54  ;;  %v9240_v14 = vadd.f32 %v2511_v35, %v2399_v18  ;;  %v7887_v26 = vld [vmem:[#allocation9 + $0x94] ss:$8 sps:$4 sm:$0xff]   ;;  %5022 = vmatpush2.bf16.msra.mxu1 %v7879_v55  ;;  %v7891_v55 = vld [vmem:[#allocation9 + $0x80] ss:$8 sps:$4 sm:$0xff]  }
 0x1c6   :  { %v2402_v58 = vpop.f32.mrf.mxu0  ;;  %v2513_v49 = vpop.f32.mrf.mxu1  ;;  %5023 = vmatprep.subr.bf16.mxu1 %v7887_v26  ;;  %v7860_v26 = vld [vmem:[#allocation9 + $0x1e4] ss:$8 sps:$4 sm:$0xff]  }
 0x1c7   :  { %v2403_v27 = vadd.f32 %v2402_v58, %v9102_v16  ;;  %v9243_v59 = vadd.f32 %v2513_v49, %v2401_v33  ;;  %5059 = vmatpush1.bf16.msra.mxu0 %v7834_v5  ;;  %v7885_v16 = vld [vmem:[#allocation9 + $0x90] ss:$8 sps:$4 sm:$0xff]   ;;  %v10133_v33 = vld [vmem:[#allocation35_spill] sm:$0xff] }
 0x1c8   :  { %v2404_v7 = vpop.f32.mrf.mxu0  ;;  %v2515_v37 = vpop.f32.mrf.mxu1  ;;  %5060 = vmatprep.subr.bf16.mxu0 %v7842_v1  ;;  %v7846_v1 = vld [vmem:[#allocation9 + $0x100] ss:$8 sps:$4 sm:$0xff]  }
 0x1c9   :  { %v9246_v54 = vadd.f32 %v2404_v7, %v9106_v51  ;;  %v9248_v18 = vadd.f32 %v2515_v37, %v2403_v27  ;;  %v7854_v51 = vld [vmem:[#allocation9 + $0x1f4] ss:$8 sps:$4 sm:$0xff]   ;;  %v7893_v7 = vld [vmem:[#allocation9 + $0x84] ss:$8 sps:$4 sm:$0xff]   ;;  %5024 = vmatpush2.bf16.msra.mxu1 %v7885_v16 }
 0x1ca   :  { %v2408_v35 = vpop.f32.mrf.mxu0  ;;  %v9250_v28 = vpop.f32.mrf.mxu1  ;;  %3085 = vmatmul.mubr.bf16.gmra.mxu0 %v10132_v48  ;;  %5025 = vmatprep.subr.bf16.mxu1 %v7893_v7 }
 0x1cb   :  { %v2409_v5 = vadd.f32 %v2408_v35, %v9111_v15  ;;  %3094 = vmatprep.mubr.bf16.mxu0 %v10133_v33  ;;  %5061 = vmatpush1.bf16.msra.mxu0 %v7840_v60  ;;  %v7852_v60 = vld [vmem:[#allocation9 + $0x1f0] ss:$8 sps:$4 sm:$0xff]  }
 0x1cc   :  { %v2410_v57 = vpop.f32.mrf.mxu0  ;;  %v2521_v58 = vpop.f32.mrf.mxu1  ;;  %5062 = vmatprep.subr.bf16.mxu0 %v7848_v42 }
 0x1cd   :  { %v2411_v49 = vadd.f32 %v2410_v57, %v9115_v53  ;;  %v9256_v27 = vadd.f32 %v2521_v58, %v2409_v5  ;;  %v7858_v57 = vld [vmem:[#allocation9 + $0x1e0] ss:$8 sps:$4 sm:$0xff]   ;;  %5026 = vmatpush2.bf16.msra.mxu1 %v7891_v55 }
 0x1ce   :  { %v2412_v37 = vpop.f32.mrf.mxu0  ;;  %v2523_v48 = vpop.f32.mrf.mxu1 }
 0x1cf   :  { %v2413_v15 = vadd.f32 %v2412_v37, %v9118_v61  ;;  %v9259_v35 = vadd.f32 %v2523_v48, %v2411_v49  ;;  %5063 = vmatpush1.bf16.msra.mxu0 %v7846_v1  ;;  %v7866_v61 = vld [vmem:[#allocation9 + $0x1d4] ss:$8 sps:$4 sm:$0xff]   ;;  %v7864_v48 = vld [vmem:[#allocation9 + $0x1d0] ss:$8 sps:$4 sm:$0xff]  }
 0x1d0   :  { %v2414_v33 = vpop.f32.mrf.mxu0  ;;  %v2525_v42 = vpop.f32.mrf.mxu1  ;;  %5064 = vmatprep.subr.bf16.mxu0 %v7854_v51  ;;  %v10135_v49 = vld [vmem:[#allocation37_spill] sm:$0xff]  ;;  %5028 = vmatmul.mubr.bf16.vlgmr.msra.gmra.mxu1 %v10125_v25 }
 0x1d1   :  { %v9262_v53 = vadd.f32 %v2414_v33, %v9122_v47  ;;  %v9264_v5 = vadd.f32 %v2525_v42, %v2413_v15  ;;  %v7899_v42 = vld [vmem:[#allocation9 + $0x274] ss:$8 sps:$4 sm:$0xff]  }
 0x1d2   :  { %v2418_v58 = vpop.f32.mrf.mxu0  ;;  %v9266_v16 = vpop.f32.mrf.mxu1  ;;  %3095 = vmatmul.mubr.bf16.gmra.mxu0 %v10134_v62  ;;  %v7872_v62 = vld [vmem:[#allocation9 + $0x1c4] ss:$8 sps:$4 sm:$0xff]   ;;  %5101 = vmatprep.subr.bf16.mxu1 %v7899_v42 }
 0x1d3   :  { %v2419_v1 = vadd.f32 %v2418_v58, %v9129_v39  ;;  %3104 = vmatprep.mubr.bf16.mxu0 %v10135_v49  ;;  %5065 = vmatpush2.bf16.msra.mxu0 %v7852_v60  ;;  %v365_v60 = vpack.c.bf16 %v9143_v52, %v9125_v56  ;;  %v7902_v56 = vld [vmem:[#allocation9 + $0x264] ss:$8 sps:$4 sm:$0xff]  }
 0x1d4   :  { %v2420_v51 = vpop.f32.mrf.mxu0  ;;  %v2531_v7 = vpop.f32.mrf.mxu1  ;;  %5066 = vmatprep.subr.bf16.mxu0 %v7860_v26  ;;  %v7897_v26 = vld [vmem:[#allocation9 + $0x270] ss:$8 sps:$4 sm:$0xff]  }
 0x1d5   :  { %v2421_v47 = vadd.f32 %v2420_v51, %v9133_v6  ;;  %v9272_v37 = vadd.f32 %v2531_v7, %v2419_v1  ;;  %5102 = vmatpush1.bf16.msra.mxu1 %v7897_v26 }
 0x1d6   :  { %v2422_v15 = vpop.f32.mrf.mxu0  ;;  %v2533_v33 = vpop.f32.mrf.mxu1  ;;  %5103 = vmatprep.subr.bf16.mxu1 %v7902_v56  ;;  %v7906_v56 = vld [vmem:[#allocation9 + $0x250] ss:$8 sps:$4 sm:$0xff]  }
 0x1d7   :  { %v2423_v55 = vadd.f32 %v2422_v15, %v9138_v13  ;;  %v9276_v39 = vadd.f32 %v2533_v33, %v2421_v47  ;;  %5067 = vmatpush2.bf16.msra.mxu0 %v7858_v57  ;;  %v10138_v13 = vld [vmem:[#allocation38_spill] sm:$0xff]  ;;  %v7870_v15 = vld [vmem:[#allocation9 + $0x1c0] ss:$8 sps:$4 sm:$0xff]  }
 0x1d8   :  { %v2424_v58 = vpop.f32.mrf.mxu0  ;;  %v2535_v6 = vpop.f32.mrf.mxu1  ;;  %5068 = vmatprep.subr.bf16.mxu0 %v7866_v61  ;;  %v280_v47 = vld [vmem:[#allocation3 + $0x3f8] sm:$0xff]  ;;  %v7900_v61 = vld [vmem:[#allocation9 + $0x260] ss:$8 sps:$4 sm:$0xff]  }
 0x1d9   :  { %v9281_v1 = vadd.f32 %v2424_v58, %v9146_v40  ;;  %v9283_v49 = vadd.f32 %v2535_v6, %v2423_v55  ;;  %v7878_v57 = vld [vmem:[#allocation9 + $0x1b4] ss:$8 sps:$4 sm:$0xff]   ;;  %5104 = vmatpush1.bf16.msra.mxu1 %v7900_v61  ;;  %v364_v6 = vpack.c.bf16 %v9166_v38, %v9140_v2 }
 0x1da   :  { %v2428_v51 = vpop.f32.mrf.mxu0  ;;  %v9285_v7 = vpop.f32.mrf.mxu1  ;;  %3105 = vmatmul.mubr.bf16.gmra.mxu0 %v10138_v13  ;;  %v7876_v13 = vld [vmem:[#allocation9 + $0x1b0] ss:$8 sps:$4 sm:$0xff]  }
 0x1db   :  { %10136 = vst [vmem:[#allocation25_spill] sm:$0xff] %v9281_v1  ;;  %10137 = vst [vmem:[#allocation26_spill] sm:$0xff] %v9285_v7  ;;  %v2429_v52 = vadd.f32 %v2428_v51, %v9152_v44  ;;  %3114 = vmatprep.mubr.bf16.mxu0 %v365_v60  ;;  %5069 = vmatpush2.bf16.msra.mxu0 %v7864_v48  ;;  %v7908_v44 = vld [vmem:[#allocation9 + $0x254] ss:$8 sps:$4 sm:$0xff]   ;;  %v377_v51 = vpack.c.bf16 %v280_v47, %v9148_v4  ;;  %v7950_v7 = vld [vmem:[#allocation9 + $0x2e4] ss:$8 sps:$4 sm:$0xff]  }
 0x1dc   :  { %v2430_v33 = vpop.f32.mrf.mxu0  ;;  %v2541_v40 = vpop.f32.mrf.mxu1  ;;  %5070 = vmatprep.subr.bf16.mxu0 %v7872_v62  ;;  %v7884_v62 = vld [vmem:[#allocation9 + $0x1a4] ss:$8 sps:$4 sm:$0xff]   ;;  %5105 = vmatprep.subr.bf16.mxu1 %v7908_v44  ;;  %v7890_v47 = vld [vmem:[#allocation9 + $0x194] ss:$8 sps:$4 sm:$0xff]  }
 0x1dd   :  { %v2431_v42 = vadd.f32 %v2430_v33, %v9157_v41  ;;  %v9290_v55 = vadd.f32 %v2541_v40, %v2429_v52  ;;  %v279_v33 = vld [vmem:[#allocation3 + $0x3f0] sm:$0xff]  ;;  %5106 = vmatpush1.bf16.msra.mxu1 %v7906_v56 }
 0x1de   :  { %v2432_v26 = vpop.f32.mrf.mxu0  ;;  %v2543_v58 = vpop.f32.mrf.mxu1  ;;  %v7914_v40 = vld [vmem:[#allocation9 + $0x244] ss:$8 sps:$4 sm:$0xff]   ;;  %v7888_v56 = vld [vmem:[#allocation9 + $0x190] ss:$8 sps:$4 sm:$0xff]   ;;  %v7965_v1 = vld [vmem:[#allocation9 + $0x3d4] ss:$8 sps:$4 sm:$0xff]  }
 0x1df   :  { %v2433_v48 = vadd.f32 %v2432_v26, %v9164_v12  ;;  %v9295_v60 = vadd.f32 %v2543_v58, %v2431_v42  ;;  %5071 = vmatpush2.bf16.msra.mxu0 %v7870_v15  ;;  %v7882_v12 = vld [vmem:[#allocation9 + $0x1a0] ss:$8 sps:$4 sm:$0xff]   ;;  %5107 = vmatprep.subr.bf16.mxu1 %v7914_v40 }
 0x1e0   :  { %v9298_v41 = vpop.f32.mrf.mxu0  ;;  %v2545_v52 = vpop.f32.mrf.mxu1  ;;  %5072 = vmatprep.subr.bf16.mxu0 %v7878_v57  ;;  %v7912_v15 = vld [vmem:[#allocation9 + $0x240] ss:$8 sps:$4 sm:$0xff]  }
 0x1e1   :  { %v9300_v61 = vadd.f32 %v2545_v52, %v2433_v48  ;;  %5108 = vmatpush1.bf16.msra.mxu1 %v7912_v15  ;;  %v7920_v52 = vld [vmem:[#allocation9 + $0x234] ss:$8 sps:$4 sm:$0xff]  }
 0x1e2   :  { %v2438_v2 = vpop.f32.mrf.mxu0  ;;  %v9302_v38 = vpop.f32.mrf.mxu1  ;;  %3115 = vmatmul.mubr.bf16.gmra.mxu0 %v364_v6  ;;  %v376_v6 = vpack.c.bf16 %v279_v33, %v9168_v31  ;;  %5109 = vmatprep.subr.bf16.mxu1 %v7920_v52  ;;  %v7894_v31 = vld [vmem:[#allocation9 + $0x180] ss:$8 sps:$4 sm:$0xff]   ;;  %v7926_v33 = vld [vmem:[#allocation9 + $0x224] ss:$8 sps:$4 sm:$0xff]   ;;  %v7903_v52 = vld [vmem:[#allocation9 + $0x370] ss:$8 sps:$4 sm:$0xff]  }
 0x1e3   :  { %v2439_v4 = vadd.f32 %v2438_v2, %v9174_v50  ;;  %3124 = vmatprep.mubr.bf16.mxu0 %v377_v51  ;;  %5073 = vmatpush2.bf16.msra.mxu0 %v7876_v13  ;;  %v7896_v51 = vld [vmem:[#allocation9 + $0x184] ss:$8 sps:$4 sm:$0xff]   ;;  %v7918_v2 = vld [vmem:[#allocation9 + $0x230] ss:$8 sps:$4 sm:$0xff]  }
 0x1e4   :  { %v2440_v42 = vpop.f32.mrf.mxu0  ;;  %v2551_v26 = vpop.f32.mrf.mxu1  ;;  %5074 = vmatprep.subr.bf16.mxu0 %v7884_v62 }
 0x1e5   :  { %v2441_v57 = vadd.f32 %v2440_v42, %v9179_v29  ;;  %v9306_v58 = vadd.f32 %v2551_v26, %v2439_v4  ;;  %5110 = vmatpush1.bf16.msra.mxu1 %v7918_v2  ;;  %v7924_v42 = vld [vmem:[#allocation9 + $0x220] ss:$8 sps:$4 sm:$0xff]   ;;  %v7911_v2 = vld [vmem:[#allocation9 + $0x364] ss:$8 sps:$4 sm:$0xff]  }
 0x1e6   :  { %v2442_v44 = vpop.f32.mrf.mxu0  ;;  %v2553_v48 = vpop.f32.mrf.mxu1  ;;  %5111 = vmatprep.subr.bf16.mxu1 %v7926_v33 }
 0x1e7   :  { %v2443_v50 = vadd.f32 %v2442_v44, %v9184_v9  ;;  %v9310_v13 = vadd.f32 %v2553_v48, %v2441_v57  ;;  %5075 = vmatpush2.bf16.msra.mxu0 %v7882_v12  ;;  %v7905_v12 = vld [vmem:[#allocation9 + $0x374] ss:$8 sps:$4 sm:$0xff]  }
 0x1e8   :  { %v9312_v62 = vpop.f32.mrf.mxu0  ;;  %v2555_v40 = vpop.f32.mrf.mxu1  ;;  %5076 = vmatprep.subr.bf16.mxu0 %v7890_v47 }
 0x1e9   :  { %v9314_v29 = vadd.f32 %v2555_v40, %v2443_v50  ;;  %5112 = vmatpush1.bf16.msra.mxu1 %v7924_v42  ;;  %v7932_v50 = vld [vmem:[#allocation9 + $0x214] ss:$8 sps:$4 sm:$0xff]   ;;  %v7930_v40 = vld [vmem:[#allocation9 + $0x210] ss:$8 sps:$4 sm:$0xff]   ;;  %v7909_v42 = vld [vmem:[#allocation9 + $0x360] ss:$8 sps:$4 sm:$0xff]  }
 0x1ea   :  { %v2448_v4 = vpop.f32.mrf.mxu0  ;;  %v9316_v15 = vpop.f32.mrf.mxu1  ;;  %3125 = vmatmul.mubr.bf16.gmra.mxu0 %v376_v6  ;;  %5113 = vmatprep.subr.bf16.mxu1 %v7932_v50 }
 0x1eb   :  { %v2449_v9 = vadd.f32 %v2448_v4, %v9191_v43  ;;  %5077 = vmatpush2.bf16.msra.mxu0 %v7888_v56  ;;  %5080 = vmatprep.mubr.bf16.mxu0 %v10125_v25 }
 0x1ec   :  { %v2450_v26 = vpop.f32.mrf.mxu0  ;;  %v2561_v57 = vpop.f32.mrf.mxu1  ;;  %5078 = vmatprep.subr.bf16.mxu0 %v7896_v51 }
 0x1ed   :  { %v2451_v47 = vadd.f32 %v2450_v26, %v9195_v30  ;;  %v9321_v44 = vadd.f32 %v2561_v57, %v2449_v9  ;;  %5114 = vmatpush1.bf16.msra.mxu1 %v7930_v40  ;;  %v7936_v57 = vld [vmem:[#allocation9 + $0x200] ss:$8 sps:$4 sm:$0xff]   ;;  %v7915_v40 = vld [vmem:[#allocation9 + $0x350] ss:$8 sps:$4 sm:$0xff]  }
 0x1ee   :  { %v2452_v48 = vpop.f32.mrf.mxu0  ;;  %v2563_v6 = vpop.f32.mrf.mxu1 }
 0x1ef   :  { %v2453_v43 = vadd.f32 %v2452_v48, %v9200_v23  ;;  %v9324_v56 = vadd.f32 %v2563_v6, %v2451_v47  ;;  %5079 = vmatpush2.bf16.msra.mxu0 %v7894_v31  ;;  %v7938_v23 = vld [vmem:[#allocation9 + $0x204] ss:$8 sps:$4 sm:$0xff]   ;;  %v7917_v31 = vld [vmem:[#allocation9 + $0x354] ss:$8 sps:$4 sm:$0xff]  }
 0x1f0   :  { %v9326_v4 = vpop.f32.mrf.mxu0  ;;  %v2565_v51 = vpop.f32.mrf.mxu1  ;;  %5154 = vmatprep.subr.bf16.mxu0 %v7905_v12  ;;  %5115 = vmatprep.subr.bf16.mxu1 %v7938_v23 }
 0x1f1   :  { %v9328_v30 = vadd.f32 %v2565_v51, %v2453_v43  ;;  %5116 = vmatpush1.bf16.msra.mxu1 %v7936_v57  ;;  %v7944_v51 = vld [vmem:[#allocation9 + $0x2f4] ss:$8 sps:$4 sm:$0xff]  }
 0x1f2   :  { %v9330_v33 = vpop.f32.mrf.mxu1  ;;  %v2604_v9 = vpop.f32.mrf.mxu0  ;;  %5081 = vmatmul.mubr.bf16.vlgmr.msra.gmra.mxu0 %v10125_v25  ;;  %v2498_v25 = vadd.f32 %v9218_v46, %v9214_v20  ;;  %5117 = vmatprep.subr.bf16.mxu1 %v7944_v51  ;;  %v7929_v46 = vld [vmem:[#allocation9 + $0x334] ss:$8 sps:$4 sm:$0xff]   ;;  %v7927_v51 = vld [vmem:[#allocation9 + $0x330] ss:$8 sps:$4 sm:$0xff]  }
 0x1f3   :  { %v2605_v26 = vadd.f32 %v2604_v9, %v9208_v32  ;;  %5155 = vmatpush1.bf16.msra.mxu0 %v7903_v52  ;;  %v7923_v9 = vld [vmem:[#allocation9 + $0x344] ss:$8 sps:$4 sm:$0xff]  }
 0x1f4   :  { %v2606_v47 = vpop.f32.mrf.mxu0  ;;  %v2717_v48 = vpop.f32.mrf.mxu1  ;;  %5156 = vmatprep.subr.bf16.mxu0 %v7911_v2  ;;  %v7942_v2 = vld [vmem:[#allocation9 + $0x2f0] ss:$8 sps:$4 sm:$0xff]  }
 0x1f5   :  { %v2607_v12 = vadd.f32 %v2606_v47, %v9211_v10  ;;  %v9335_v6 = vadd.f32 %v2717_v48, %v2605_v26  ;;  %5118 = vmatpush2.bf16.msra.mxu1 %v7942_v2  ;;  %v7921_v48 = vld [vmem:[#allocation9 + $0x340] ss:$8 sps:$4 sm:$0xff]  }
 0x1f6   :  { %v2608_v50 = vpop.f32.mrf.mxu0  ;;  %v2719_v43 = vpop.f32.mrf.mxu1  ;;  %5119 = vmatprep.subr.bf16.mxu1 %v7950_v7 }
 0x1f7   :  { %v2609_v32 = vadd.f32 %v2608_v50, %v9216_v34  ;;  %v9340_v52 = vadd.f32 %v2719_v43, %v2607_v12  ;;  %5157 = vmatpush1.bf16.msra.mxu0 %v7909_v42  ;;  %v7948_v42 = vld [vmem:[#allocation9 + $0x2e0] ss:$8 sps:$4 sm:$0xff]  }
 0x1f8   :  { %v2610_v23 = vpop.f32.mrf.mxu0  ;;  %v2721_v63 = vpop.f32.mrf.mxu1  ;;  %5158 = vmatprep.subr.bf16.mxu0 %v7917_v31 }
 0x1f9   :  { %v2611_v10 = vadd.f32 %v2610_v23, %v2498_v25  ;;  %v9342_v26 = vadd.f32 %v2721_v63, %v2609_v32  ;;  %5120 = vmatpush2.bf16.msra.mxu1 %v7948_v42  ;;  %v7956_v32 = vld [vmem:[#allocation9 + $0x2d4] ss:$8 sps:$4 sm:$0xff]   ;;  %v7935_v23 = vld [vmem:[#allocation9 + $0x324] ss:$8 sps:$4 sm:$0xff]   ;;  %v7933_v42 = vld [vmem:[#allocation9 + $0x320] ss:$8 sps:$4 sm:$0xff]  }
 0x1fa   :  { %v2614_v57 = vpop.f32.mrf.mxu0  ;;  %v2723_v47 = vpop.f32.mrf.mxu1  ;;  %5121 = vmatprep.subr.bf16.mxu1 %v7956_v32 }
 0x1fb   :  { %v2615_v20 = vadd.f32 %v2614_v57, %v9224_v0  ;;  %v9345_v34 = vadd.f32 %v2723_v47, %v2611_v10  ;;  %5159 = vmatpush1.bf16.msra.mxu0 %v7915_v40  ;;  %v2508_v0 = vadd.f32 %v9234_v11, %v9230_v3  ;;  %v7941_v11 = vld [vmem:[#allocation9 + $0x314] ss:$8 sps:$4 sm:$0xff]  }
 0x1fc   :  { %v2616_v12 = vpop.f32.mrf.mxu0  ;;  %v2727_v50 = vpop.f32.mrf.mxu1  ;;  %5160 = vmatprep.subr.bf16.mxu0 %v7923_v9  ;;  %v7954_v9 = vld [vmem:[#allocation9 + $0x2d0] ss:$8 sps:$4 sm:$0xff]  }
 0x1fd   :  { %v2617_v25 = vadd.f32 %v2616_v12, %v9227_v24  ;;  %v9348_v63 = vadd.f32 %v2727_v50, %v2615_v20  ;;  %5122 = vmatpush2.bf16.msra.mxu1 %v7954_v9  ;;  %v7962_v12 = vld [vmem:[#allocation9 + $0x2c4] ss:$8 sps:$4 sm:$0xff]  }
 0x1fe   :  { %v2618_v31 = vpop.f32.mrf.mxu0  ;;  %v2729_v43 = vpop.f32.mrf.mxu1  ;;  %5123 = vmatprep.subr.bf16.mxu1 %v7962_v12  ;;  %v7953_v12 = vld [vmem:[#allocation9 + $0x3f4] ss:$8 sps:$4 sm:$0xff]  }
 0x1ff   :  { %v2619_v40 = vadd.f32 %v2618_v31, %v9232_v17  ;;  %v9353_v2 = vadd.f32 %v2729_v43, %v2617_v25  ;;  %5161 = vmatpush1.bf16.msra.mxu0 %v7921_v48  ;;  %v7960_v48 = vld [vmem:[#allocation9 + $0x2c0] ss:$8 sps:$4 sm:$0xff]  }
 0x200   :  { %v2620_v7 = vpop.f32.mrf.mxu0  ;;  %v2731_v10 = vpop.f32.mrf.mxu1  ;;  %5162 = vmatprep.subr.bf16.mxu0 %v7929_v46 }
 0x201   :  { %v2621_v24 = vadd.f32 %v2620_v7, %v2508_v0  ;;  %v9355_v57 = vadd.f32 %v2731_v10, %v2619_v40  ;;  %5124 = vmatpush2.bf16.msra.mxu1 %v7960_v48  ;;  %v7939_v0 = vld [vmem:[#allocation9 + $0x310] ss:$8 sps:$4 sm:$0xff]   ;;  %v7968_v40 = vld [vmem:[#allocation9 + $0x2b4] ss:$8 sps:$4 sm:$0xff]  }
 0x202   :  { %v2624_v47 = vpop.f32.mrf.mxu0  ;;  %v2733_v20 = vpop.f32.mrf.mxu1  ;;  %v7966_v7 = vld [vmem:[#allocation9 + $0x2b0] ss:$8 sps:$4 sm:$0xff]   ;;  %5125 = vmatprep.subr.bf16.mxu1 %v7968_v40 }
 0x203   :  { %v2625_v3 = vadd.f32 %v2624_v47, %v9240_v14  ;;  %v9358_v17 = vadd.f32 %v2733_v20, %v2621_v24  ;;  %5163 = vmatpush1.bf16.msra.mxu0 %v7927_v51  ;;  %v7947_v51 = vld [vmem:[#allocation9 + $0x304] ss:$8 sps:$4 sm:$0xff]   ;;  %v7945_v47 = vld [vmem:[#allocation9 + $0x300] ss:$8 sps:$4 sm:$0xff]  }
 0x204   :  { %v2626_v50 = vpop.f32.mrf.mxu0  ;;  %v2737_v25 = vpop.f32.mrf.mxu1  ;;  %5164 = vmatprep.subr.bf16.mxu0 %v7935_v23  ;;  %v7974_v20 = vld [vmem:[#allocation9 + $0x2a4] ss:$8 sps:$4 sm:$0xff]  }
 0x205   :  { %v2627_v46 = vadd.f32 %v2626_v50, %v9243_v59  ;;  %v9361_v31 = vadd.f32 %v2737_v25, %v2625_v3  ;;  %5126 = vmatpush2.bf16.msra.mxu1 %v7966_v7  ;;  %v7959_v7 = vld [vmem:[#allocation9 + $0x3e4] ss:$8 sps:$4 sm:$0xff]  }
 0x206   :  { %v2628_v43 = vpop.f32.mrf.mxu0  ;;  %v2739_v32 = vpop.f32.mrf.mxu1  ;;  %5127 = vmatprep.subr.bf16.mxu1 %v7974_v20  ;;  %v7986_v20 = vld [vmem:[#allocation9 + $0x284] ss:$8 sps:$4 sm:$0xff]  }
 0x207   :  { %v9364_v14 = vadd.f32 %v2628_v43, %v9248_v18  ;;  %v9366_v9 = vadd.f32 %v2739_v32, %v2627_v46  ;;  %5165 = vmatpush1.bf16.msra.mxu0 %v7933_v42  ;;  %v7972_v42 = vld [vmem:[#allocation9 + $0x2a0] ss:$8 sps:$4 sm:$0xff]   ;;  %v7980_v46 = vld [vmem:[#allocation9 + $0x294] ss:$8 sps:$4 sm:$0xff]   ;;  %v7978_v32 = vld [vmem:[#allocation9 + $0x290] ss:$8 sps:$4 sm:$0xff]  }
 0x208   :  { %v9368_v10 = vpop.f32.mrf.mxu0  ;;  %v9370_v23 = vpop.f32.mrf.mxu1  ;;  %5166 = vmatprep.subr.bf16.mxu0 %v7941_v11 }
 0x209   :  { %5128 = vmatpush2.bf16.msra.mxu1 %v7972_v42 }
 0x20a   :  { %v2634_v59 = vpop.f32.mrf.mxu0  ;;  %v9372_v24 = vpop.f32.mrf.mxu1  ;;  %5129 = vmatprep.subr.bf16.mxu1 %v7980_v46 }
 0x20b   :  { %v9375_v18 = vadd.f32 %v2634_v59, %v9256_v27  ;;  %5167 = vmatpush1.bf16.msra.mxu0 %v7939_v0  ;;  %v7951_v27 = vld [vmem:[#allocation9 + $0x3f0] ss:$8 sps:$4 sm:$0xff]  }
 0x20c   :  { %v2636_v3 = vpop.f32.mrf.mxu0  ;;  %v9377_v48 = vpop.f32.mrf.mxu1  ;;  %5168 = vmatprep.subr.bf16.mxu0 %v7947_v51 }
 0x20d   :  { %v9380_v11 = vadd.f32 %v2636_v3, %v9259_v35  ;;  %5130 = vmatpush2.bf16.msra.mxu1 %v7978_v32 }
 0x20e   :  { %v2638_v50 = vpop.f32.mrf.mxu0  ;;  %v9382_v25 = vpop.f32.mrf.mxu1  ;;  %5131 = vmatprep.subr.bf16.mxu1 %v7986_v20 }
 0x20f   :  { %v2639_v43 = vadd.f32 %v2638_v50, %v9264_v5  ;;  %5169 = vmatpush1.bf16.msra.mxu0 %v7945_v47  ;;  %v7957_v5 = vld [vmem:[#allocation9 + $0x3e0] ss:$8 sps:$4 sm:$0xff]  }
 0x210   :  { %v9385_v0 = vpop.f32.mrf.mxu0  ;;  %v2751_v40 = vpop.f32.mrf.mxu1  ;;  %5170 = vmatprep.subr.bf16.mxu0 %v7953_v12  ;;  %v7984_v47 = vld [vmem:[#allocation9 + $0x280] ss:$8 sps:$4 sm:$0xff]  }
 0x211   :  { %10139 = vst [vmem:[#allocation27_spill] sm:$0xff] %v9385_v0  ;;  %v9387_v51 = vadd.f32 %v2751_v40, %v2639_v43  ;;  %5132 = vmatpush2.bf16.msra.mxu1 %v7984_v47  ;;  %v7995_v40 = vld [vmem:[#allocation9 + $0x474] ss:$8 sps:$4 sm:$0xff]  }
 0x212   :  { %v2644_v35 = vpop.f32.mrf.mxu0  ;;  %v9389_v59 = vpop.f32.mrf.mxu1  ;;  %5207 = vmatprep.subr.bf16.mxu1 %v7995_v40 }
 0x213   :  { %10140 = vst [vmem:[#allocation28_spill] sm:$0xff] %v9389_v59  ;;  %v2645_v42 = vadd.f32 %v2644_v35, %v9272_v37  ;;  %5171 = vmatpush2.bf16.msra.mxu0 %v7951_v27  ;;  %v7963_v37 = vld [vmem:[#allocation9 + $0x3d0] ss:$8 sps:$4 sm:$0xff]  }
 0x214   :  { %v2646_v3 = vpop.f32.mrf.mxu0  ;;  %v2757_v50 = vpop.f32.mrf.mxu1  ;;  %5172 = vmatprep.subr.bf16.mxu0 %v7959_v7  ;;  %v7971_v7 = vld [vmem:[#allocation9 + $0x3c4] ss:$8 sps:$4 sm:$0xff]  }
 0x215   :  { %v2647_v12 = vadd.f32 %v2646_v3, %v9276_v39  ;;  %v9393_v46 = vadd.f32 %v2757_v50, %v2645_v42  ;;  %v2322_v39 = vadd.f32 %v9170_v36, %v9162_v21 }
 0x216   :  { %v2648_v43 = vpop.f32.mrf.mxu0  ;;  %v2759_v32 = vpop.f32.mrf.mxu1 }
 0x217   :  { %v2649_v59 = vadd.f32 %v2648_v43, %v9283_v49  ;;  %v9396_v0 = vadd.f32 %v2759_v32, %v2647_v12  ;;  %5173 = vmatpush2.bf16.msra.mxu0 %v7957_v5  ;;  %v2435_v49 = vadd.f32 %v9298_v41, %v2322_v39  ;;  %v7969_v5 = vld [vmem:[#allocation9 + $0x3c0] ss:$8 sps:$4 sm:$0xff]   ;;  %v7983_v39 = vld [vmem:[#allocation9 + $0x3a4] ss:$8 sps:$4 sm:$0xff]  }
 0x218   :  { %v9398_v27 = vpop.f32.mrf.mxu0  ;;  %v2761_v35 = vpop.f32.mrf.mxu1  ;;  %5174 = vmatprep.subr.bf16.mxu0 %v7965_v1  ;;  %v7977_v1 = vld [vmem:[#allocation9 + $0x3b4] ss:$8 sps:$4 sm:$0xff]  }
 0x219   :  { %10141 = vst [vmem:[#allocation29_spill] sm:$0xff] %v9398_v27  ;;  %v9402_v20 = vadd.f32 %v2761_v35, %v2649_v59  ;;  %v2548_v59 = vadd.f32 %v9302_v38, %v2435_v49 }
 0x21a   :  { %v2654_v42 = vpop.f32.mrf.mxu0  ;;  %v9404_v47 = vpop.f32.mrf.mxu1 }
 0x21b   :  { %10142 = vst [vmem:[#allocation30_spill] sm:$0xff] %v9404_v47  ;;  %v2655_v3 = vadd.f32 %v2654_v42, %v9290_v55  ;;  %5175 = vmatpush2.bf16.msra.mxu0 %v7963_v37  ;;  %v7975_v55 = vld [vmem:[#allocation9 + $0x3b0] ss:$8 sps:$4 sm:$0xff]  }
 0x21c   :  { %v2656_v50 = vpop.f32.mrf.mxu0  ;;  %v2767_v12 = vpop.f32.mrf.mxu1  ;;  %5176 = vmatprep.subr.bf16.mxu0 %v7971_v7  ;;  %v2332_v7 = vadd.f32 %v9186_v22, %v9182_v45 }
 0x21d   :  { %v2657_v43 = vadd.f32 %v2656_v50, %v9295_v60  ;;  %v9409_v32 = vadd.f32 %v2767_v12, %v2655_v3 }
 0x21e   :  { %v2658_v21 = vpop.f32.mrf.mxu0  ;;  %v2769_v36 = vpop.f32.mrf.mxu1  ;;  %v2445_v38 = vadd.f32 %v9312_v62, %v2332_v7 }
 0x21f   :  { %v2659_v40 = vadd.f32 %v2658_v21, %v9300_v61  ;;  %v9413_v35 = vadd.f32 %v2769_v36, %v2657_v43  ;;  %5177 = vmatpush2.bf16.msra.mxu0 %v7969_v5  ;;  %v7981_v5 = vld [vmem:[#allocation9 + $0x3a0] ss:$8 sps:$4 sm:$0xff]  }
 0x220   :  { %v2660_v41 = vpop.f32.mrf.mxu0  ;;  %v2771_v37 = vpop.f32.mrf.mxu1  ;;  %5178 = vmatprep.subr.bf16.mxu0 %v7977_v1  ;;  %v7989_v1 = vld [vmem:[#allocation9 + $0x394] ss:$8 sps:$4 sm:$0xff]  }
 0x221   :  { %v2661_v60 = vadd.f32 %v2660_v41, %v2548_v59  ;;  %v9417_v42 = vadd.f32 %v2771_v37, %v2659_v40  ;;  %v2558_v59 = vadd.f32 %v9316_v15, %v2445_v38  ;;  %v7992_v37 = vld [vmem:[#allocation9 + $0x384] ss:$8 sps:$4 sm:$0xff]   ;;  %v7990_v38 = vld [vmem:[#allocation9 + $0x380] ss:$8 sps:$4 sm:$0xff]  }
 0x222   :  { %v2664_v3 = vpop.f32.mrf.mxu0  ;;  %v2773_v50 = vpop.f32.mrf.mxu1 }
 0x223   :  { %v2665_v61 = vadd.f32 %v2664_v3, %v9306_v58  ;;  %v9421_v49 = vadd.f32 %v2773_v50, %v2661_v60  ;;  %5179 = vmatpush2.bf16.msra.mxu0 %v7975_v55  ;;  %v7987_v58 = vld [vmem:[#allocation9 + $0x390] ss:$8 sps:$4 sm:$0xff]  }
 0x224   :  { %v2666_v12 = vpop.f32.mrf.mxu0  ;;  %v2777_v43 = vpop.f32.mrf.mxu1  ;;  %5180 = vmatprep.subr.bf16.mxu0 %v7983_v39  ;;  %v2342_v39 = vadd.f32 %v9202_v19, %v9198_v8 }
 0x225   :  { %v2667_v21 = vadd.f32 %v2666_v12, %v9310_v13  ;;  %v9424_v45 = vadd.f32 %v2777_v43, %v2665_v61  ;;  %v8001_v12 = vld [vmem:[#allocation9 + $0x574] ss:$8 sps:$4 sm:$0xff]  }
 0x226   :  { %v2668_v22 = vpop.f32.mrf.mxu0  ;;  %v2779_v36 = vpop.f32.mrf.mxu1  ;;  %v2455_v15 = vadd.f32 %v9326_v4, %v2342_v39 }
 0x227   :  { %v2669_v62 = vadd.f32 %v2668_v22, %v9314_v29  ;;  %v9428_v40 = vadd.f32 %v2779_v36, %v2667_v21  ;;  %5181 = vmatpush2.bf16.msra.mxu0 %v7981_v5 }
 0x228   :  { %v2670_v55 = vpop.f32.mrf.mxu0  ;;  %v2781_v41 = vpop.f32.mrf.mxu1  ;;  %5182 = vmatprep.subr.bf16.mxu0 %v7989_v1  ;;  %v2568_v21 = vadd.f32 %v9330_v33, %v2455_v15 }
 0x229   :  { %v2671_v13 = vadd.f32 %v2670_v55, %v2558_v59  ;;  %v9432_v7 = vadd.f32 %v2781_v41, %v2669_v62 }
 0x22a   :  { %v2674_v60 = vpop.f32.mrf.mxu0  ;;  %v2783_v3 = vpop.f32.mrf.mxu1 }
 0x22b   :  { %v2675_v29 = vadd.f32 %v2674_v60, %v9321_v44  ;;  %v9436_v50 = vadd.f32 %v2783_v3, %v2671_v13  ;;  %5183 = vmatpush2.bf16.msra.mxu0 %v7987_v58 }
 0x22c   :  { %v2676_v61 = vpop.f32.mrf.mxu0  ;;  %v2787_v5 = vpop.f32.mrf.mxu1  ;;  %5184 = vmatprep.subr.bf16.mxu0 %v7992_v37 }
 0x22d   :  { %v2677_v43 = vadd.f32 %v2676_v61, %v9324_v56  ;;  %v9439_v8 = vadd.f32 %v2787_v5, %v2675_v29 }
 0x22e   :  { %v2678_v19 = vpop.f32.mrf.mxu0  ;;  %v2789_v1 = vpop.f32.mrf.mxu1 }
 0x22f   :  { %v2679_v4 = vadd.f32 %v2678_v19, %v9328_v30  ;;  %v9443_v22 = vadd.f32 %v2789_v1, %v2677_v43  ;;  %5185 = vmatpush2.bf16.msra.mxu0 %v7990_v38 }
 0x230   :  { %v2680_v44 = vpop.f32.mrf.mxu0  ;;  %v2791_v36 = vpop.f32.mrf.mxu1  ;;  %5260 = vmatprep.subr.bf16.mxu0 %v8001_v12 }
 0x231   :  { %v2681_v59 = vadd.f32 %v2680_v44, %v2568_v21  ;;  %v9445_v62 = vadd.f32 %v2791_v36, %v2679_v4 }
 0x232   :  { %v2793_v58 = vpop.f32.mrf.mxu1  ;;  %v2830_v55 = vpop.f32.mrf.mxu0 }
 0x233   :  { %v9447_v56 = vadd.f32 %v2793_v58, %v2681_v59  ;;  %v2831_v41 = vadd.f32 %v2830_v55, %v9335_v6 }
 0x234   :  { %v2832_v37 = vpop.f32.mrf.mxu0  ;;  %v2943_v39 = vpop.f32.mrf.mxu1 }
 0x235   :  { %v9451_v33 = vadd.f32 %v2832_v37, %v9340_v52  ;;  %v9453_v30 = vadd.f32 %v2943_v39, %v2831_v41 }
 0x236   :  { %v2834_v13 = vpop.f32.mrf.mxu0  ;;  %v9455_v60 = vpop.f32.mrf.mxu1 }
 0x237   :  { %v9458_v3 = vadd.f32 %v2834_v13, %v9342_v26 }
 0x238   :  { %v2836_v15 = vpop.f32.mrf.mxu0  ;;  %v9460_v29 = vpop.f32.mrf.mxu1 }
 0x239   :  { %v9463_v38 = vadd.f32 %v2836_v15, %v9345_v34 }
 0x23a   :  { %v2840_v6 = vpop.f32.mrf.mxu0  ;;  %v9465_v61 = vpop.f32.mrf.mxu1 }
 0x23b   :  { %v2841_v52 = vadd.f32 %v2840_v6, %v9348_v63 }
 0x23c   :  { %v2842_v5 = vpop.f32.mrf.mxu0  ;;  %v2953_v12 = vpop.f32.mrf.mxu1 }
 0x23d   :  { %v9469_v43 = vadd.f32 %v2842_v5, %v9353_v2  ;;  %v9471_v19 = vadd.f32 %v2953_v12, %v2841_v52 }
 0x23e   :  { %v2844_v26 = vpop.f32.mrf.mxu0  ;;  %v9473_v1 = vpop.f32.mrf.mxu1 }
 0x23f   :  { %v2845_v21 = vadd.f32 %v2844_v26, %v9355_v57 }
 0x240   :  { %v2846_v4 = vpop.f32.mrf.mxu0  ;;  %v2957_v34 = vpop.f32.mrf.mxu1 }
 0x241   :  { %v9477_v44 = vadd.f32 %v2846_v4, %v9358_v17  ;;  %v9479_v36 = vadd.f32 %v2957_v34, %v2845_v21 }
 0x242   :  { %v2850_v63 = vpop.f32.mrf.mxu0  ;;  %v9481_v59 = vpop.f32.mrf.mxu1 }
 0x243   :  { %v9484_v2 = vadd.f32 %v2850_v63, %v9361_v31 }
 0x244   :  { %v2852_v58 = vpop.f32.mrf.mxu0  ;;  %v9486_v55 = vpop.f32.mrf.mxu1 }
 0x245   :  { %v9489_v41 = vadd.f32 %v2852_v58, %v9366_v9 }
 0x246   :  { %v9491_v57 = vpop.f32.mrf.mxu0  ;;  %v9493_v37 = vpop.f32.mrf.mxu1 }
 0x248   :  { %v9495_v17 = vpop.f32.mrf.mxu0  ;;  %v9497_v39 = vpop.f32.mrf.mxu1 }
 0x24a   :  { %v9499_v13 = vpop.f32.mrf.mxu0  ;;  %v9501_v15 = vpop.f32.mrf.mxu1 }
 0x24c   :  { %v9503_v31 = vpop.f32.mrf.mxu0  ;;  %v9505_v6 = vpop.f32.mrf.mxu1 }
 0x24e   :  { %v2864_v52 = vpop.f32.mrf.mxu0  ;;  %v9507_v5 = vpop.f32.mrf.mxu1 }
 0x24f   :  { %10143 = vst [vmem:[#allocation31_spill] sm:$0xff] %v9507_v5  ;;  %v9510_v9 = vadd.f32 %v2864_v52, %v9387_v51 }
 0x250   :  { %v9512_v12 = vpop.f32.mrf.mxu0  ;;  %v9514_v26 = vpop.f32.mrf.mxu1 }
 0x251   :  { %10144 = vst [vmem:[#allocation32_spill] sm:$0xff] %v9510_v9  ;;  %10145 = vst [vmem:[#allocation33_spill] sm:$0xff] %v9514_v26 }
 0x252   :  { %v2870_v21 = vpop.f32.mrf.mxu0  ;;  %v9516_v4 = vpop.f32.mrf.mxu1 }
 0x253   :  { %10146 = vst [vmem:[#allocation34_spill] sm:$0xff] %v9516_v4  ;;  %v2871_v34 = vadd.f32 %v2870_v21, %v9393_v46 }
 0x254   :  { %v2872_v63 = vpop.f32.mrf.mxu0  ;;  %v2983_v58 = vpop.f32.mrf.mxu1 }
 0x255   :  { %v9520_v47 = vadd.f32 %v2872_v63, %v9396_v0  ;;  %v9522_v27 = vadd.f32 %v2983_v58, %v2871_v34 }
 0x256   :  { %v2874_v5 = vpop.f32.mrf.mxu0 }
 0x257   :  { %v9525_v51 = vadd.f32 %v2874_v5, %v9402_v20 }
 0x258   :  { %v9527_v52 = vpop.f32.mrf.mxu0 }
 0x25a   :  { %v2880_v9 = vpop.f32.mrf.mxu0 }
 0x25b   :  { %v9530_v26 = vadd.f32 %v2880_v9, %v9409_v32 }
 0x25c   :  { %v2882_v4 = vpop.f32.mrf.mxu0 }
 0x25d   :  { %v9533_v46 = vadd.f32 %v2882_v4, %v9413_v35 }
 0x25e   :  { %v2884_v21 = vpop.f32.mrf.mxu0 }
 0x25f   :  { %v9536_v0 = vadd.f32 %v2884_v21, %v9417_v42 }
 0x260   :  { %v2886_v34 = vpop.f32.mrf.mxu0 }
 0x261   :  { %v9539_v63 = vadd.f32 %v2886_v34, %v9421_v49 }
 0x262   :  { %v2890_v20 = vpop.f32.mrf.mxu0 }
 0x263   :  { %v9542_v5 = vadd.f32 %v2890_v20, %v9424_v45 }
 0x264   :  { %v2892_v58 = vpop.f32.mrf.mxu0 }
 0x265   :  { %v9545_v32 = vadd.f32 %v2892_v58, %v9428_v40 }
 0x266   :  { %v2894_v9 = vpop.f32.mrf.mxu0 }
 0x267   :  { %v9548_v35 = vadd.f32 %v2894_v9, %v9432_v7 }
 0x268   :  { %v2896_v4 = vpop.f32.mrf.mxu0 }
 0x269   :  { %10147 = vst [vmem:[#allocation35_spill] sm:$0xff] %v9548_v35  ;;  %v9551_v42 = vadd.f32 %v2896_v4, %v9436_v50  ;;  %v9565_v35 = vpop.f32.mrf.mxu1 }
 0x26a   :  { %v2900_v21 = vpop.f32.mrf.mxu0 }
 0x26b   :  { %v9554_v49 = vadd.f32 %v2900_v21, %v9439_v8  ;;  %v2518_v8 = vadd.f32 %v9250_v28, %v9246_v54  ;;  %v2528_v54 = vadd.f32 %v9266_v16, %v9262_v53  ;;  %v2956_v28 = vadd.f32 %v9473_v1, %v9469_v43 }
 0x26c   :  { %v2902_v34 = vpop.f32.mrf.mxu0  ;;  %v2960_v16 = vadd.f32 %v9481_v59, %v9477_v44 }
 0x26d   :  { %v9557_v45 = vadd.f32 %v2902_v34, %v9443_v22  ;;  %v2946_v22 = vadd.f32 %v9455_v60, %v9451_v33  ;;  %v9572_v34 = vpop.f32.mrf.mxu1  ;;  %v2742_v60 = vadd.f32 %v9370_v23, %v9364_v14 }
 0x26e   :  { %v2904_v20 = vpop.f32.mrf.mxu0 }
 0x26f   :  { %v9560_v40 = vadd.f32 %v2904_v20, %v9445_v62  ;;  %v2631_v62 = vadd.f32 %v9368_v10, %v2518_v8  ;;  %v9583_v33 = vpop.f32.mrf.mxu1  ;;  %v2855_v43 = vadd.f32 %v9491_v57, %v2742_v60  ;;  %v2750_v60 = vadd.f32 %v9382_v25, %v9380_v11 }
 0x270   :  { %v2906_v58 = vpop.f32.mrf.mxu0  ;;  %v2966_v11 = vadd.f32 %v9493_v37, %v9489_v41 }
 0x271   :  { %10148 = vst [vmem:[#allocation36_spill] sm:$0xff] %v9560_v40  ;;  %v9563_v7 = vadd.f32 %v2906_v58, %v9447_v56  ;;  %v2948_v56 = vadd.f32 %v9460_v29, %v9458_v3  ;;  %v2744_v3 = vadd.f32 %v9372_v24, %v2631_v62  ;;  %v9594_v8 = vpop.f32.mrf.mxu1  ;;  %v2863_v25 = vadd.f32 %v9503_v31, %v2750_v60 }
 0x272   :  { %v3056_v9 = vpop.f32.mrf.mxu0 }
 0x273   :  { %10149 = vst [vmem:[#allocation37_spill] sm:$0xff] %v9563_v7  ;;  %v3057_v50 = vadd.f32 %v3056_v9, %v9453_v30  ;;  %v2950_v30 = vadd.f32 %v9465_v61, %v9463_v38 }
 0x274   :  { %v3058_v4 = vpop.f32.mrf.mxu0 }
 0x275   :  { %v3059_v20 = vadd.f32 %v3058_v4, %v2946_v22  ;;  %v3167_v9 = vmul.f32 0.01, %v3057_v50  ;;  %vm3135_vm0 = vcmp.ge.f32.partialorder %v3057_v50, 0.0 }
 0x276   :  { %v3060_v21 = vpop.f32.mrf.mxu0 }
 0x277   :  { %v3061_v7 = vadd.f32 %v3060_v21, %v2948_v56  ;;  %v3168_v29 = vmul.f32 0.01, %v3059_v20  ;;  %vm3136_vm1 = vcmp.ge.f32.partialorder %v3059_v20, 0.0  ;;  %v9592_v1 = vsel %vm3135_vm0, %v3057_v50, %v3167_v9  ;;  %v9611_v9 = vpop.f32.mrf.mxu1 }
 0x278   :  { %v3062_v58 = vpop.f32.mrf.mxu0  ;;  %v2748_v56 = vadd.f32 %v9377_v48, %v9375_v18  ;;  %v2964_v48 = vadd.f32 %v9486_v55, %v9484_v2 }
 0x279   :  { %v3063_v38 = vadd.f32 %v3062_v58, %v2950_v30  ;;  %vm3137_vm4 = vcmp.ge.f32.partialorder %v3061_v7, 0.0  ;;  %v9602_v59 = vsel %vm3136_vm1, %v3059_v20, %v3168_v29  ;;  %v2857_v58 = vadd.f32 %v9495_v17, %v2744_v3  ;;  %v10150_v29 = vld [vmem:[#allocation27_spill] sm:$0xff] }
 0x27a   :  { %v3066_v40 = vpop.f32.mrf.mxu0  ;;  %v2641_v18 = vadd.f32 %v10150_v29, %v2528_v54  ;;  %v10155_v29 = vld [vmem:[#allocation29_spill] sm:$0xff] }
 0x27b   :  { %v3067_v10 = vadd.f32 %v3066_v40, %v9471_v19  ;;  %v3169_v19 = vmul.f32 0.01, %v3061_v7  ;;  %v3170_v22 = vmul.f32 0.01, %v3063_v38  ;;  %vm3138_vm6 = vcmp.ge.f32.partialorder %v3063_v38, 0.0 }
 0x27c   :  { %v3068_v61 = vpop.f32.mrf.mxu0  ;;  %v2970_v55 = vadd.f32 %v9501_v15, %v2857_v58 }
 0x27d   :  { %vm3139_vm2 = vcmp.ge.f32.partialorder %v3067_v10, 0.0  ;;  %v3171_v4 = vmul.f32 0.01, %v3067_v10  ;;  %v3069_v53 = vadd.f32 %v3068_v61, %v2956_v28  ;;  %v9613_v28 = vsel %vm3137_vm4, %v3061_v7, %v3169_v19  ;;  %v9636_v19 = vpop.f32.mrf.mxu1 }
 0x27e   :  { %v3070_v40 = vpop.f32.mrf.mxu0  ;;  %v2968_v61 = vadd.f32 %v9497_v39, %v2855_v43  ;;  %v2861_v7 = vadd.f32 %v9499_v13, %v2748_v56  ;;  %v10151_v13 = vld [vmem:[#allocation25_spill] sm:$0xff] }
 0x27f   :  { %v9596_v14 = vsel %vm3139_vm2, %v3067_v10, %v3171_v4  ;;  %vm3140_vm3 = vcmp.ge.f32.partialorder %v3069_v53, 0.0  ;;  %v3172_v23 = vmul.f32 0.01, %v3069_v53  ;;  %v3071_v24 = vadd.f32 %v3070_v40, %v9479_v36  ;;  %v10153_v40 = vld [vmem:[#allocation28_spill] sm:$0xff]  ;;  %v9644_v58 = vpop.f32.mrf.mxu1 }
 0x280   :  { %v3233_v21 = vpack.c.bf16 %v9596_v14, %v9592_v1  ;;  %v3072_v44 = vpop.f32.mrf.mxu0  ;;  %v9626_v4 = vsel %vm3138_vm6, %v3063_v38, %v3170_v22  ;;  %v10152_v38 = vld [vmem:[#allocation26_spill] sm:$0xff]  ;;  %v2974_v41 = vadd.f32 %v9505_v6, %v2861_v7  ;;  %v10157_v6 = vld [vmem:[#allocation33_spill] sm:$0xff]  ;;  %v8101_v1 = vld [vmem:[#allocation9 + $0x760] ss:$8 sps:$4 sm:$0xff]  }
 0x281   :  { %vm3141_vm5 = vcmp.ge.f32.partialorder %v3071_v24, 0.0  ;;  %v3173_v57 = vmul.f32 0.01, %v3071_v24  ;;  %v3073_v50 = vadd.f32 %v3072_v44, %v2960_v16  ;;  %v9604_v62 = vsel %vm3140_vm3, %v3069_v53, %v3172_v23  ;;  %v10154_v44 = vld [vmem:[#allocation31_spill] sm:$0xff]  ;;  %v8098_v14 = vld [vmem:[#allocation9 + $0x650] ss:$8 sps:$4 sm:$0xff]  }
 0x282   :  { %v3076_v36 = vpop.f32.mrf.mxu0  ;;  %v3234_v30 = vpack.c.bf16 %v9604_v62, %v9602_v59  ;;  %v2538_v43 = vadd.f32 %v10152_v38, %v10151_v13  ;;  %v2754_v23 = vadd.f32 %v10153_v40, %v2641_v18  ;;  %v8014_v62 = vld [vmem:[#allocation9 + $0x430] ss:$8 sps:$4 sm:$0xff]  }
 0x283   :  { %v9615_v20 = vsel %vm3141_vm5, %v3071_v24, %v3173_v57  ;;  %vm3142_vm7 = vcmp.ge.f32.partialorder %v3073_v50, 0.0  ;;  %v3174_v10 = vmul.f32 0.01, %v3073_v50  ;;  %v3077_v54 = vadd.f32 %v3076_v36, %v2964_v48  ;;  %v10156_v48 = vld [vmem:[#allocation32_spill] sm:$0xff] }
 0x284   :  { %v3235_v17 = vpack.c.bf16 %v9615_v20, %v9613_v28  ;;  %v3078_v3 = vpop.f32.mrf.mxu0  ;;  %v2976_v57 = vadd.f32 %v10154_v44, %v2863_v25  ;;  %v2651_v18 = vadd.f32 %v10155_v29, %v2538_v43  ;;  %v10160_v44 = vld [vmem:[#allocation30_spill] sm:$0xff]  ;;  %v8104_v20 = vld [vmem:[#allocation9 + $0x640] ss:$8 sps:$4 sm:$0xff]  }
 0x285   :  { %v9628_v53 = vsel %vm3142_vm7, %v3073_v50, %v3174_v10  ;;  %v3079_v24 = vadd.f32 %v3078_v3, %v2966_v11  ;;  %v2867_v50 = vadd.f32 %v9512_v12, %v2754_v23  ;;  %vm3143_vm9 = vcmp.ge.f32.partialorder %v3077_v54, 0.0  ;;  %v9657_v23 = vpop.f32.mrf.mxu1 }
 0x286   :  { %v3080_v16 = vpop.f32.mrf.mxu0  ;;  %v3236_v2 = vpack.c.bf16 %v9628_v53, %v9626_v4  ;;  %v3175_v15 = vmul.f32 0.01, %v3077_v54  ;;  %v2978_v3 = vadd.f32 %v10157_v6, %v10156_v48  ;;  %v10161_v6 = vmov 0.0|0.0   ;;  %v8020_v53 = vld [vmem:[#allocation9 + $0x420] ss:$8 sps:$4 sm:$0xff]  }
 0x287   :  { %v3081_v39 = vadd.f32 %v3080_v16, %v2968_v61  ;;  %vm3144_vm11 = vcmp.ge.f32.partialorder %v3079_v24, 0.0  ;;  %v3176_v61 = vmul.f32 0.01, %v3079_v24  ;;  %v10158_v16 = vld [vmem:[#allocation34_spill] sm:$0xff] }
 0x288   :  { %v3082_v22 = vpop.f32.mrf.mxu0  ;;  %v3207_v13 = vsel %vm3143_vm9, %v3077_v54, %v3175_v15 }
 0x289   :  { %vm3145_vm8 = vcmp.ge.f32.partialorder %v3081_v39, 0.0  ;;  %v3177_v37 = vmul.f32 0.01, %v3081_v39  ;;  %v3083_v31 = vadd.f32 %v3082_v22, %v2970_v55  ;;  %v2980_v55 = vadd.f32 %v10158_v16, %v2867_v50 }
 0x28a   :  { %v3086_v56 = vpop.f32.mrf.mxu0  ;;  %v3208_v54 = vsel %vm3144_vm11, %v3079_v24, %v3176_v61  ;;  %v2986_v16 = vadd.f32 %v9565_v35, %v9520_v47  ;;  %v2996_v35 = vadd.f32 %v9611_v9, %v9533_v46  ;;  %v8007_v46 = vld [vmem:[#allocation9 + $0x564] ss:$8 sps:$4 sm:$0xff]  }
 0x28b   :  { %v3209_v36 = vsel %vm3145_vm8, %v3081_v39, %v3177_v37  ;;  %vm3146_vm10 = vcmp.ge.f32.partialorder %v3083_v31, 0.0  ;;  %v3178_v10 = vmul.f32 0.01, %v3083_v31  ;;  %v3087_v60 = vadd.f32 %v3086_v56, %v2974_v41 }
 0x28c   :  { %v3088_v7 = vpop.f32.mrf.mxu0  ;;  %v10159_v39 = vmov 0.0  }
 0x28d   :  { %vm3147_vm12 = vcmp.ge.f32.partialorder %v3087_v60, 0.0  ;;  %v3179_v11 = vmul.f32 0.01, %v3087_v60  ;;  %v3089_v12 = vadd.f32 %v3088_v7, %v2976_v57  ;;  %v3210_v25 = vsel %vm3146_vm10, %v3083_v31, %v3178_v10 }
 0x28e   :  { %v9652_v38 = vpack.c.bf16 %v3209_v36, %v10159_v39  ;;  %v3090_v40 = vpop.f32.mrf.mxu0  ;;  %v9655_v43 = vpack.c.bf16 %v3210_v25, %v10159_v39  ;;  %v2764_v57 = vadd.f32 %v10160_v44, %v2651_v18  ;;  %v9669_v18 = vpop.f32.mrf.mxu1 }
 0x28f   :  { %v3211_v22 = vsel %vm3147_vm12, %v3087_v60, %v3179_v11  ;;  %vm3148_vm13 = vcmp.ge.f32.partialorder %v3089_v12, 0.0  ;;  %v3180_v41 = vmul.f32 0.01, %v3089_v12  ;;  %v3091_v37 = vadd.f32 %v3090_v40, %v2978_v3 }
 0x290   :  { %v9660_v31 = vpack.c.bf16 %v3211_v22, %v3207_v13  ;;  %v3092_v50 = vpop.f32.mrf.mxu0  ;;  %5037 = vmatprep.mubr.bf16.mxu1 %v9655_v43  ;;  %v2877_v60 = vadd.f32 %v9527_v52, %v2764_v57  ;;  %v3232_v52 = vpack.c.bf16 %v9626_v4, %v10159_v39  ;;  %v9685_v22 = vpop.f32.mrf.mxu1 }
 0x291   :  { %vm3149_vm14 = vcmp.ge.f32.partialorder %v3091_v37, 0.0  ;;  %v3181_v15 = vmul.f32 0.01, %v3091_v37  ;;  %v3093_v56 = vadd.f32 %v3092_v50, %v2980_v55  ;;  %5038 = vmatmul.mubr.bf16.gmra.mxu1 %v9652_v38  ;;  %v3212_v10 = vsel %vm3148_vm13, %v3089_v12, %v3180_v41  ;;  %v7998_v41 = vld [vmem:[#allocation9 + $0x464] ss:$8 sps:$4 sm:$0xff]  }
 0x292   :  { %v3096_v29 = vpop.f32.mrf.mxu0  ;;  %v9666_v48 = vpack.c.bf16 %v3212_v10, %v3208_v54  ;;  %5133 = vmatprep.mubr.bf16.mxu1 %v10161_v6  ;;  %v2988_v55 = vadd.f32 %v9572_v34, %v9525_v51  ;;  %v2990_v40 = vadd.f32 %v9583_v33, %v2877_v60  ;;  %v2994_v50 = vadd.f32 %v9594_v8, %v9530_v26  ;;  %v7996_v51 = vld [vmem:[#allocation9 + $0x460] ss:$8 sps:$4 sm:$0xff]   ;;  %v8004_v26 = vld [vmem:[#allocation9 + $0x454] ss:$8 sps:$4 sm:$0xff]   ;;  %v9697_v8 = vpop.f32.mrf.mxu1 }
 0x293   :  { %v3213_v3 = vsel %vm3149_vm14, %v3091_v37, %v3181_v15  ;;  %vm3150_vm15 = vcmp.ge.f32.partialorder %v3093_v56, 0.0  ;;  %v3182_v7 = vmul.f32 0.01, %v3093_v56  ;;  %v3097_v24 = vadd.f32 %v3096_v29, %v9522_v27  ;;  %v7993_v27 = vld [vmem:[#allocation9 + $0x470] ss:$8 sps:$4 sm:$0xff]  }
 0x294   :  { %v9672_v61 = vpack.c.bf16 %v3213_v3, %v3209_v36  ;;  %v3098_v11 = vpop.f32.mrf.mxu0  ;;  %5090 = vmatprep.mubr.bf16.mxu0 %v9666_v48  ;;  %v2998_v34 = vadd.f32 %v9636_v19, %v9536_v0  ;;  %v3231_v33 = vpack.c.bf16 %v9613_v28, %v10159_v39  ;;  %v7999_v15 = vld [vmem:[#allocation9 + $0x570] ss:$8 sps:$4 sm:$0xff]   ;;  %v3000_v3 = vadd.f32 %v9644_v58, %v9539_v63  ;;  %v8010_v63 = vld [vmem:[#allocation9 + $0x444] ss:$8 sps:$4 sm:$0xff]  }
 0x295   :  { %5091 = vmatmul.mubr.bf16.gmra.mxu0 %v9660_v31  ;;  %v3214_v12 = vsel %vm3150_vm15, %v3093_v56, %v3182_v7  ;;  %v3099_v37 = vadd.f32 %v3098_v11, %v2986_v16  ;;  %vm3151_vm0 = vcmp.ge.f32.partialorder %v3097_v24, 0.0  ;;  %v8005_v16 = vld [vmem:[#allocation9 + $0x560] ss:$8 sps:$4 sm:$0xff]   ;;  %v8107_v28 = vld [vmem:[#allocation9 + $0x750] ss:$8 sps:$4 sm:$0xff]  }
 0x296   :  { %v3100_v13 = vpop.f32.mrf.mxu0  ;;  %5186 = vmatprep.mubr.bf16.mxu0 %v3232_v52  ;;  %v9682_v36 = vpack.c.bf16 %v3214_v12, %v3210_v25  ;;  %v3183_v25 = vmul.f32 0.01, %v3097_v24  ;;  %v8002_v12 = vld [vmem:[#allocation9 + $0x450] ss:$8 sps:$4 sm:$0xff]  }
 0x297   :  { %v3101_v44 = vadd.f32 %v3100_v13, %v2988_v55  ;;  %vm3152_vm2 = vcmp.ge.f32.partialorder %v3099_v37, 0.0  ;;  %v3184_v0 = vmul.f32 0.01, %v3099_v37  ;;  %v3013_v55 = vpop.f32.mrf.mxu1 }
 0x298   :  { %v3102_v57 = vpop.f32.mrf.mxu0  ;;  %v9704_v7 = vsel %vm3151_vm0, %v3097_v24, %v3183_v25 }
 0x299   :  { %v3103_v47 = vadd.f32 %v3102_v57, %v2990_v40  ;;  %5134 = vmatmul.mubr.bf16.vlgmr.msra.gmra.mxu1 %v10161_v6  ;;  %vm3153_vm3 = vcmp.ge.f32.partialorder %v3101_v44, 0.0  ;;  %v3185_v9 = vmul.f32 0.01, %v3101_v44  ;;  %v8013_v57 = vld [vmem:[#allocation9 + $0x554] ss:$8 sps:$4 sm:$0xff]  }
 0x29a   :  { %5208 = vmatpush1.bf16.msra.mxu1 %v7993_v27  ;;  %v3106_v54 = vpop.f32.mrf.mxu0  ;;  %5143 = vmatprep.mubr.bf16.mxu1 %v9682_v36 }
 0x29b   :  { %vm3154_vm1 = vcmp.ge.f32.partialorder %v3103_v47, 0.0  ;;  %v3186_v56 = vmul.f32 0.01, %v3103_v47  ;;  %v3107_v10 = vadd.f32 %v3106_v54, %v2994_v50  ;;  %5209 = vmatprep.subr.bf16.mxu1 %v7998_v41  ;;  %v9711_v58 = vsel %vm3153_vm3, %v3101_v44, %v3185_v9  ;;  %v3015_v54 = vpop.f32.mrf.mxu1  ;;  %v8019_v9 = vld [vmem:[#allocation9 + $0x544] ss:$8 sps:$4 sm:$0xff]  }
 0x29c   :  { %v3108_v19 = vpop.f32.mrf.mxu0  ;;  %v9716_v50 = vsel %vm3152_vm2, %v3099_v37, %v3184_v0  ;;  %v3243_v37 = vpack.c.bf16 %v9711_v58, %v10159_v39 }
 0x29d   :  { %vm3155_vm4 = vcmp.ge.f32.partialorder %v3107_v10, 0.0  ;;  %v3187_v60 = vmul.f32 0.01, %v3107_v10  ;;  %v3109_v29 = vadd.f32 %v3108_v19, %v2996_v35  ;;  %5187 = vmatmul.mubr.bf16.vlgmr.msra.gmra.mxu0 %v3231_v33  ;;  %v9699_v6 = vsel %vm3154_vm1, %v3103_v47, %v3186_v56  ;;  %v8011_v33 = vld [vmem:[#allocation9 + $0x550] ss:$8 sps:$4 sm:$0xff]  }
 0x29e   :  { %5210 = vmatpush1.bf16.msra.mxu1 %v7996_v51  ;;  %5261 = vmatpush1.bf16.msra.mxu0 %v7999_v15  ;;  %v3110_v11 = vpop.f32.mrf.mxu0  ;;  %v3244_v52 = vpack.c.bf16 %v9699_v6, %v10159_v39  ;;  %v8016_v56 = vld [vmem:[#allocation9 + $0x434] ss:$8 sps:$4 sm:$0xff]  }
 0x29f   :  { %v9708_v13 = vsel %vm3155_vm4, %v3107_v10, %v3187_v60  ;;  %vm3156_vm5 = vcmp.ge.f32.partialorder %v3109_v29, 0.0  ;;  %v3188_v27 = vmul.f32 0.01, %v3109_v29  ;;  %v3111_v40 = vadd.f32 %v3110_v11, %v2998_v34  ;;  %5211 = vmatprep.subr.bf16.mxu1 %v8004_v26  ;;  %5262 = vmatprep.subr.bf16.mxu0 %v8007_v46  ;;  %v8008_v34 = vld [vmem:[#allocation9 + $0x440] ss:$8 sps:$4 sm:$0xff]  }
 0x2a0   :  { %v3245_v24 = vpack.c.bf16 %v9708_v13, %v9704_v7  ;;  %v3112_v41 = vpop.f32.mrf.mxu0  ;;  %5196 = vmatprep.mubr.bf16.mxu0 %v3244_v52  ;;  %v3004_v10 = vadd.f32 %v9657_v23, %v9542_v5  ;;  %v3006_v60 = vadd.f32 %v9669_v18, %v9545_v32  ;;  %v3017_v23 = vpop.f32.mrf.mxu1  ;;  %v8025_v11 = vld [vmem:[#allocation9 + $0x534] ss:$8 sps:$4 sm:$0xff]   ;;  %v10162_v52 = vld [vmem:[#allocation35_spill] sm:$0xff]  ;;  %v8110_v7 = vld [vmem:[#allocation9 + $0x630] ss:$8 sps:$4 sm:$0xff]  }
 0x2a1   :  { %vm3157_vm6 = vcmp.ge.f32.partialorder %v3111_v40, 0.0  ;;  %v3189_v47 = vmul.f32 0.01, %v3111_v40  ;;  %v3113_v51 = vadd.f32 %v3112_v41, %v3000_v3  ;;  %5144 = vmatmul.mubr.bf16.gmra.mxu1 %v9672_v61  ;;  %v9720_v35 = vsel %vm3156_vm5, %v3109_v29, %v3188_v27  ;;  %v8022_v3 = vld [vmem:[#allocation9 + $0x424] ss:$8 sps:$4 sm:$0xff]  }
 0x2a2   :  { %5212 = vmatpush1.bf16.msra.mxu1 %v8002_v12  ;;  %5263 = vmatpush1.bf16.msra.mxu0 %v8005_v16  ;;  %v3116_v44 = vpop.f32.mrf.mxu0  ;;  %v3246_v25 = vpack.c.bf16 %v9720_v35, %v9716_v50  ;;  %v3008_v32 = vadd.f32 %v9685_v22, %v10162_v52  ;;  %v3014_v16 = vadd.f32 %v3013_v55, %v9554_v49  ;;  %v10163_v49 = vld [vmem:[#allocation36_spill] sm:$0xff] }
 0x2a3   :  { %v9726_v15 = vsel %vm3157_vm6, %v3111_v40, %v3189_v47  ;;  %vm3158_vm7 = vcmp.ge.f32.partialorder %v3113_v51, 0.0  ;;  %v3190_v26 = vmul.f32 0.01, %v3113_v51  ;;  %5239 = vmatprep.mubr.bf16.mxu1 %v3234_v30  ;;  %5213 = vmatprep.subr.bf16.mxu1 %v8010_v63  ;;  %v3117_v29 = vadd.f32 %v3116_v44, %v3004_v10  ;;  %v8017_v30 = vld [vmem:[#allocation9 + $0x540] ss:$8 sps:$4 sm:$0xff]  }
 0x2a4   :  { %v3247_v46 = vpack.c.bf16 %v9726_v15, %v9711_v58  ;;  %v3118_v0 = vpop.f32.mrf.mxu0  ;;  %5264 = vmatprep.subr.bf16.mxu0 %v8013_v57  ;;  %v3010_v27 = vadd.f32 %v9697_v8, %v9551_v42  ;;  %v3016_v41 = vadd.f32 %v3015_v54, %v9557_v45  ;;  %v3019_v57 = vpop.f32.mrf.mxu1  ;;  %v8028_v47 = vld [vmem:[#allocation9 + $0x414] ss:$8 sps:$4 sm:$0xff]   ;;  %v3018_v55 = vadd.f32 %v3017_v23, %v10163_v49  ;;  %v8041_v49 = vld [vmem:[#allocation9 + $0x500] ss:$8 sps:$4 sm:$0xff]   ;;  %v8106_v50 = vld [vmem:[#allocation9 + $0x644] ss:$8 sps:$4 sm:$0xff]  }
 0x2a5   :  { %5197 = vmatmul.mubr.bf16.gmra.mxu0 %v3243_v37  ;;  %v9735_v19 = vsel %vm3158_vm7, %v3113_v51, %v3190_v26  ;;  %v3119_v18 = vadd.f32 %v3118_v0, %v3006_v60  ;;  %v3191_v40 = vmul.f32 0.01, %v3117_v29  ;;  %vm3159_vm8 = vcmp.ge.f32.partialorder %v3117_v29, 0.0  ;;  %v8031_v51 = vld [vmem:[#allocation9 + $0x524] ss:$8 sps:$4 sm:$0xff]   ;;  %v10164_v26 = vld [vmem:[#allocation37_spill] sm:$0xff] }
 0x2a6   :  { %5214 = vmatpush1.bf16.msra.mxu1 %v8008_v34  ;;  %5265 = vmatpush1.bf16.msra.mxu0 %v8011_v33  ;;  %v3120_v59 = vpop.f32.mrf.mxu0  ;;  %v3248_v5 = vpack.c.bf16 %v9735_v19, %v9699_v6  ;;  %v8026_v37 = vld [vmem:[#allocation9 + $0x410] ss:$8 sps:$4 sm:$0xff]   ;;  %v8029_v0 = vld [vmem:[#allocation9 + $0x520] ss:$8 sps:$4 sm:$0xff]   ;;  %v8112_v6 = vld [vmem:[#allocation9 + $0x634] ss:$8 sps:$4 sm:$0xff]  }
 0x2a7   :  { %5292 = vmatprep.mubr.bf16.mxu0 %v3236_v2  ;;  %5215 = vmatprep.subr.bf16.mxu1 %v8016_v56  ;;  %v3121_v63 = vadd.f32 %v3120_v59, %v3008_v32  ;;  %v8023_v2 = vld [vmem:[#allocation9 + $0x530] ss:$8 sps:$4 sm:$0xff]   ;;  %v3192_v44 = vmul.f32 0.01, %v3119_v18  ;;  %vm3160_vm9 = vcmp.ge.f32.partialorder %v3119_v18, 0.0  ;;  %v3020_v56 = vadd.f32 %v3019_v57, %v10164_v26 }
 0x2a8   :  { %v3122_v12 = vpop.f32.mrf.mxu0  ;;  %5266 = vmatprep.subr.bf16.mxu0 %v8019_v9  ;;  %v9753_v45 = vsel %vm3159_vm8, %v3117_v29, %v3191_v40  ;;  %v8034_v9 = vld [vmem:[#allocation9 + $0x404] ss:$8 sps:$4 sm:$0xff]   ;;  %v8040_v40 = vld [vmem:[#allocation9 + $0x4f4] ss:$8 sps:$4 sm:$0xff]   ;;  %v8053_v26 = vld [vmem:[#allocation9 + $0x5e0] ss:$8 sps:$4 sm:$0xff]  }
 0x2a9   :  { %v3123_v42 = vadd.f32 %v3122_v12, %v3010_v27  ;;  %v3193_v54 = vmul.f32 0.01, %v3121_v63  ;;  %vm3161_vm12 = vcmp.ge.f32.partialorder %v3121_v63, 0.0  ;;  %v8032_v12 = vld [vmem:[#allocation9 + $0x400] ss:$8 sps:$4 sm:$0xff]  }
 0x2aa   :  { %5216 = vmatpush1.bf16.msra.mxu1 %v8014_v62  ;;  %5267 = vmatpush1.bf16.msra.mxu0 %v8017_v30  ;;  %v3126_v4 = vpop.f32.mrf.mxu0  ;;  %v8037_v30 = vld [vmem:[#allocation9 + $0x514] ss:$8 sps:$4 sm:$0xff]   ;;  %v8035_v27 = vld [vmem:[#allocation9 + $0x510] ss:$8 sps:$4 sm:$0xff]   ;;  %v8113_v35 = vld [vmem:[#allocation9 + $0x740] ss:$8 sps:$4 sm:$0xff]  }
 0x2ab   :  { %v3127_v22 = vadd.f32 %v3126_v4, %v3014_v16  ;;  %5217 = vmatprep.subr.bf16.mxu1 %v8022_v3  ;;  %5268 = vmatprep.subr.bf16.mxu0 %v8025_v11  ;;  %v3194_v23 = vmul.f32 0.01, %v3123_v42  ;;  %v9760_v11 = vsel %vm3160_vm9, %v3119_v18, %v3192_v44  ;;  %vm3162_vm14 = vcmp.ge.f32.partialorder %v3123_v42, 0.0  ;;  %v8049_v44 = vld [vmem:[#allocation9 + $0x5f4] ss:$8 sps:$4 sm:$0xff]  }
 0x2ac   :  { %v3128_v8 = vpop.f32.mrf.mxu0  ;;  %v8118_v13 = vld [vmem:[#allocation9 + $0x624] ss:$8 sps:$4 sm:$0xff]   ;;  %v8125_v58 = vld [vmem:[#allocation9 + $0x720] ss:$8 sps:$4 sm:$0xff]   ;;  %v8122_v15 = vld [vmem:[#allocation9 + $0x610] ss:$8 sps:$4 sm:$0xff]  }
 0x2ad   :  { %vm3163_vm10 = vcmp.ge.f32.partialorder %v3127_v22, 0.0  ;;  %v3195_v34 = vmul.f32 0.01, %v3127_v22  ;;  %v3129_v33 = vadd.f32 %v3128_v8, %v3016_v41  ;;  %v8043_v41 = vld [vmem:[#allocation9 + $0x504] ss:$8 sps:$4 sm:$0xff]  }
 0x2ae   :  { %5218 = vmatpush1.bf16.msra.mxu1 %v8020_v53  ;;  %5269 = vmatpush1.bf16.msra.mxu0 %v8023_v2  ;;  %v3130_v10 = vpop.f32.mrf.mxu0  ;;  %v9767_v53 = vsel %vm3161_vm12, %v3121_v63, %v3193_v54  ;;  %v8044_v8 = vld [vmem:[#allocation9 + $0x4e0] ss:$8 sps:$4 sm:$0xff]   ;;  %v8061_v54 = vld [vmem:[#allocation9 + $0x5d4] ss:$8 sps:$4 sm:$0xff]   ;;  %v8127_v19 = vld [vmem:[#allocation9 + $0x724] ss:$8 sps:$4 sm:$0xff]  }
 0x2af   :  { %v9755_v60 = vsel %vm3163_vm10, %v3127_v22, %v3195_v34  ;;  %vm3164_vm11 = vcmp.ge.f32.partialorder %v3129_v33, 0.0  ;;  %v3196_v59 = vmul.f32 0.01, %v3129_v33  ;;  %v3131_v62 = vadd.f32 %v3130_v10, %v3018_v55  ;;  %5219 = vmatprep.subr.bf16.mxu1 %v8028_v47  ;;  %5270 = vmatprep.subr.bf16.mxu0 %v8031_v51  ;;  %v8038_v51 = vld [vmem:[#allocation9 + $0x4f0] ss:$8 sps:$4 sm:$0xff]  }
 0x2b0   :  { %v3251_v29 = vpack.c.bf16 %v9755_v60, %v9753_v45  ;;  %v3132_v3 = vpop.f32.mrf.mxu0  ;;  %v9773_v22 = vsel %vm3162_vm14, %v3123_v42, %v3194_v23  ;;  %v8046_v55 = vld [vmem:[#allocation9 + $0x4e4] ss:$8 sps:$4 sm:$0xff]   ;;  %v8047_v34 = vld [vmem:[#allocation9 + $0x5f0] ss:$8 sps:$4 sm:$0xff]   ;;  %v8052_v42 = vld [vmem:[#allocation9 + $0x4d4] ss:$8 sps:$4 sm:$0xff]  }
 0x2b1   :  { %vm3165_vm13 = vcmp.ge.f32.partialorder %v3131_v62, 0.0  ;;  %v3197_v52 = vmul.f32 0.01, %v3131_v62  ;;  %v3133_v32 = vadd.f32 %v3132_v3, %v3020_v56  ;;  %v9762_v16 = vsel %vm3164_vm11, %v3129_v33, %v3196_v59  ;;  %v8055_v33 = vld [vmem:[#allocation9 + $0x5e4] ss:$8 sps:$4 sm:$0xff]  }
 0x2b2   :  { %5220 = vmatpush1.bf16.msra.mxu1 %v8026_v37  ;;  %5271 = vmatpush1.bf16.msra.mxu0 %v8029_v0  ;;  %v3252_v4 = vpack.c.bf16 %v9762_v16, %v9760_v11  ;;  %v8050_v37 = vld [vmem:[#allocation9 + $0x4d0] ss:$8 sps:$4 sm:$0xff]   ;;  %v8058_v56 = vld [vmem:[#allocation9 + $0x4c4] ss:$8 sps:$4 sm:$0xff]   ;;  %v8056_v10 = vld [vmem:[#allocation9 + $0x4c0] ss:$8 sps:$4 sm:$0xff]  }
 0x2b3   :  { %v9769_v2 = vsel %vm3165_vm13, %v3131_v62, %v3197_v52  ;;  %vm3166_vm15 = vcmp.ge.f32.partialorder %v3133_v32, 0.0  ;;  %v3198_v18 = vmul.f32 0.01, %v3133_v32  ;;  %5221 = vmatprep.subr.bf16.mxu1 %v8034_v9  ;;  %5272 = vmatprep.subr.bf16.mxu0 %v8037_v30  ;;  %v8059_v0 = vld [vmem:[#allocation9 + $0x5d0] ss:$8 sps:$4 sm:$0xff]   ;;  %vm6572_vm10 = vcmask 523264  }
 0x2b4   :  { %v3253_v57 = vpack.c.bf16 %v9769_v2, %v9767_v53  ;;  %v8064_v9 = vld [vmem:[#allocation9 + $0x4b4] ss:$8 sps:$4 sm:$0xff]   ;;  %v8067_v59 = vld [vmem:[#allocation9 + $0x5c4] ss:$8 sps:$4 sm:$0xff]   ;;  %v8062_v62 = vld [vmem:[#allocation9 + $0x4b0] ss:$8 sps:$4 sm:$0xff]  }
 0x2b5   :  { %v9775_v47 = vsel %vm3166_vm15, %v3133_v32, %v3198_v18  ;;  %v8065_v30 = vld [vmem:[#allocation9 + $0x5c0] ss:$8 sps:$4 sm:$0xff]   ;;  %v8070_v23 = vld [vmem:[#allocation9 + $0x4a4] ss:$8 sps:$4 sm:$0xff]   ;;  %v8073_v3 = vld [vmem:[#allocation9 + $0x5b4] ss:$8 sps:$4 sm:$0xff]  }
 0x2b6   :  { %5222 = vmatpush1.bf16.msra.mxu1 %v8032_v12  ;;  %5273 = vmatpush1.bf16.msra.mxu0 %v8035_v27  ;;  %v3254_v63 = vpack.c.bf16 %v9775_v47, %v9773_v22  ;;  %v8068_v52 = vld [vmem:[#allocation9 + $0x4a0] ss:$8 sps:$4 sm:$0xff]   ;;  %v8071_v32 = vld [vmem:[#allocation9 + $0x5b0] ss:$8 sps:$4 sm:$0xff]   ;;  %v8076_v12 = vld [vmem:[#allocation9 + $0x494] ss:$8 sps:$4 sm:$0xff]  }
 0x2b7   :  { %5223 = vmatprep.subr.bf16.mxu1 %v8040_v40  ;;  %5274 = vmatprep.subr.bf16.mxu0 %v8043_v41  ;;  %v8079_v27 = vld [vmem:[#allocation9 + $0x5a4] ss:$8 sps:$4 sm:$0xff]   ;;  %v8074_v40 = vld [vmem:[#allocation9 + $0x490] ss:$8 sps:$4 sm:$0xff]   ;;  %v8077_v18 = vld [vmem:[#allocation9 + $0x5a0] ss:$8 sps:$4 sm:$0xff]  }
 0x2b8   :  { %v8082_v41 = vld [vmem:[#allocation9 + $0x484] ss:$8 sps:$4 sm:$0xff]   ;;  %v8200_v16 = vld [vmem:[#allocation9 + $0x820] ss:$8 sps:$4 sm:$0xff]   ;;  %v8239_v2 = vld [vmem:[#allocation12 + $0x170] ss:$8 sps:$4 sm:$0xff]  }
 0x2b9   :  { %v8202_v11 = vld [vmem:[#allocation9 + $0x824] ss:$8 sps:$4 sm:$0xff]   ;;  %v8212_v60 = vld [vmem:[#allocation9 + $0x8e0] ss:$8 sps:$4 sm:$0xff]  }
 0x2ba   :  { %5224 = vmatpush2.bf16.msra.mxu1 %v8038_v51  ;;  %5275 = vmatpush1.bf16.msra.mxu0 %v8041_v49  ;;  %v8085_v51 = vld [vmem:[#allocation9 + $0x594] ss:$8 sps:$4 sm:$0xff]   ;;  %v8080_v49 = vld [vmem:[#allocation9 + $0x480] ss:$8 sps:$4 sm:$0xff]   ;;  %v8214_v45 = vld [vmem:[#allocation9 + $0x8e4] ss:$8 sps:$4 sm:$0xff]  }
 0x2bb   :  { %5225 = vmatprep.subr.bf16.mxu1 %v8046_v55  ;;  %5276 = vmatprep.subr.bf16.mxu0 %v8049_v44  ;;  %v8083_v55 = vld [vmem:[#allocation9 + $0x590] ss:$8 sps:$4 sm:$0xff]   ;;  %v8088_v44 = vld [vmem:[#allocation9 + $0x584] ss:$8 sps:$4 sm:$0xff]  }
 0x2be   :  { %5226 = vmatpush2.bf16.msra.mxu1 %v8044_v8  ;;  %5277 = vmatpush2.bf16.msra.mxu0 %v8047_v34  ;;  %v8091_v8 = vld [vmem:[#allocation9 + $0x674] ss:$8 sps:$4 sm:$0xff]   ;;  %v8086_v34 = vld [vmem:[#allocation9 + $0x580] ss:$8 sps:$4 sm:$0xff]  }
 0x2bf   :  { %5227 = vmatprep.subr.bf16.mxu1 %v8052_v42  ;;  %5278 = vmatprep.subr.bf16.mxu0 %v8055_v33  ;;  %v8089_v42 = vld [vmem:[#allocation9 + $0x670] ss:$8 sps:$4 sm:$0xff]   ;;  %v8097_v33 = vld [vmem:[#allocation9 + $0x774] ss:$8 sps:$4 sm:$0xff]  }
 0x2c2   :  { %5228 = vmatpush2.bf16.msra.mxu1 %v8050_v37  ;;  %5279 = vmatpush2.bf16.msra.mxu0 %v8053_v26  ;;  %v8094_v37 = vld [vmem:[#allocation9 + $0x664] ss:$8 sps:$4 sm:$0xff]   ;;  %v8095_v26 = vld [vmem:[#allocation9 + $0x770] ss:$8 sps:$4 sm:$0xff]  }
 0x2c3   :  { %5229 = vmatprep.subr.bf16.mxu1 %v8058_v56  ;;  %5280 = vmatprep.subr.bf16.mxu0 %v8061_v54  ;;  %v8092_v56 = vld [vmem:[#allocation9 + $0x660] ss:$8 sps:$4 sm:$0xff]   ;;  %v8103_v54 = vld [vmem:[#allocation9 + $0x764] ss:$8 sps:$4 sm:$0xff]  }
 0x2c6   :  { %5230 = vmatpush2.bf16.msra.mxu1 %v8056_v10  ;;  %5281 = vmatpush2.bf16.msra.mxu0 %v8059_v0  ;;  %v8100_v10 = vld [vmem:[#allocation9 + $0x654] ss:$8 sps:$4 sm:$0xff]   ;;  %v8131_v0 = vld [vmem:[#allocation9 + $0x710] ss:$8 sps:$4 sm:$0xff]  }
 0x2c7   :  { %5231 = vmatprep.subr.bf16.mxu1 %v8064_v9  ;;  %5282 = vmatprep.subr.bf16.mxu0 %v8067_v59  ;;  %v8128_v9 = vld [vmem:[#allocation9 + $0x600] ss:$8 sps:$4 sm:$0xff]   ;;  %v8139_v59 = vld [vmem:[#allocation9 + $0x704] ss:$8 sps:$4 sm:$0xff]  }
 0x2ca   :  { %5232 = vmatpush2.bf16.msra.mxu1 %v8062_v62  ;;  %5283 = vmatpush2.bf16.msra.mxu0 %v8065_v30  ;;  %v8136_v62 = vld [vmem:[#allocation9 + $0x6f4] ss:$8 sps:$4 sm:$0xff]   ;;  %v8137_v30 = vld [vmem:[#allocation9 + $0x700] ss:$8 sps:$4 sm:$0xff]  }
 0x2cb   :  { %5233 = vmatprep.subr.bf16.mxu1 %v8070_v23  ;;  %5284 = vmatprep.subr.bf16.mxu0 %v8073_v3  ;;  %v8134_v23 = vld [vmem:[#allocation9 + $0x6f0] ss:$8 sps:$4 sm:$0xff]   ;;  %v8145_v3 = vld [vmem:[#allocation9 + $0x7f4] ss:$8 sps:$4 sm:$0xff]  }
 0x2ce   :  { %5234 = vmatpush2.bf16.msra.mxu1 %v8068_v52  ;;  %5285 = vmatpush2.bf16.msra.mxu0 %v8071_v32  ;;  %v8142_v52 = vld [vmem:[#allocation9 + $0x6e4] ss:$8 sps:$4 sm:$0xff]   ;;  %v8143_v32 = vld [vmem:[#allocation9 + $0x7f0] ss:$8 sps:$4 sm:$0xff]  }
 0x2cf   :  { %5235 = vmatprep.subr.bf16.mxu1 %v8076_v12  ;;  %5286 = vmatprep.subr.bf16.mxu0 %v8079_v27  ;;  %v8140_v12 = vld [vmem:[#allocation9 + $0x6e0] ss:$8 sps:$4 sm:$0xff]   ;;  %v8151_v27 = vld [vmem:[#allocation9 + $0x7e4] ss:$8 sps:$4 sm:$0xff]  }
 0x2d2   :  { %5236 = vmatpush2.bf16.msra.mxu1 %v8074_v40  ;;  %5287 = vmatpush2.bf16.msra.mxu0 %v8077_v18  ;;  %v8148_v40 = vld [vmem:[#allocation9 + $0x6d4] ss:$8 sps:$4 sm:$0xff]   ;;  %v8149_v18 = vld [vmem:[#allocation9 + $0x7e0] ss:$8 sps:$4 sm:$0xff]  }
 0x2d3   :  { %5237 = vmatprep.subr.bf16.mxu1 %v8082_v41  ;;  %5288 = vmatprep.subr.bf16.mxu0 %v8085_v51  ;;  %v8146_v41 = vld [vmem:[#allocation9 + $0x6d0] ss:$8 sps:$4 sm:$0xff]   ;;  %v8157_v51 = vld [vmem:[#allocation9 + $0x7d4] ss:$8 sps:$4 sm:$0xff]  }
 0x2d6   :  { %5238 = vmatpush2.bf16.msra.mxu1 %v8080_v49  ;;  %5289 = vmatpush2.bf16.msra.mxu0 %v8083_v55  ;;  %v8154_v49 = vld [vmem:[#allocation9 + $0x6c4] ss:$8 sps:$4 sm:$0xff]   ;;  %v8155_v55 = vld [vmem:[#allocation9 + $0x7d0] ss:$8 sps:$4 sm:$0xff]  }
 0x2d7   :  { %5290 = vmatprep.subr.bf16.mxu0 %v8088_v44  ;;  %5313 = vmatprep.subr.bf16.mxu1 %v8091_v8  ;;  %v8152_v44 = vld [vmem:[#allocation9 + $0x6c0] ss:$8 sps:$4 sm:$0xff]   ;;  %v8163_v8 = vld [vmem:[#allocation9 + $0x7c4] ss:$8 sps:$4 sm:$0xff]  }
 0x2d9   :  { %5240 = vmatmul.mubr.bf16.vlgmr.msra.gmra.mxu1 %v3233_v21  ;;  %v8109_v21 = vld [vmem:[#allocation9 + $0x754] ss:$8 sps:$4 sm:$0xff]  }
 0x2da   :  { %5249 = vmatprep.mubr.bf16.mxu1 %v3246_v25  ;;  %5291 = vmatpush2.bf16.msra.mxu0 %v8086_v34  ;;  %v8116_v25 = vld [vmem:[#allocation9 + $0x620] ss:$8 sps:$4 sm:$0xff]   ;;  %v8160_v34 = vld [vmem:[#allocation9 + $0x6b4] ss:$8 sps:$4 sm:$0xff]  }
 0x2db   :  { %5314 = vmatpush1.bf16.msra.mxu1 %v8089_v42  ;;  %5366 = vmatprep.subr.bf16.mxu0 %v8097_v33  ;;  %v8161_v42 = vld [vmem:[#allocation9 + $0x7c0] ss:$8 sps:$4 sm:$0xff]   ;;  %v8158_v33 = vld [vmem:[#allocation9 + $0x6b0] ss:$8 sps:$4 sm:$0xff]  }
 0x2dc   :  { %5315 = vmatprep.subr.bf16.mxu1 %v8094_v37  ;;  %v8169_v37 = vld [vmem:[#allocation9 + $0x7b4] ss:$8 sps:$4 sm:$0xff]  }
 0x2dd   :  { %5293 = vmatmul.mubr.bf16.vlgmr.msra.gmra.mxu0 %v3235_v17  ;;  %v8115_v17 = vld [vmem:[#allocation9 + $0x744] ss:$8 sps:$4 sm:$0xff]  }
 0x2de   :  { %5302 = vmatprep.mubr.bf16.mxu0 %v3248_v5  ;;  %5367 = vmatpush1.bf16.msra.mxu0 %v8095_v26  ;;  %v8124_v5 = vld [vmem:[#allocation9 + $0x614] ss:$8 sps:$4 sm:$0xff]   ;;  %v8166_v26 = vld [vmem:[#allocation9 + $0x6a4] ss:$8 sps:$4 sm:$0xff]  }
 0x2df   :  { %5316 = vmatpush1.bf16.msra.mxu1 %v8092_v56  ;;  %5368 = vmatprep.subr.bf16.mxu0 %v8103_v54  ;;  %v8167_v56 = vld [vmem:[#allocation9 + $0x7b0] ss:$8 sps:$4 sm:$0xff]   ;;  %v8164_v54 = vld [vmem:[#allocation9 + $0x6a0] ss:$8 sps:$4 sm:$0xff]  }
 0x2e0   :  { %5317 = vmatprep.subr.bf16.mxu1 %v8100_v10  ;;  %v8175_v10 = vld [vmem:[#allocation9 + $0x7a4] ss:$8 sps:$4 sm:$0xff]  }
 0x2e1   :  { %5250 = vmatmul.mubr.bf16.gmra.mxu1 %v3245_v24  ;;  %v8119_v24 = vld [vmem:[#allocation9 + $0x730] ss:$8 sps:$4 sm:$0xff]  }
 0x2e2   :  { %5345 = vmatprep.mubr.bf16.mxu1 %v9655_v43  ;;  %5369 = vmatpush1.bf16.msra.mxu0 %v8101_v1  ;;  %v8121_v43 = vld [vmem:[#allocation9 + $0x734] ss:$8 sps:$4 sm:$0xff]  }
 0x2e3   :  { %5318 = vmatpush1.bf16.msra.mxu1 %v8098_v14  ;;  %5370 = vmatprep.subr.bf16.mxu0 %v8109_v21  ;;  %v8172_v1 = vld [vmem:[#allocation9 + $0x694] ss:$8 sps:$4 sm:$0xff]   ;;  %v8173_v14 = vld [vmem:[#allocation9 + $0x7a0] ss:$8 sps:$4 sm:$0xff]   ;;  %v8170_v21 = vld [vmem:[#allocation9 + $0x690] ss:$8 sps:$4 sm:$0xff]  }
 0x2e4   :  { %5319 = vmatprep.subr.bf16.mxu1 %v8106_v50  ;;  %v8181_v50 = vld [vmem:[#allocation9 + $0x794] ss:$8 sps:$4 sm:$0xff]  }
 0x2e5   :  { %5303 = vmatmul.mubr.bf16.gmra.mxu0 %v3247_v46  ;;  %v8130_v46 = vld [vmem:[#allocation9 + $0x604] ss:$8 sps:$4 sm:$0xff]  }
 0x2e6   :  { %5371 = vmatpush1.bf16.msra.mxu0 %v8107_v28  ;;  %5398 = vmatprep.mubr.bf16.mxu0 %v9666_v48  ;;  %v8133_v48 = vld [vmem:[#allocation9 + $0x714] ss:$8 sps:$4 sm:$0xff]   ;;  %v8178_v28 = vld [vmem:[#allocation9 + $0x684] ss:$8 sps:$4 sm:$0xff]  }
 0x2e7   :  { %5320 = vmatpush1.bf16.msra.mxu1 %v8104_v20  ;;  %5372 = vmatprep.subr.bf16.mxu0 %v8115_v17  ;;  %v8179_v20 = vld [vmem:[#allocation9 + $0x790] ss:$8 sps:$4 sm:$0xff]   ;;  %v8176_v17 = vld [vmem:[#allocation9 + $0x680] ss:$8 sps:$4 sm:$0xff]  }
 0x2e8   :  { %5321 = vmatprep.subr.bf16.mxu1 %v8112_v6  ;;  %v8184_v6 = vld [vmem:[#allocation9 + $0x784] ss:$8 sps:$4 sm:$0xff]  }
 0x2ea   :  { %5373 = vmatpush1.bf16.msra.mxu0 %v8113_v35  ;;  %v8187_v35 = vld [vmem:[#allocation9 + $0x874] ss:$8 sps:$4 sm:$0xff]  }
 0x2eb   :  { %5322 = vmatpush1.bf16.msra.mxu1 %v8110_v7  ;;  %5374 = vmatprep.subr.bf16.mxu0 %v8121_v43  ;;  %v8182_v7 = vld [vmem:[#allocation9 + $0x780] ss:$8 sps:$4 sm:$0xff]   ;;  %v8185_v43 = vld [vmem:[#allocation9 + $0x870] ss:$8 sps:$4 sm:$0xff]  }
 0x2ec   :  { %5323 = vmatprep.subr.bf16.mxu1 %v8118_v13  ;;  %v8190_v13 = vld [vmem:[#allocation9 + $0x864] ss:$8 sps:$4 sm:$0xff]  }
 0x2ee   :  { %5375 = vmatpush1.bf16.msra.mxu0 %v8119_v24  ;;  %v3250_v24 = vpack.c.bf16 %v9773_v22, %v10159_v39  ;;  %v8235_v22 = vld [vmem:[#allocation12 + $0x74] ss:$8 sps:$4 sm:$0xff]  }
 0x2ef   :  { %5324 = vmatpush1.bf16.msra.mxu1 %v8116_v25  ;;  %5376 = vmatprep.subr.bf16.mxu0 %v8127_v19  ;;  %v8188_v25 = vld [vmem:[#allocation9 + $0x860] ss:$8 sps:$4 sm:$0xff]   ;;  %v8193_v19 = vld [vmem:[#allocation9 + $0x854] ss:$8 sps:$4 sm:$0xff]  }
 0x2f0   :  { %5325 = vmatprep.subr.bf16.mxu1 %v8124_v5  ;;  %v8191_v5 = vld [vmem:[#allocation9 + $0x850] ss:$8 sps:$4 sm:$0xff]  }
 0x2f2   :  { %5377 = vmatpush1.bf16.msra.mxu0 %v8125_v58  ;;  %v3249_v58 = vpack.c.bf16 %v9767_v53, %v10159_v39  ;;  %v8205_v39 = vld [vmem:[#allocation9 + $0x814] ss:$8 sps:$4 sm:$0xff]   ;;  %v8236_v53 = vld [vmem:[#allocation12 + $0x60] ss:$8 sps:$4 sm:$0xff]  }
 0x2f3   :  { %5326 = vmatpush1.bf16.msra.mxu1 %v8122_v15  ;;  %5378 = vmatprep.subr.bf16.mxu0 %v8133_v48  ;;  %v8196_v15 = vld [vmem:[#allocation9 + $0x844] ss:$8 sps:$4 sm:$0xff]   ;;  %v8199_v48 = vld [vmem:[#allocation9 + $0x834] ss:$8 sps:$4 sm:$0xff]  }
 0x2f4   :  { %5327 = vmatprep.subr.bf16.mxu1 %v8130_v46  ;;  %v8208_v46 = vld [vmem:[#allocation9 + $0x804] ss:$8 sps:$4 sm:$0xff]  }
 0x2f6   :  { %5379 = vmatpush1.bf16.msra.mxu0 %v8131_v0  ;;  %v8211_v0 = vld [vmem:[#allocation9 + $0x8f4] ss:$8 sps:$4 sm:$0xff]  }
 0x2f7   :  { %5328 = vmatpush1.bf16.msra.mxu1 %v8128_v9  ;;  %5380 = vmatprep.subr.bf16.mxu0 %v8139_v59  ;;  %v8209_v9 = vld [vmem:[#allocation9 + $0x8f0] ss:$8 sps:$4 sm:$0xff]  }
 0x2f8   :  { %5329 = vmatprep.subr.bf16.mxu1 %v8136_v62  ;;  %v8215_v59 = vld [vmem:[#allocation9 + $0x8d0] ss:$8 sps:$4 sm:$0xff]   ;;  %v8220_v62 = vld [vmem:[#allocation9 + $0x8c4] ss:$8 sps:$4 sm:$0xff]  }
 0x2fa   :  { %5381 = vmatpush1.bf16.msra.mxu0 %v8137_v30  ;;  %v9812_v30 = vpop.f32.mrf.mxu1 }
 0x2fb   :  { %5330 = vmatpush2.bf16.msra.mxu1 %v8134_v23  ;;  %5382 = vmatprep.subr.bf16.mxu0 %v8145_v3  ;;  %v8218_v23 = vld [vmem:[#allocation9 + $0x8c0] ss:$8 sps:$4 sm:$0xff]   ;;  %v8223_v3 = vld [vmem:[#allocation9 + $0x8b4] ss:$8 sps:$4 sm:$0xff]  }
 0x2fc   :  { %5331 = vmatprep.subr.bf16.mxu1 %v8142_v52  ;;  %v9814_v52 = vpop.f32.mrf.mxu1 }
 0x2fe   :  { %5383 = vmatpush2.bf16.msra.mxu0 %v8143_v32  ;;  %v9816_v32 = vpop.f32.mrf.mxu0 }
 0x2ff   :  { %5332 = vmatpush2.bf16.msra.mxu1 %v8140_v12  ;;  %5384 = vmatprep.subr.bf16.mxu0 %v8151_v27  ;;  %v8221_v12 = vld [vmem:[#allocation9 + $0x8b0] ss:$8 sps:$4 sm:$0xff]   ;;  %v8226_v27 = vld [vmem:[#allocation9 + $0x8a4] ss:$8 sps:$4 sm:$0xff]  }
 0x300   :  { %5333 = vmatprep.subr.bf16.mxu1 %v8148_v40  ;;  %v9818_v40 = vpop.f32.mrf.mxu1 }
 0x302   :  { %5385 = vmatpush2.bf16.msra.mxu0 %v8149_v18  ;;  %v9820_v18 = vpop.f32.mrf.mxu0 }
 0x303   :  { %5334 = vmatpush2.bf16.msra.mxu1 %v8146_v41  ;;  %5386 = vmatprep.subr.bf16.mxu0 %v8157_v51  ;;  %v8224_v41 = vld [vmem:[#allocation9 + $0x8a0] ss:$8 sps:$4 sm:$0xff]   ;;  %v8229_v51 = vld [vmem:[#allocation9 + $0x894] ss:$8 sps:$4 sm:$0xff]  }
 0x304   :  { %5335 = vmatprep.subr.bf16.mxu1 %v8154_v49  ;;  %v9822_v49 = vld [vmem:[#allocation11] sm:$0x3] }
 0x306   :  { %5387 = vmatpush2.bf16.msra.mxu0 %v8155_v55  ;;  %v9824_v55 = vpop.f32.mrf.mxu1 }
 0x307   :  { %5336 = vmatpush2.bf16.msra.mxu1 %v8152_v44  ;;  %5388 = vmatprep.subr.bf16.mxu0 %v8163_v8  ;;  %v9826_v44 = vpop.f32.mrf.mxu0  ;;  %v8227_v8 = vld [vmem:[#allocation9 + $0x890] ss:$8 sps:$4 sm:$0xff]  }
 0x308   :  { %5337 = vmatprep.subr.bf16.mxu1 %v8160_v34  ;;  %v8232_v34 = vld [vmem:[#allocation9 + $0x884] ss:$8 sps:$4 sm:$0xff]  }
 0x30a   :  { %5389 = vmatpush2.bf16.msra.mxu0 %v8161_v42 }
 0x30b   :  { %5338 = vmatpush2.bf16.msra.mxu1 %v8158_v33  ;;  %5390 = vmatprep.subr.bf16.mxu0 %v8169_v37  ;;  %v10165_v33 = vld [vmem:[#allocation39_spill] sm:$0xff] }
 0x30c   :  { %5339 = vmatprep.subr.bf16.mxu1 %v8166_v26  ;;  %v9830_v37 = vrot.slane %v9822_v49, %v10165_v33  ;;  %v9832_v26 = vpop.f32.mrf.mxu0 }
 0x30e   :  { %5391 = vmatpush2.bf16.msra.mxu0 %v8167_v56 }
 0x30f   :  { %5340 = vmatpush2.bf16.msra.mxu1 %v8164_v54  ;;  %5392 = vmatprep.subr.bf16.mxu0 %v8175_v10  ;;  %v8230_v54 = vld [vmem:[#allocation9 + $0x880] ss:$8 sps:$4 sm:$0xff]  }
 0x310   :  { %5341 = vmatprep.subr.bf16.mxu1 %v8172_v1 }
 0x312   :  { %5393 = vmatpush2.bf16.msra.mxu0 %v8173_v14 }
 0x313   :  { %5342 = vmatpush2.bf16.msra.mxu1 %v8170_v21  ;;  %5394 = vmatprep.subr.bf16.mxu0 %v8181_v50 }
 0x314   :  { %5343 = vmatprep.subr.bf16.mxu1 %v8178_v28 }
 0x316   :  { %5395 = vmatpush2.bf16.msra.mxu0 %v8179_v20 }
 0x317   :  { %5344 = vmatpush2.bf16.msra.mxu1 %v8176_v17  ;;  %5396 = vmatprep.subr.bf16.mxu0 %v8184_v6 }
 0x318   :  { %5419 = vmatprep.subr.bf16.mxu1 %v8187_v35 }
 0x31a   :  { %5346 = vmatmul.mubr.bf16.vlgmr.msra.gmra.mxu1 %v9652_v38  ;;  %5397 = vmatpush2.bf16.msra.mxu0 %v8182_v7  ;;  %v8194_v38 = vld [vmem:[#allocation9 + $0x840] ss:$8 sps:$4 sm:$0xff]  }
 0x31b   :  { %5355 = vmatprep.mubr.bf16.mxu1 %v3250_v24  ;;  %5420 = vmatpush1.bf16.msra.mxu1 %v8185_v43 }
 0x31c   :  { %5421 = vmatprep.subr.bf16.mxu1 %v8190_v13  ;;  %6284 = vmatprep.subr.bf16.mxu0 %v8235_v22  ;;  %v8281_v22 = vld [vmem:[#allocation12 + $0x100] ss:$8 sps:$4 sm:$0xff]  }
 0x31d   :  { %5399 = vmatmul.mubr.bf16.vlgmr.msra.gmra.mxu0 %v9660_v31  ;;  %v8197_v31 = vld [vmem:[#allocation9 + $0x830] ss:$8 sps:$4 sm:$0xff]  }
 0x31e   :  { %5408 = vmatprep.mubr.bf16.mxu0 %v3252_v4  ;;  %v8203_v4 = vld [vmem:[#allocation9 + $0x810] ss:$8 sps:$4 sm:$0xff]  }
 0x31f   :  { %5422 = vmatpush1.bf16.msra.mxu1 %v8188_v25 }
 0x320   :  { %5423 = vmatprep.subr.bf16.mxu1 %v8193_v19 }
 0x322   :  { %5356 = vmatmul.mubr.bf16.gmra.mxu1 %v3249_v58 }
 0x323   :  { %5424 = vmatpush1.bf16.msra.mxu1 %v8191_v5  ;;  %5451 = vmatprep.mubr.bf16.mxu1 %v9682_v36  ;;  %v8206_v36 = vld [vmem:[#allocation9 + $0x800] ss:$8 sps:$4 sm:$0xff]  }
 0x324   :  { %5425 = vmatprep.subr.bf16.mxu1 %v8196_v15  ;;  %v8233_v15 = vld [vmem:[#allocation12 + $0x70] ss:$8 sps:$4 sm:$0xff]  }
 0x325   :  { %5409 = vmatmul.mubr.bf16.gmra.mxu0 %v3251_v29  ;;  %v8217_v29 = vld [vmem:[#allocation9 + $0x8d4] ss:$8 sps:$4 sm:$0xff]  }
 0x326   :  { %6285 = vmatpush1.bf16.msra.mxu0 %v8233_v15  ;;  %v8286_v15 = vld [vmem:[#allocation12 + $0xe4] ss:$8 sps:$4 sm:$0xff]  }
 0x327   :  { %5426 = vmatpush1.bf16.msra.mxu1 %v8194_v38 }
 0x328   :  { %5427 = vmatprep.subr.bf16.mxu1 %v8199_v48 }
 0x32b   :  { %5428 = vmatpush1.bf16.msra.mxu1 %v8197_v31 }
 0x32c   :  { %5429 = vmatprep.subr.bf16.mxu1 %v8202_v11 }
 0x32f   :  { %5430 = vmatpush1.bf16.msra.mxu1 %v8200_v16  ;;  %v8238_v16 = vld [vmem:[#allocation12 + $0x64] ss:$8 sps:$4 sm:$0xff]  }
 0x330   :  { %5431 = vmatprep.subr.bf16.mxu1 %v8205_v39  ;;  %v8241_v39 = vld [vmem:[#allocation12 + $0x174] ss:$8 sps:$4 sm:$0xff]   ;;  %6286 = vmatprep.subr.bf16.mxu0 %v8238_v16 }
 0x331   :  { %6287 = vmatpush1.bf16.msra.mxu0 %v8236_v53  ;;  %v8292_v16 = vld [vmem:[#allocation12 + $0xd4] ss:$8 sps:$4 sm:$0xff]   ;;  %v8290_v53 = vld [vmem:[#allocation12 + $0xd0] ss:$8 sps:$4 sm:$0xff]  }
 0x333   :  { %5432 = vmatpush1.bf16.msra.mxu1 %v8203_v4 }
 0x334   :  { %5433 = vmatprep.subr.bf16.mxu1 %v8208_v46 }
 0x337   :  { %5434 = vmatpush1.bf16.msra.mxu1 %v8206_v36  ;;  %v8244_v36 = vld [vmem:[#allocation12 + $0x54] ss:$8 sps:$4 sm:$0xff]  }
 0x338   :  { %5435 = vmatprep.subr.bf16.mxu1 %v8211_v0  ;;  %v8247_v0 = vld [vmem:[#allocation12 + $0x164] ss:$8 sps:$4 sm:$0xff]   ;;  %6288 = vmatprep.subr.bf16.mxu0 %v8244_v36  ;;  %v8301_v36 = vld [vmem:[#allocation12 + $0x1d4] ss:$8 sps:$4 sm:$0xff]  }
 0x33b   :  { %5436 = vmatpush2.bf16.msra.mxu1 %v8209_v9  ;;  %v8242_v9 = vld [vmem:[#allocation12 + $0x50] ss:$8 sps:$4 sm:$0xff]  }
 0x33c   :  { %5437 = vmatprep.subr.bf16.mxu1 %v8214_v45  ;;  %v8245_v45 = vld [vmem:[#allocation12 + $0x160] ss:$8 sps:$4 sm:$0xff]   ;;  %6289 = vmatpush1.bf16.msra.mxu0 %v8242_v9  ;;  %v8299_v9 = vld [vmem:[#allocation12 + $0x1d0] ss:$8 sps:$4 sm:$0xff]  }
 0x33f   :  { %5438 = vmatpush2.bf16.msra.mxu1 %v8212_v60  ;;  %v8250_v60 = vld [vmem:[#allocation12 + $0x44] ss:$8 sps:$4 sm:$0xff]  }
 0x340   :  { %5439 = vmatprep.subr.bf16.mxu1 %v8217_v29  ;;  %v8248_v29 = vld [vmem:[#allocation12 + $0x40] ss:$8 sps:$4 sm:$0xff]   ;;  %6290 = vmatprep.subr.bf16.mxu0 %v8250_v60  ;;  %v8307_v60 = vld [vmem:[#allocation12 + $0x1c4] ss:$8 sps:$4 sm:$0xff]  }
 0x341   :  { %6291 = vmatpush1.bf16.msra.mxu0 %v8248_v29  ;;  %v8302_v29 = vld [vmem:[#allocation12 + $0xb0] ss:$8 sps:$4 sm:$0xff]  }
 0x343   :  { %5440 = vmatpush2.bf16.msra.mxu1 %v8215_v59  ;;  %v8251_v59 = vld [vmem:[#allocation12 + $0x150] ss:$8 sps:$4 sm:$0xff]  }
 0x344   :  { %5441 = vmatprep.subr.bf16.mxu1 %v8220_v62  ;;  %v8253_v62 = vld [vmem:[#allocation12 + $0x154] ss:$8 sps:$4 sm:$0xff]  }
 0x347   :  { %5442 = vmatpush2.bf16.msra.mxu1 %v8218_v23  ;;  %v8256_v23 = vld [vmem:[#allocation12 + $0x34] ss:$8 sps:$4 sm:$0xff]  }
 0x348   :  { %5443 = vmatprep.subr.bf16.mxu1 %v8223_v3  ;;  %v8259_v3 = vld [vmem:[#allocation12 + $0x144] ss:$8 sps:$4 sm:$0xff]   ;;  %6292 = vmatprep.subr.bf16.mxu0 %v8256_v23  ;;  %v8313_v23 = vld [vmem:[#allocation12 + $0x1b4] ss:$8 sps:$4 sm:$0xff]  }
 0x34b   :  { %5444 = vmatpush2.bf16.msra.mxu1 %v8221_v12  ;;  %v8254_v12 = vld [vmem:[#allocation12 + $0x30] ss:$8 sps:$4 sm:$0xff]  }
 0x34c   :  { %5445 = vmatprep.subr.bf16.mxu1 %v8226_v27  ;;  %v8257_v27 = vld [vmem:[#allocation12 + $0x140] ss:$8 sps:$4 sm:$0xff]   ;;  %6293 = vmatpush1.bf16.msra.mxu0 %v8254_v12  ;;  %v8311_v12 = vld [vmem:[#allocation12 + $0x1b0] ss:$8 sps:$4 sm:$0xff]  }
 0x34f   :  { %5446 = vmatpush2.bf16.msra.mxu1 %v8224_v41  ;;  %v8262_v41 = vld [vmem:[#allocation12 + $0x24] ss:$8 sps:$4 sm:$0xff]  }
 0x350   :  { %5447 = vmatprep.subr.bf16.mxu1 %v8229_v51  ;;  %v8265_v51 = vld [vmem:[#allocation12 + $0x134] ss:$8 sps:$4 sm:$0xff]   ;;  %6294 = vmatprep.subr.bf16.mxu0 %v8262_v41 }
 0x351   :  { %v5039_v42 = vpop.f32.mrf.mxu1 }
 0x352   :  { %v5040_v10 = vadd.f32 %v5039_v42, %v9830_v37  ;;  %v8268_v42 = vld [vmem:[#allocation12 + $0x14] ss:$8 sps:$4 sm:$0xff]  }
 0x353   :  { %5448 = vmatpush2.bf16.msra.mxu1 %v8227_v8  ;;  %v9834_v56 = vpop.f32.mrf.mxu1  ;;  %v8260_v8 = vld [vmem:[#allocation12 + $0x20] ss:$8 sps:$4 sm:$0xff]  }
 0x354   :  { %5449 = vmatprep.subr.bf16.mxu1 %v8232_v34  ;;  %v8263_v34 = vld [vmem:[#allocation12 + $0x130] ss:$8 sps:$4 sm:$0xff]   ;;  %6295 = vmatpush1.bf16.msra.mxu0 %v8260_v8  ;;  %v8319_v8 = vld [vmem:[#allocation12 + $0x1a4] ss:$8 sps:$4 sm:$0xff]  }
 0x355   :  { %v5043_v1 = vpop.f32.mrf.mxu1  ;;  %v5092_v14 = vpop.f32.mrf.mxu0  ;;  %6296 = vmatprep.subr.bf16.mxu0 %v8268_v42 }
 0x356   :  { %v5093_v21 = vadd.f32 %v5092_v14, %v5040_v10  ;;  %v5044_v20 = vadd.f32 %v5043_v1, %v9830_v37  ;;  %v8266_v10 = vld [vmem:[#allocation12 + $0x10] ss:$8 sps:$4 sm:$0xff]   ;;  %v8269_v1 = vld [vmem:[#allocation12 + $0x120] ss:$8 sps:$4 sm:$0xff]   ;;  %v8274_v14 = vld [vmem:[#allocation12 + $0x4] ss:$8 sps:$4 sm:$0xff]  }
 0x357   :  { %5450 = vmatpush2.bf16.msra.mxu1 %v8230_v54  ;;  %v9837_v50 = vpop.f32.mrf.mxu1  ;;  %v9839_v28 = vpop.f32.mrf.mxu0  ;;  %v8271_v54 = vld [vmem:[#allocation12 + $0x124] ss:$8 sps:$4 sm:$0xff]  }
 0x358   :  { %6325 = vmatprep.subr.bf16.mxu1 %v8241_v39  ;;  %6297 = vmatpush1.bf16.msra.mxu0 %v8266_v10  ;;  %v8295_v39 = vld [vmem:[#allocation12 + $0x1e4] ss:$8 sps:$4 sm:$0xff]   ;;  %v8317_v10 = vld [vmem:[#allocation12 + $0x1a0] ss:$8 sps:$4 sm:$0xff]  }
 0x359   :  { %v5096_v17 = vpop.f32.mrf.mxu0  ;;  %v9842_v6 = vpop.f32.mrf.mxu1  ;;  %6298 = vmatprep.subr.bf16.mxu0 %v8274_v14 }
 0x35a   :  { %5452 = vmatmul.mubr.bf16.vlgmr.msra.gmra.mxu1 %v9672_v61  ;;  %v5097_v35 = vadd.f32 %v5096_v17, %v5044_v20  ;;  %v8272_v20 = vld [vmem:[#allocation12] ss:$8 sps:$4 sm:$0xff]   ;;  %v8275_v17 = vld [vmem:[#allocation12 + $0x110] ss:$8 sps:$4 sm:$0xff]  }
 0x35b   :  { %5461 = vmatprep.mubr.bf16.mxu1 %v3254_v63  ;;  %v9848_v7 = vpop.f32.mrf.mxu0  ;;  %v9850_v43 = vpop.f32.mrf.mxu1  ;;  %6326 = vmatpush1.bf16.msra.mxu1 %v8239_v2  ;;  %v8293_v2 = vld [vmem:[#allocation12 + $0x1e0] ss:$8 sps:$4 sm:$0xff]  }
 0x35c   :  { %6327 = vmatprep.subr.bf16.mxu1 %v8247_v0  ;;  %6299 = vmatpush1.bf16.msra.mxu0 %v8272_v20  ;;  %v8296_v0 = vld [vmem:[#allocation12 + $0xc0] ss:$8 sps:$4 sm:$0xff]   ;;  %v8325_v20 = vld [vmem:[#allocation12 + $0x194] ss:$8 sps:$4 sm:$0xff]  }
 0x35d   :  { %v9852_v13 = vpop.f32.mrf.mxu1  ;;  %v9854_v24 = vpop.f32.mrf.mxu0 }
 0x35f   :  { %v9856_v25 = vpop.f32.mrf.mxu1  ;;  %v9858_v19 = vpop.f32.mrf.mxu0  ;;  %6328 = vmatpush1.bf16.msra.mxu1 %v8245_v45  ;;  %v8304_v45 = vld [vmem:[#allocation12 + $0xb4] ss:$8 sps:$4 sm:$0xff]  }
 0x360   :  { %6329 = vmatprep.subr.bf16.mxu1 %v8253_v62  ;;  %v8310_v62 = vld [vmem:[#allocation12 + $0xa4] ss:$8 sps:$4 sm:$0xff]  }
 0x361   :  { %v5145_v5 = vpop.f32.mrf.mxu1  ;;  %v9860_v58 = vpop.f32.mrf.mxu0 }
 0x362   :  { %5462 = vmatmul.mubr.bf16.gmra.mxu1 %v3253_v57  ;;  %v5146_v61 = vadd.f32 %v5145_v5, %v5093_v21  ;;  %v8277_v21 = vld [vmem:[#allocation12 + $0x114] ss:$8 sps:$4 sm:$0xff]   ;;  %v8283_v5 = vld [vmem:[#allocation12 + $0x104] ss:$8 sps:$4 sm:$0xff]  }
 0x363   :  { %v9865_v47 = vpop.f32.mrf.mxu1  ;;  %v9867_v63 = vpop.f32.mrf.mxu0  ;;  %6330 = vmatpush1.bf16.msra.mxu1 %v8251_v59  ;;  %v8305_v59 = vld [vmem:[#allocation12 + $0x1c0] ss:$8 sps:$4 sm:$0xff]  }
 0x364   :  { %6331 = vmatprep.subr.bf16.mxu1 %v8259_v3  ;;  %v8308_v3 = vld [vmem:[#allocation12 + $0xa0] ss:$8 sps:$4 sm:$0xff]  }
 0x365   :  { %v5149_v38 = vpop.f32.mrf.mxu1  ;;  %v5198_v48 = vpop.f32.mrf.mxu0 }
 0x366   :  { %v5150_v31 = vadd.f32 %v5149_v38, %v5097_v35  ;;  %v9869_v11 = vadd.f32 %v5198_v48, %v5146_v61  ;;  %v8280_v35 = vld [vmem:[#allocation12 + $0xf4] ss:$8 sps:$4 sm:$0xff]   ;;  %v8278_v61 = vld [vmem:[#allocation12 + $0xf0] ss:$8 sps:$4 sm:$0xff]   ;;  %v8284_v48 = vld [vmem:[#allocation12 + $0xe0] ss:$8 sps:$4 sm:$0xff]  }
 0x367   :  { %v9871_v4 = vpop.f32.mrf.mxu0  ;;  %6332 = vmatpush1.bf16.msra.mxu1 %v8257_v27  ;;  %6300 = vmatprep.subr.bf16.mxu0 %v8280_v35  ;;  %v8289_v38 = vld [vmem:[#allocation12 + $0x1f4] ss:$8 sps:$4 sm:$0xff]   ;;  %v9875_v27 = vpop.f32.mrf.mxu1 }
 0x368   :  { %6333 = vmatprep.subr.bf16.mxu1 %v8265_v51  ;;  %6301 = vmatpush2.bf16.msra.mxu0 %v8278_v61  ;;  %v8316_v51 = vld [vmem:[#allocation12 + $0x94] ss:$8 sps:$4 sm:$0xff]   ;;  %v8323_v61 = vld [vmem:[#allocation12 + $0x190] ss:$8 sps:$4 sm:$0xff]  }
 0x369   :  { %v5202_v57 = vpop.f32.mrf.mxu0  ;;  %6302 = vmatprep.subr.bf16.mxu0 %v8286_v15 }
 0x36a   :  { %v9873_v46 = vadd.f32 %v5202_v57, %v5150_v31  ;;  %v8287_v31 = vld [vmem:[#allocation12 + $0x1f0] ss:$8 sps:$4 sm:$0xff]   ;;  %v8298_v57 = vld [vmem:[#allocation12 + $0xc4] ss:$8 sps:$4 sm:$0xff]  }
 0x36b   :  { %6334 = vmatpush1.bf16.msra.mxu1 %v8263_v34  ;;  %v9879_v34 = vpop.f32.mrf.mxu0 }
 0x36c   :  { %6335 = vmatprep.subr.bf16.mxu1 %v8271_v54  ;;  %6303 = vmatpush2.bf16.msra.mxu0 %v8284_v48  ;;  %v8314_v54 = vld [vmem:[#allocation12 + $0x90] ss:$8 sps:$4 sm:$0xff]   ;;  %v8328_v48 = vld [vmem:[#allocation12 + $0x184] ss:$8 sps:$4 sm:$0xff]  }
 0x36d   :  { %6304 = vmatprep.subr.bf16.mxu0 %v8292_v16 }
 0x36f   :  { %6336 = vmatpush1.bf16.msra.mxu1 %v8269_v1 }
 0x370   :  { %6337 = vmatprep.subr.bf16.mxu1 %v8277_v21  ;;  %6305 = vmatpush2.bf16.msra.mxu0 %v8290_v53  ;;  %v8322_v21 = vld [vmem:[#allocation12 + $0x84] ss:$8 sps:$4 sm:$0xff]   ;;  %v8326_v53 = vld [vmem:[#allocation12 + $0x180] ss:$8 sps:$4 sm:$0xff]  }
 0x371   :  { %6306 = vmatprep.subr.bf16.mxu0 %v8298_v57 }
 0x373   :  { %6338 = vmatpush1.bf16.msra.mxu1 %v8275_v17 }
 0x374   :  { %6339 = vmatprep.subr.bf16.mxu1 %v8283_v5  ;;  %6307 = vmatpush2.bf16.msra.mxu0 %v8296_v0  ;;  %v8320_v5 = vld [vmem:[#allocation12 + $0x80] ss:$8 sps:$4 sm:$0xff]  }
 0x375   :  { %6308 = vmatprep.subr.bf16.mxu0 %v8304_v45  ;;  %v8337_v45 = vld [vmem:[#allocation12 + $0x374] ss:$8 sps:$4 sm:$0xff]  }
 0x377   :  { %6340 = vmatpush1.bf16.msra.mxu1 %v8281_v22 }
 0x378   :  { %6341 = vmatprep.subr.bf16.mxu1 %v8289_v38  ;;  %6309 = vmatpush2.bf16.msra.mxu0 %v8302_v29 }
 0x379   :  { %6310 = vmatprep.subr.bf16.mxu0 %v8310_v62 }
 0x37b   :  { %6342 = vmatpush2.bf16.msra.mxu1 %v8287_v31  ;;  %v8331_v31 = vld [vmem:[#allocation12 + $0x274] ss:$8 sps:$4 sm:$0xff]  }
 0x37c   :  { %6343 = vmatprep.subr.bf16.mxu1 %v8295_v39  ;;  %6311 = vmatpush2.bf16.msra.mxu0 %v8308_v3 }
 0x37d   :  { %6312 = vmatprep.subr.bf16.mxu0 %v8316_v51 }
 0x37f   :  { %6344 = vmatpush2.bf16.msra.mxu1 %v8293_v2 }
 0x380   :  { %6345 = vmatprep.subr.bf16.mxu1 %v8301_v36  ;;  %6313 = vmatpush2.bf16.msra.mxu0 %v8314_v54 }
 0x381   :  { %6314 = vmatprep.subr.bf16.mxu0 %v8322_v21  ;;  %v10166_v21 = vld [vmem:[#allocation40_spill] sm:$0xff] }
 0x383   :  { %6346 = vmatpush2.bf16.msra.mxu1 %v8299_v9 }
 0x384   :  { %6347 = vmatprep.subr.bf16.mxu1 %v8307_v60  ;;  %6315 = vmatpush2.bf16.msra.mxu0 %v8320_v5 }
 0x385   :  { %6366 = vmatprep.subr.bf16.mxu0 %v8331_v31  ;;  %v5034_v31 = vadd.f32 %v9818_v40, %v9830_v37 }
 0x387   :  { %6348 = vmatpush2.bf16.msra.mxu1 %v8305_v59 }
 0x388   :  { %6349 = vmatprep.subr.bf16.mxu1 %v8313_v23 }
 0x38b   :  { %6350 = vmatpush2.bf16.msra.mxu1 %v8311_v12 }
 0x38c   :  { %6351 = vmatprep.subr.bf16.mxu1 %v8319_v8 }
 0x38f   :  { %6352 = vmatpush2.bf16.msra.mxu1 %v8317_v10 }
 0x390   :  { %6353 = vmatprep.subr.bf16.mxu1 %v8325_v20  ;;  %v3552_v20 = vrot.slane %v9822_v49, %v10166_v21  ;;  %v5087_v49 = vadd.f32 %v9826_v44, %v5034_v31 }
 0x393   :  { %6354 = vmatpush2.bf16.msra.mxu1 %v8323_v61  ;;  %v5030_v61 = vadd.f32 %v9812_v30, %v9830_v37 }
 0x394   :  { %6355 = vmatprep.subr.bf16.mxu1 %v8328_v48 }
 0x395   :  { %v5083_v48 = vadd.f32 %v9816_v32, %v5030_v61  ;;  %v5140_v32 = vadd.f32 %v9852_v13, %v5087_v49 }
 0x397   :  { %6356 = vmatpush2.bf16.msra.mxu1 %v8326_v53  ;;  %v5036_v53 = vadd.f32 %v9824_v55, %v3552_v20  ;;  %v5042_v55 = vadd.f32 %v9834_v56, %v3552_v20  ;;  %v5046_v56 = vadd.f32 %v9837_v50, %v3552_v20 }
 0x398   :  { %6407 = vmatprep.subr.bf16.mxu1 %v8337_v45 }
 0x399   :  { %v9877_v41 = vpop.f32.mrf.mxu1 }
 0x39b   :  { %v9881_v42 = vpop.f32.mrf.mxu1 }
 0x39d   :  { %v9883_v1 = vpop.f32.mrf.mxu1  ;;  %v9885_v14 = vpop.f32.mrf.mxu0 }
 0x39f   :  { %v9887_v17 = vpop.f32.mrf.mxu1  ;;  %v9889_v35 = vpop.f32.mrf.mxu0 }
 0x3a1   :  { %v5251_v22 = vpop.f32.mrf.mxu1  ;;  %v9891_v15 = vpop.f32.mrf.mxu0 }
 0x3a2   :  { %v5252_v38 = vadd.f32 %v5251_v22, %v9869_v11  ;;  %v5032_v22 = vadd.f32 %v9814_v52, %v3552_v20  ;;  %v5089_v52 = vadd.f32 %v9832_v26, %v5036_v53 }
 0x3a3   :  { %v9894_v16 = vpop.f32.mrf.mxu1  ;;  %v9896_v39 = vpop.f32.mrf.mxu0 }
 0x3a5   :  { %v5255_v2 = vpop.f32.mrf.mxu1  ;;  %v5304_v57 = vpop.f32.mrf.mxu0 }
 0x3a6   :  { %v5256_v36 = vadd.f32 %v5255_v2, %v9873_v46  ;;  %v5305_v0 = vadd.f32 %v5304_v57, %v5252_v38  ;;  %v5085_v2 = vadd.f32 %v9820_v18, %v5032_v22  ;;  %v5136_v57 = vadd.f32 %v9842_v6, %v5083_v48 }
 0x3a7   :  { %v9899_v9 = vpop.f32.mrf.mxu0  ;;  %v9901_v29 = vpop.f32.mrf.mxu1  ;;  %v5142_v18 = vadd.f32 %v9856_v25, %v5089_v52  ;;  %v5193_v6 = vadd.f32 %v9860_v58, %v5140_v32  ;;  %v8334_v32 = vld [vmem:[#allocation12 + $0x264] ss:$8 sps:$4 sm:$0xff]  }
 0x3a8   :  { %v5189_v30 = vadd.f32 %v9854_v24, %v5136_v57  ;;  %v5095_v24 = vadd.f32 %v9839_v28, %v5042_v55 }
 0x3a9   :  { %v5308_v60 = vpop.f32.mrf.mxu0  ;;  %v5195_v26 = vadd.f32 %v9867_v63, %v5142_v18  ;;  %v5246_v13 = vadd.f32 %v9883_v1, %v5193_v6  ;;  %v5099_v63 = vadd.f32 %v9848_v7, %v5046_v56 }
 0x3aa   :  { %v5309_v11 = vadd.f32 %v5308_v60, %v5256_v36  ;;  %v5242_v40 = vadd.f32 %v9877_v41, %v5189_v30  ;;  %v5148_v25 = vadd.f32 %v9865_v47, %v5095_v24  ;;  %v8340_v24 = vld [vmem:[#allocation12 + $0x254] ss:$8 sps:$4 sm:$0xff]  }
 0x3ab   :  { %v9909_v10 = vpop.f32.mrf.mxu0  ;;  %v5248_v60 = vadd.f32 %v9887_v17, %v5195_v26  ;;  %v5152_v47 = vadd.f32 %v9875_v27, %v5099_v63 }
 0x3ac   :  { %v5201_v1 = vadd.f32 %v9871_v4, %v5148_v25 }
 0x3ad   :  { %v5205_v7 = vadd.f32 %v9879_v34, %v5152_v47  ;;  %v8355_v47 = vld [vmem:[#allocation12 + $0x344] ss:$8 sps:$4 sm:$0xff]  }
 0x3ae   :  { %v5254_v17 = vadd.f32 %v9894_v16, %v5201_v1  ;;  %v8349_v1 = vld [vmem:[#allocation12 + $0x354] ss:$8 sps:$4 sm:$0xff]  }
 0x3af   :  { %v5258_v27 = vadd.f32 %v9901_v29, %v5205_v7  ;;  %v8367_v7 = vld [vmem:[#allocation12 + $0x324] ss:$8 sps:$4 sm:$0xff]  }
 0x3b0   :  { %v5307_v4 = vadd.f32 %v9899_v9, %v5254_v17  ;;  %v8350_v17 = vld [vmem:[#allocation12 + $0x230] ss:$8 sps:$4 sm:$0xff]  }
 0x3b1   :  { %v5311_v34 = vadd.f32 %v9909_v10, %v5258_v27  ;;  %v8371_v27 = vld [vmem:[#allocation12 + $0x310] ss:$8 sps:$4 sm:$0xff]  }
 0x3da   :  { %v5347_v59 = vpop.f32.mrf.mxu1 }
 0x3dc   :  { %v5349_v62 = vpop.f32.mrf.mxu1 }
 0x3dd   :  { %v5400_v5 = vpop.f32.mrf.mxu0 }
 0x3de   :  { %v5351_v23 = vpop.f32.mrf.mxu1 }
 0x3df   :  { %v5402_v38 = vpop.f32.mrf.mxu0 }
 0x3e0   :  { %v5353_v3 = vpop.f32.mrf.mxu1 }
 0x3e1   :  { %v5404_v36 = vpop.f32.mrf.mxu0 }
 0x3e2   :  { %v5357_v12 = vpop.f32.mrf.mxu1 }
 0x3e3   :  { %v9903_v51 = vadd.f32 %v5357_v12, %v5305_v0  ;;  %v5138_v0 = vadd.f32 %v9850_v43, %v5085_v2  ;;  %v5406_v37 = vpop.f32.mrf.mxu0  ;;  %v5295_v43 = vadd.f32 %v9885_v14, %v5242_v40  ;;  %v5299_v14 = vadd.f32 %v9891_v15, %v5246_v13 }
 0x3e4   :  { %v9905_v8 = vpop.f32.mrf.mxu1 }
 0x3e5   :  { %v5191_v45 = vadd.f32 %v9858_v19, %v5138_v0  ;;  %v5348_v41 = vadd.f32 %v5347_v59, %v5295_v43  ;;  %v9941_v58 = vpop.f32.mrf.mxu0  ;;  %v5352_v12 = vadd.f32 %v5351_v23, %v5299_v14  ;;  %v5360_v16 = vadd.f32 %v9905_v8, %v5307_v4  ;;  %v8329_v0 = vld [vmem:[#allocation12 + $0x270] ss:$8 sps:$4 sm:$0xff]  }
 0x3e6   :  { %v5361_v54 = vpop.f32.mrf.mxu1  ;;  %v8335_v43 = vld [vmem:[#allocation12 + $0x370] ss:$8 sps:$4 sm:$0xff]  }
 0x3e7   :  { %v9907_v46 = vadd.f32 %v5361_v54, %v5309_v11  ;;  %v5244_v44 = vadd.f32 %v9881_v42, %v5191_v45  ;;  %v5401_v28 = vadd.f32 %v5400_v5, %v5348_v41  ;;  %v5412_v61 = vpop.f32.mrf.mxu0  ;;  %v5405_v15 = vadd.f32 %v5404_v36, %v5352_v12  ;;  %v8343_v41 = vld [vmem:[#allocation12 + $0x364] ss:$8 sps:$4 sm:$0xff]   ;;  %v8347_v12 = vld [vmem:[#allocation12 + $0x350] ss:$8 sps:$4 sm:$0xff]  }
 0x3e8   :  { %v5363_v42 = vpop.f32.mrf.mxu1  ;;  %v5413_v30 = vadd.f32 %v5412_v61, %v5360_v16  ;;  %v8358_v61 = vld [vmem:[#allocation12 + $0x224] ss:$8 sps:$4 sm:$0xff]   ;;  %v8362_v4 = vld [vmem:[#allocation12 + $0x210] ss:$8 sps:$4 sm:$0xff]   ;;  %v8376_v16 = vld [vmem:[#allocation12 + $0x2f4] ss:$8 sps:$4 sm:$0xff]  }
 0x3e9   :  { %v5297_v19 = vadd.f32 %v9889_v35, %v5244_v44  ;;  %v5301_v35 = vadd.f32 %v9896_v39, %v5248_v60  ;;  %v5364_v55 = vadd.f32 %v5363_v42, %v5311_v34  ;;  %v8332_v44 = vld [vmem:[#allocation12 + $0x260] ss:$8 sps:$4 sm:$0xff]   ;;  %v8338_v42 = vld [vmem:[#allocation12 + $0x250] ss:$8 sps:$4 sm:$0xff]  }
 0x3ea   :  { %v8380_v34 = vld [vmem:[#allocation12 + $0x2e0] ss:$8 sps:$4 sm:$0xff]  }
 0x3eb   :  { %v5350_v11 = vadd.f32 %v5349_v62, %v5297_v19  ;;  %v5354_v20 = vadd.f32 %v5353_v3, %v5301_v35  ;;  %v9953_v3 = vpop.f32.mrf.mxu0 }
 0x3ed   :  { %v5403_v50 = vadd.f32 %v5402_v38, %v5350_v11  ;;  %v5407_v48 = vadd.f32 %v5406_v37, %v5354_v20  ;;  %v5416_v8 = vpop.f32.mrf.mxu0  ;;  %v8341_v11 = vld [vmem:[#allocation12 + $0x360] ss:$8 sps:$4 sm:$0xff]  }
 0x3ee   :  { %v5417_v26 = vadd.f32 %v5416_v8, %v5364_v55  ;;  %v8353_v20 = vld [vmem:[#allocation12 + $0x340] ss:$8 sps:$4 sm:$0xff]   ;;  %v8397_v8 = vld [vmem:[#allocation12 + $0x3d4] ss:$8 sps:$4 sm:$0xff]  }
 0x3ef   :  { %v8400_v55 = vld [vmem:[#allocation12 + $0x2b4] ss:$8 sps:$4 sm:$0xff]  }
 0x41a   :  { %v5453_v59 = vpop.f32.mrf.mxu1 }
 0x41b   :  { %v5454_v54 = vadd.f32 %v5453_v59, %v5401_v28  ;;  %v8346_v28 = vld [vmem:[#allocation12 + $0x244] ss:$8 sps:$4 sm:$0xff]   ;;  %v8344_v59 = vld [vmem:[#allocation12 + $0x240] ss:$8 sps:$4 sm:$0xff]  }
 0x41c   :  { %v5455_v22 = vpop.f32.mrf.mxu1 }
 0x41d   :  { %vm5472_vm0 = vcmp.ge.f32.partialorder %v5454_v54, 0.0  ;;  %v5480_v62 = vmul.f32 0.01, %v5454_v54  ;;  %v5456_v5 = vadd.f32 %v5455_v22, %v5403_v50  ;;  %v8361_v22 = vld [vmem:[#allocation12 + $0x334] ss:$8 sps:$4 sm:$0xff]  }
 0x41e   :  { %v5457_v39 = vpop.f32.mrf.mxu1 }
 0x41f   :  { %vm5473_vm1 = vcmp.ge.f32.partialorder %v5456_v5, 0.0  ;;  %v5481_v23 = vmul.f32 0.01, %v5456_v5  ;;  %v5458_v38 = vadd.f32 %v5457_v39, %v5405_v15  ;;  %v5488_v31 = vsel %vm5472_vm0, %v5454_v54, %v5480_v62  ;;  %v8352_v54 = vld [vmem:[#allocation12 + $0x234] ss:$8 sps:$4 sm:$0xff]  }
 0x420   :  { %v5459_v53 = vpop.f32.mrf.mxu1  ;;  %v5496_v52 = vpack.c.bf16 %v5488_v31, %v5488_v31  ;;  %v8356_v15 = vld [vmem:[#allocation12 + $0x220] ss:$8 sps:$4 sm:$0xff]   ;;  %v8359_v62 = vld [vmem:[#allocation12 + $0x330] ss:$8 sps:$4 sm:$0xff]   ;;  %v8379_v31 = vld [vmem:[#allocation12 + $0x304] ss:$8 sps:$4 sm:$0xff]  }
 0x421   :  { %vm5474_vm2 = vcmp.ge.f32.partialorder %v5458_v38, 0.0  ;;  %v5482_v2 = vmul.f32 0.01, %v5458_v38  ;;  %v5460_v57 = vadd.f32 %v5459_v53, %v5407_v48  ;;  %v5489_v36 = vsel %vm5473_vm1, %v5456_v5, %v5481_v23  ;;  %v8364_v5 = vld [vmem:[#allocation12 + $0x214] ss:$8 sps:$4 sm:$0xff]  }
 0x422   :  { %v9956_v9 = vpop.f32.mrf.mxu1  ;;  %v5497_v49 = vpack.c.bf16 %v5489_v36, %v5489_v36  ;;  %v8365_v39 = vld [vmem:[#allocation12 + $0x320] ss:$8 sps:$4 sm:$0xff]   ;;  %v8370_v48 = vld [vmem:[#allocation12 + $0x204] ss:$8 sps:$4 sm:$0xff]   ;;  %v8373_v23 = vld [vmem:[#allocation12 + $0x314] ss:$8 sps:$4 sm:$0xff]  }
 0x423   :  { %vm5475_vm3 = vcmp.ge.f32.partialorder %v5460_v57, 0.0  ;;  %v5483_v29 = vmul.f32 0.01, %v5460_v57  ;;  %v5490_v45 = vsel %vm5474_vm2, %v5458_v38, %v5482_v2  ;;  %v8368_v38 = vld [vmem:[#allocation12 + $0x200] ss:$8 sps:$4 sm:$0xff]  }
 0x424   :  { %v5465_v40 = vpop.f32.mrf.mxu1  ;;  %6316 = vmatprep.mubr.bf16.mxu0 %v5497_v49  ;;  %v5498_v13 = vpack.c.bf16 %v5490_v45, %v5490_v45  ;;  %v8374_v53 = vld [vmem:[#allocation12 + $0x2f0] ss:$8 sps:$4 sm:$0xff]   ;;  %v8377_v2 = vld [vmem:[#allocation12 + $0x300] ss:$8 sps:$4 sm:$0xff]   ;;  %v8385_v36 = vld [vmem:[#allocation12 + $0x3f4] ss:$8 sps:$4 sm:$0xff]  }
 0x425   :  { %v5466_v18 = vadd.f32 %v5465_v40, %v5413_v30  ;;  %6317 = vmatmul.mubr.bf16.vlgmr.msra.gmra.mxu0 %v5496_v52  ;;  %v5491_v37 = vsel %vm5475_vm3, %v5460_v57, %v5483_v29  ;;  %v8382_v57 = vld [vmem:[#allocation12 + $0x2e4] ss:$8 sps:$4 sm:$0xff]   ;;  %v8383_v49 = vld [vmem:[#allocation12 + $0x3f0] ss:$8 sps:$4 sm:$0xff]   ;;  %v8389_v29 = vld [vmem:[#allocation12 + $0x3e0] ss:$8 sps:$4 sm:$0xff]  }
 0x426   :  { %6367 = vmatpush1.bf16.msra.mxu0 %v8329_v0  ;;  %v9958_v6 = vpop.f32.mrf.mxu1  ;;  %v5499_v10 = vpack.c.bf16 %v5491_v37, %v5491_v37  ;;  %v8388_v0 = vld [vmem:[#allocation12 + $0x2d4] ss:$8 sps:$4 sm:$0xff]   ;;  %v8391_v30 = vld [vmem:[#allocation12 + $0x3e4] ss:$8 sps:$4 sm:$0xff]   ;;  %v8386_v52 = vld [vmem:[#allocation12 + $0x2d0] ss:$8 sps:$4 sm:$0xff]  }
 0x427   :  { %vm5477_vm4 = vcmp.ge.f32.partialorder %v5466_v18, 0.0  ;;  %v5485_v19 = vmul.f32 0.01, %v5466_v18  ;;  %6368 = vmatprep.subr.bf16.mxu0 %v8334_v32  ;;  %v8394_v32 = vld [vmem:[#allocation12 + $0x2c4] ss:$8 sps:$4 sm:$0xff]  }
 0x428   :  { %v5469_v56 = vpop.f32.mrf.mxu1  ;;  %6357 = vmatprep.mubr.bf16.mxu1 %v5499_v10  ;;  %v8392_v45 = vld [vmem:[#allocation12 + $0x2c0] ss:$8 sps:$4 sm:$0xff]   ;;  %v8395_v40 = vld [vmem:[#allocation12 + $0x3d0] ss:$8 sps:$4 sm:$0xff]  }
 0x429   :  { %v5470_v25 = vadd.f32 %v5469_v56, %v5417_v26  ;;  %6358 = vmatmul.mubr.bf16.vlgmr.msra.gmra.mxu1 %v5498_v13  ;;  %v5493_v60 = vsel %vm5477_vm4, %v5466_v18, %v5485_v19  ;;  %v8403_v18 = vld [vmem:[#allocation12 + $0x3c4] ss:$8 sps:$4 sm:$0xff]   ;;  %v8398_v37 = vld [vmem:[#allocation12 + $0x2b0] ss:$8 sps:$4 sm:$0xff]   ;;  %v8401_v10 = vld [vmem:[#allocation12 + $0x3c0] ss:$8 sps:$4 sm:$0xff]  }
 0x42a   :  { %6369 = vmatpush1.bf16.msra.mxu0 %v8332_v44  ;;  %6408 = vmatpush1.bf16.msra.mxu1 %v8335_v43  ;;  %v5501_v14 = vpack.c.bf16 %v5493_v60, %v5493_v60  ;;  %v8406_v44 = vld [vmem:[#allocation12 + $0x2a4] ss:$8 sps:$4 sm:$0xff]   ;;  %v8409_v43 = vld [vmem:[#allocation12 + $0x3b4] ss:$8 sps:$4 sm:$0xff]   ;;  %v8404_v26 = vld [vmem:[#allocation12 + $0x2a0] ss:$8 sps:$4 sm:$0xff]  }
 0x42b   :  { %vm5479_vm5 = vcmp.ge.f32.partialorder %v5470_v25, 0.0  ;;  %v5487_v63 = vmul.f32 0.01, %v5470_v25  ;;  %6370 = vmatprep.subr.bf16.mxu0 %v8340_v24  ;;  %6409 = vmatprep.subr.bf16.mxu1 %v8343_v41  ;;  %v5411_v24 = vadd.f32 %v9941_v58, %v9903_v51  ;;  %v8407_v13 = vld [vmem:[#allocation12 + $0x3b0] ss:$8 sps:$4 sm:$0xff]  }
 0x42c   :  { %6398 = vmatprep.mubr.bf16.mxu0 %v5501_v14  ;;  %v8412_v19 = vld [vmem:[#allocation12 + $0x294] ss:$8 sps:$4 sm:$0xff]   ;;  %v8415_v41 = vld [vmem:[#allocation12 + $0x3a4] ss:$8 sps:$4 sm:$0xff]   ;;  %v8410_v60 = vld [vmem:[#allocation12 + $0x290] ss:$8 sps:$4 sm:$0xff]  }
 0x42d   :  { %v5495_v35 = vsel %vm5479_vm5, %v5470_v25, %v5487_v63  ;;  %v5464_v56 = vadd.f32 %v9956_v9, %v5411_v24  ;;  %v5415_v25 = vadd.f32 %v9953_v3, %v9907_v46  ;;  %v8418_v51 = vld [vmem:[#allocation12 + $0x284] ss:$8 sps:$4 sm:$0xff]   ;;  %v8421_v58 = vld [vmem:[#allocation12 + $0x394] ss:$8 sps:$4 sm:$0xff]   ;;  %v8419_v63 = vld [vmem:[#allocation12 + $0x390] ss:$8 sps:$4 sm:$0xff]  }
 0x42e   :  { %6371 = vmatpush1.bf16.msra.mxu0 %v8338_v42  ;;  %6410 = vmatpush1.bf16.msra.mxu1 %v8341_v11  ;;  %v5503_v50 = vpack.c.bf16 %v5495_v35, %v5495_v35  ;;  %v8413_v42 = vld [vmem:[#allocation12 + $0x3a0] ss:$8 sps:$4 sm:$0xff]   ;;  %v8424_v9 = vld [vmem:[#allocation12 + $0x384] ss:$8 sps:$4 sm:$0xff]  }
 0x42f   :  { %6372 = vmatprep.subr.bf16.mxu0 %v8346_v28  ;;  %6411 = vmatprep.subr.bf16.mxu1 %v8349_v1  ;;  %v5484_v14 = vmul.f32 0.01, %v5464_v56  ;;  %v5468_v11 = vadd.f32 %v9958_v6, %v5415_v25  ;;  %vm5476_vm6 = vcmp.ge.f32.partialorder %v5464_v56, 0.0  ;;  %v8416_v28 = vld [vmem:[#allocation12 + $0x280] ss:$8 sps:$4 sm:$0xff]  }
 0x430   :  { %6439 = vmatprep.mubr.bf16.mxu1 %v5503_v50  ;;  %v8422_v1 = vld [vmem:[#allocation12 + $0x380] ss:$8 sps:$4 sm:$0xff]   ;;  %v6469_v50 = vld [vmem:[%s10074_s7 + $0x78] sm:$0xff] }
 0x431   :  { %v5492_v46 = vsel %vm5476_vm6, %v5464_v56, %v5484_v14  ;;  %v5486_v3 = vmul.f32 0.01, %v5468_v11  ;;  %vm5478_vm7 = vcmp.ge.f32.partialorder %v5468_v11, 0.0  ;;  %v5632_v24 = vld [vmem:[#allocation14] sm:$0x3] }
 0x432   :  { %6373 = vmatpush1.bf16.msra.mxu0 %v8344_v59  ;;  %6412 = vmatpush1.bf16.msra.mxu1 %v8347_v12  ;;  %v5500_v35 = vpack.c.bf16 %v5492_v46, %v5492_v46  ;;  %v6485_v12 = vld [vmem:[%s10074_s7 + $0xf8] sm:$0xff] }
 0x433   :  { %6374 = vmatprep.subr.bf16.mxu0 %v8352_v54  ;;  %6413 = vmatprep.subr.bf16.mxu1 %v8355_v47  ;;  %v5494_v59 = vsel %vm5478_vm7, %v5468_v11, %v5486_v3  ;;  %v6484_v54 = vld [vmem:[%s10074_s7 + $0xf0] sm:$0xff] }
 0x434   :  { %v5502_v6 = vpack.c.bf16 %v5494_v59, %v5494_v59  ;;  %v6468_v47 = vld [vmem:[%s10074_s7 + $0x70] sm:$0xff] }
 0x436   :  { %6375 = vmatpush1.bf16.msra.mxu0 %v8350_v17  ;;  %6414 = vmatpush1.bf16.msra.mxu1 %v8353_v20  ;;  %v6483_v17 = vld [vmem:[%s10074_s7 + $0xe8] sm:$0xff] }
 0x437   :  { %6376 = vmatprep.subr.bf16.mxu0 %v8358_v61  ;;  %6415 = vmatprep.subr.bf16.mxu1 %v8361_v22  ;;  %v6467_v20 = vld [vmem:[%s10074_s7 + $0x68] sm:$0xff]  ;;  %v6482_v61 = vld [vmem:[%s10074_s7 + $0xe0] sm:$0xff] }
 0x438   :  { %v6466_v22 = vld [vmem:[%s10074_s7 + $0x60] sm:$0xff] }
 0x43a   :  { %6377 = vmatpush1.bf16.msra.mxu0 %v8356_v15  ;;  %6416 = vmatpush1.bf16.msra.mxu1 %v8359_v62  ;;  %v6481_v15 = vld [vmem:[%s10074_s7 + $0xd8] sm:$0xff] }
 0x43b   :  { %6378 = vmatprep.subr.bf16.mxu0 %v8364_v5  ;;  %6417 = vmatprep.subr.bf16.mxu1 %v8367_v7  ;;  %v6465_v62 = vld [vmem:[%s10074_s7 + $0x58] sm:$0xff]  ;;  %v6480_v5 = vld [vmem:[%s10074_s7 + $0xd0] sm:$0xff] }
 0x43c   :  { %v6464_v7 = vld [vmem:[%s10074_s7 + $0x50] sm:$0xff] }
 0x43e   :  { %6379 = vmatpush1.bf16.msra.mxu0 %v8362_v4  ;;  %6418 = vmatpush1.bf16.msra.mxu1 %v8365_v39  ;;  %v6479_v4 = vld [vmem:[%s10074_s7 + $0xc8] sm:$0xff] }
 0x43f   :  { %6380 = vmatprep.subr.bf16.mxu0 %v8370_v48  ;;  %6419 = vmatprep.subr.bf16.mxu1 %v8373_v23  ;;  %v6463_v39 = vld [vmem:[%s10074_s7 + $0x48] sm:$0xff]  ;;  %v6478_v48 = vld [vmem:[%s10074_s7 + $0xc0] sm:$0xff] }
 0x440   :  { %v6462_v23 = vld [vmem:[%s10074_s7 + $0x40] sm:$0xff] }
 0x442   :  { %6381 = vmatpush1.bf16.msra.mxu0 %v8368_v38  ;;  %6420 = vmatpush1.bf16.msra.mxu1 %v8371_v27  ;;  %v6477_v38 = vld [vmem:[%s10074_s7 + $0xb8] sm:$0xff] }
 0x443   :  { %6382 = vmatprep.subr.bf16.mxu0 %v8376_v16  ;;  %6421 = vmatprep.subr.bf16.mxu1 %v8379_v31  ;;  %v6461_v27 = vld [vmem:[%s10074_s7 + $0x38] sm:$0xff]  ;;  %v6476_v16 = vld [vmem:[%s10074_s7 + $0xb0] sm:$0xff] }
 0x444   :  { %v6460_v31 = vld [vmem:[%s10074_s7 + $0x30] sm:$0xff] }
 0x446   :  { %6383 = vmatpush2.bf16.msra.mxu0 %v8374_v53  ;;  %6422 = vmatpush1.bf16.msra.mxu1 %v8377_v2  ;;  %v6475_v53 = vld [vmem:[%s10074_s7 + $0xa8] sm:$0xff] }
 0x447   :  { %6384 = vmatprep.subr.bf16.mxu0 %v8382_v57  ;;  %6423 = vmatprep.subr.bf16.mxu1 %v8385_v36  ;;  %v6459_v2 = vld [vmem:[%s10074_s7 + $0x28] sm:$0xff]  ;;  %v6474_v57 = vld [vmem:[%s10074_s7 + $0xa0] sm:$0xff] }
 0x448   :  { %v6458_v36 = vld [vmem:[%s10074_s7 + $0x20] sm:$0xff] }
 0x44a   :  { %6385 = vmatpush2.bf16.msra.mxu0 %v8380_v34  ;;  %6424 = vmatpush2.bf16.msra.mxu1 %v8383_v49  ;;  %v6473_v34 = vld [vmem:[%s10074_s7 + $0x98] sm:$0xff] }
 0x44b   :  { %6386 = vmatprep.subr.bf16.mxu0 %v8388_v0  ;;  %6425 = vmatprep.subr.bf16.mxu1 %v8391_v30  ;;  %v6457_v49 = vld [vmem:[%s10074_s7 + $0x18] sm:$0xff]  ;;  %v6472_v0 = vld [vmem:[%s10074_s7 + $0x90] sm:$0xff] }
 0x44c   :  { %v6456_v30 = vld [vmem:[%s10074_s7 + $0x10] sm:$0xff] }
 0x44e   :  { %6387 = vmatpush2.bf16.msra.mxu0 %v8386_v52  ;;  %6426 = vmatpush2.bf16.msra.mxu1 %v8389_v29  ;;  %v6471_v52 = vld [vmem:[%s10074_s7 + $0x88] sm:$0xff] }
 0x44f   :  { %6388 = vmatprep.subr.bf16.mxu0 %v8394_v32  ;;  %6427 = vmatprep.subr.bf16.mxu1 %v8397_v8  ;;  %v6455_v29 = vld [vmem:[%s10074_s7 + $0x8] sm:$0xff]  ;;  %v6470_v32 = vld [vmem:[%s10074_s7 + $0x80] sm:$0xff] }
 0x450   :  { %v6454_v8 = vld [vmem:[%s10074_s7] sm:$0xff]  ;;  %s8653_s7 = smov [#allocation18]  }
 0x451   :  { %s6596_s23 = sshll.u32 %s8653_s7, 4  ;;  %s6597_s23 = int_to_ptr.vmem [resolvable:$true] %s6596_s23 }
 0x452   :  { %6389 = vmatpush2.bf16.msra.mxu0 %v8392_v45  ;;  %6428 = vmatpush2.bf16.msra.mxu1 %v8395_v40  ;;  %s8605_s24 = scalar_lea.vmem %s6597_s23, 128  ;;  %p8610_p4 = scmp.lt.s32.totalorder %s6597_s23, %s6597_s23 }
 0x453   :  { %6390 = vmatprep.subr.bf16.mxu0 %v8400_v55  ;;  %6429 = vmatprep.subr.bf16.mxu1 %v8403_v18  ;;  %p8606_p3 = scmp.ne.s32.totalorder %s6597_s23, %s8605_s24  ;;  %p8611_p5 = scmp.lt.s32.totalorder %s8605_s24, %s8605_s24 }
 0x455   :  { %p8612_p6 = por %p8611_p5, %p8610_p4 }
 0x456   :  { %6391 = vmatpush2.bf16.msra.mxu0 %v8398_v37  ;;  %6430 = vmatpush2.bf16.msra.mxu1 %v8401_v10 }
 0x457   :  { %6392 = vmatprep.subr.bf16.mxu0 %v8406_v44  ;;  %6431 = vmatprep.subr.bf16.mxu1 %v8409_v43  ;;  %p8613_p7 = pnand %p8612_p6, %p8606_p3 }
 0x45a   :  { %6393 = vmatpush2.bf16.msra.mxu0 %v8404_v26  ;;  %6432 = vmatpush2.bf16.msra.mxu1 %v8407_v13  ;;  %v5637_v26 = vrot.slane %v5632_v24, %v10165_v33  ;;  %v5641_v13 = vrot.slane %v5632_v24, %v10166_v21 }
 0x45b   :  { %6394 = vmatprep.subr.bf16.mxu0 %v8412_v19  ;;  %6433 = vmatprep.subr.bf16.mxu1 %v8415_v41 }
 0x45e   :  { %6395 = vmatpush2.bf16.msra.mxu0 %v8410_v60  ;;  %6434 = vmatpush2.bf16.msra.mxu1 %v8413_v42 }
 0x45f   :  { %6396 = vmatprep.subr.bf16.mxu0 %v8418_v51  ;;  %6435 = vmatprep.subr.bf16.mxu1 %v8421_v58 }
 0x462   :  { %6397 = vmatpush2.bf16.msra.mxu0 %v8416_v28  ;;  %6436 = vmatpush2.bf16.msra.mxu1 %v8419_v63 }
 0x463   :  { %6437 = vmatprep.subr.bf16.mxu1 %v8424_v9  ;;  %7316 = vmatprep.subr.mxu0 %v6485_v12  ;;  %v7313_v12 = vld [vmem:[#allocation15] ss:$0 sm:$0xff] }
 0x465   :  { %6399 = vmatmul.mubr.bf16.vlgmr.msra.gmra.mxu0 %v5500_v35 }
 0x466   :  { %6438 = vmatpush2.bf16.msra.mxu1 %v8422_v1  ;;  %7317 = vmatpush3.msra.mxu0 %v6469_v50 }
 0x467   :  { %7318 = vmatprep.subr.mxu0 %v6484_v54 }
 0x468   :  { %7319 = vmatpush3.msra.mxu0 %v6468_v47 }
 0x469   :  { %6440 = vmatmul.mubr.bf16.vlgmr.msra.gmra.mxu1 %v5502_v6  ;;  %7320 = vmatprep.subr.mxu0 %v6483_v17  ;;  %v7314_v17 = vld [vmem:[#allocation17] ss:$0 sm:$0xff] }
 0x46a   :  { %7321 = vmatpush3.msra.mxu0 %v6467_v20 }
 0x46b   :  { %7322 = vmatprep.subr.mxu0 %v6482_v61 }
 0x46c   :  { %7323 = vmatpush3.msra.mxu0 %v6466_v22 }
 0x46d   :  { %7324 = vmatprep.subr.mxu0 %v6481_v15  ;;  %v8652_v15 = vmov 0  }
 0x46e   :  { %7325 = vmatpush3.msra.mxu0 %v6465_v62  ;;  %7368 = vset.pattern.permute.xlu0 %v8652_v15  ;;  %v7315_v62 = vld [vmem:[#allocation2] ss:$0 sm:$0xff] }
 0x46f   :  { %7326 = vmatprep.subr.mxu0 %v6480_v5 }
 0x470   :  { %7327 = vmatpush3.msra.mxu0 %v6464_v7 }
 0x471   :  { %7328 = vmatprep.subr.mxu0 %v6479_v4 }
 0x472   :  { %7329 = vmatpush3.msra.mxu0 %v6463_v39 }
 0x473   :  { %7330 = vmatprep.subr.mxu0 %v6478_v48 }
 0x474   :  { %7331 = vmatpush3.msra.mxu0 %v6462_v23 }
 0x475   :  { %7332 = vmatprep.subr.mxu0 %v6477_v38 }
 0x476   :  { %7333 = vmatpush3.msra.mxu0 %v6461_v27 }
 0x477   :  { %7334 = vmatprep.subr.mxu0 %v6476_v16 }
 0x478   :  { %7335 = vmatpush3.msra.mxu0 %v6460_v31 }
 0x479   :  { %7336 = vmatprep.subr.mxu0 %v6475_v53 }
 0x47a   :  { %7337 = vmatpush3.msra.mxu0 %v6459_v2 }
 0x47b   :  { %7338 = vmatprep.subr.mxu0 %v6474_v57 }
 0x47c   :  { %7339 = vmatpush3.msra.mxu0 %v6458_v36 }
 0x47d   :  { %7340 = vmatprep.subr.mxu0 %v6473_v34 }
 0x47e   :  { %7341 = vmatpush3.msra.mxu0 %v6457_v49 }
 0x47f   :  { %7342 = vmatprep.subr.mxu0 %v6472_v0 }
 0x480   :  { %7343 = vmatpush3.msra.mxu0 %v6456_v30 }
 0x481   :  { %7344 = vmatprep.subr.mxu0 %v6471_v52 }
 0x482   :  { %7345 = vmatpush3.msra.mxu0 %v6455_v29 }
 0x483   :  { %7346 = vmatprep.subr.mxu0 %v6470_v32 }
 0x484   :  { %7347 = vmatpush3.msra.mxu0 %v6454_v8 }
 0x4e5   :  { %v6318_v45 = vpop.f32.mrf.mxu0 }
 0x4e6   :  { %v6319_v19 = vadd.f32 %v6318_v45, %v5637_v26 }
 0x4e7   :  { %v6320_v40 = vpop.f32.mrf.mxu0 }
 0x4e8   :  { %v6321_v56 = vadd.f32 %v6320_v40, %v5641_v13 }
 0x4e9   :  { %v6322_v55 = vpop.f32.mrf.mxu0  ;;  %v6359_v18 = vpop.f32.mrf.mxu1 }
 0x4ea   :  { %v6360_v25 = vadd.f32 %v6359_v18, %v6319_v19 }
 0x4eb   :  { %v6323_v37 = vpop.f32.mrf.mxu0  ;;  %v6361_v10 = vpop.f32.mrf.mxu1 }
 0x4ec   :  { %v6362_v42 = vadd.f32 %v6361_v10, %v6321_v56 }
 0x4ed   :  { %v6363_v44 = vpop.f32.mrf.mxu1 }
 0x4ef   :  { %v6364_v43 = vpop.f32.mrf.mxu1 }
 0x525   :  { %v6400_v41 = vpop.f32.mrf.mxu0 }
 0x526   :  { %v6401_v51 = vadd.f32 %v6400_v41, %v6360_v25 }
 0x527   :  { %v6402_v60 = vpop.f32.mrf.mxu0 }
 0x528   :  { %v6403_v11 = vadd.f32 %v6402_v60, %v6362_v42 }
 0x529   :  { %v6404_v58 = vpop.f32.mrf.mxu0  ;;  %v6441_v14 = vpop.f32.mrf.mxu1 }
 0x52a   :  { %v6442_v28 = vadd.f32 %v6441_v14, %v6401_v51 }
 0x52b   :  { %v6405_v63 = vpop.f32.mrf.mxu0  ;;  %v6443_v9 = vpop.f32.mrf.mxu1 }
 0x52c   :  { %v6444_v46 = vadd.f32 %v6443_v9, %v6403_v11  ;;  %v6450_v3 = vmul.f32 0.01, %v6442_v28  ;;  %vm6448_vm8 = vcmp.ge.f32.partialorder %v6442_v28, 0.0 }
 0x52d   :  { %v6445_v1 = vpop.f32.mrf.mxu1 }
 0x52e   :  { %v6451_v33 = vmul.f32 0.01, %v6444_v46  ;;  %vm6449_vm9 = vcmp.ge.f32.partialorder %v6444_v46, 0.0  ;;  %v6452_v59 = vsel %vm6448_vm8, %v6442_v28, %v6450_v3 }
 0x52f   :  { %v6446_v21 = vpop.f32.mrf.mxu1 }
 0x530   :  { %v6453_v35 = vsel %vm6449_vm9, %v6444_v46, %v6451_v33 }
 0x531   :  { %6557 = vmatprep.mubr.f32.mxu0 %v6453_v35 }
 0x532   :  { %6558 = vmatmul.mubr.f32.vlgmr.msra.gmra.mxu0 %v6452_v59 }
 0x5f2   :  { %v7348_v6 = vpop.f32.mrf.mxu0 }
 0x5f4   :  { %v7349_v50 = vpop.f32.mrf.mxu0 }
 0x5f5   :  { %v7350_v54 = vadd.f32 %v7349_v50, %v7348_v6 }
 0x5f7   :  { %v6560_v47 = vadd.f32 %v7350_v54, %v7313_v12 }
 0x5f9   :  { %v6563_v20 = vmax.f32 %v6560_v47, 0.0 }
 0x5fb   :  { %v6571_v61 = vmul.f32 %v7314_v17, %v6563_v20 }
 0x5fd   :  { %v6573_v22 = vsel %vm6572_vm10, %v6571_v61, 0.0 }
 0x5fe   :  { %6574 = vadd.xlane.f32.xlu0 %v6573_v22 }
 0x687   :  { %v6575_v5 = vpop.xlane.xlu0 %6574 }
 0x688   :  { %v6583_v7 = vadd.f32 %v7315_v62, %v6575_v5 }
 0x68a   :  { %6586 = vperm.xlu0 %7368, %v6583_v7  }
 0x705   :  { %v6587_v4 = vpop.permute.xlu0 %6586 }
 0x706   :  { %6589 = vst [vmem:[#allocation18] sm:$0xff] %v6587_v4 }
 0x707   :  { %8616 = shalt.err (!%p8613_p7)
}
 0x708   :  { %6599 = dma.vmem_to_hbm [thread:$0]  %s6597_s23, 128, %s10078_s11, [#allocation5]  }
 0x709   :  { %8635 = dma.done.wait [#allocation5], 128  }
 0x70a   :  { %8636 = vsyncadd [#allocation5], 4294967168 }
 0x70b   :  { %6603 = vsyncpa [#allocation4], 1 }
 0x70c   :  { %6604 = vsyncpa [#allocation7], 1 }
 0x70d   :  { %6605 = vsyncpa [#allocation10], 1 }
 0x70e   :  { %6606 = vsyncpa [#allocation13], 1 }
 0x70f   :  { %6607 = vsyncpa [#allocation16], 1 }
 0x710   :  { %6608 = vsyncpa [#allocation5], 1 }

</bundles_post_ra>
